<compile_context>
chip_gen: v7x
topology: tpu7x:2x2x1
jax: 0.10.0
libtpu: 0.0.40
codegen_flags: <defaults>
</compile_context>

<pallas_src>
import functools

import jax
import jax.numpy as jnp
from jax import lax
from jax.experimental import pallas as pl
from jax.experimental.pallas import tpu as pltpu


def _basic_block_kernel(D, H, W, pad,
                        x_ref, w1_ref, b1_ref, w2_ref, b2_ref, mask_ref,
                        o_ref, xf_ref, hf_ref, patch_ref):
    # x_ref    : (1, Cin, S)        f32, S = D*H*W (flattened NCDHW spatial)
    # w1_ref   : (Cout, 27*Cin)     bf16, BN1 scale folded in
    # b1_ref   : (Cout, 1)          f32 folded BN1 bias
    # w2_ref   : (Cout, 27*Cout)    bf16, BN2 scale folded in
    # b2_ref   : (Cout, 1)          f32 folded BN2 bias
    # mask_ref : (27, S)            bf16 per-tap boundary masks (zero padding)
    # o_ref    : (1, Cout, S)       f32 block output
    # xf_ref   : (Cin,  S + 2*pad)  bf16 scratch: flat input with zero halo
    # hf_ref   : (Cout, S + 2*pad)  bf16 scratch: flat conv1 output, zero halo
    # patch_ref: (27*Cin, S)        bf16 scratch: im2col patch matrix
    S = D * H * W
    cin = x_ref.shape[1]
    cout = o_ref.shape[1]

    # Flat-index shift of each of the 27 taps (kd, kh, kw).
    deltas = [(kd - 1) * H * W + (kh - 1) * W + (kw - 1)
              for kd in range(3) for kh in range(3) for kw in range(3)]

    # Keep only the halo zeroed (interior is fully overwritten below).  It is
    # re-zeroed every step (cheap: 2*pad lanes per side) so correctness does
    # not depend on program_id==0 running on every core when the parallel
    # batch axis is split across TensorCores.
    xf_ref[:, :pad] = jnp.zeros((cin, pad), jnp.bfloat16)
    xf_ref[:, pad + S:] = jnp.zeros((cin, pad), jnp.bfloat16)
    hf_ref[:, :pad] = jnp.zeros((cout, pad), jnp.bfloat16)
    hf_ref[:, pad + S:] = jnp.zeros((cout, pad), jnp.bfloat16)

    # Stage the input (bf16) into the flat zero-halo buffer (lane-aligned).
    xf_ref[:, pad:pad + S] = x_ref[0].astype(jnp.bfloat16)

    def conv(flat_ref, w_ref):
        c = flat_ref.shape[0]
        # im2col: each tap is a lane-shifted slice of the flat Ref (a plain
        # load, no 4-D reshape copies), masked at the h/w/d boundaries and
        # written as c rows of the patch scratch.
        for t, delta in enumerate(deltas):
            off = pad + delta
            piece = flat_ref[:, off:off + S] * mask_ref[t:t + 1, :]
            patch_ref[t * c:(t + 1) * c, :] = piece
        # Single K = 27*c bf16 contraction on the MXU, f32 accumulation.
        return jnp.dot(w_ref[...], patch_ref[...],
                       preferred_element_type=jnp.float32)

    # conv1 -> folded BN1 (scale already in the weights) -> ReLU
    out1 = jnp.maximum(conv(xf_ref, w1_ref) + b1_ref[...], 0.0)
    hf_ref[:, pad:pad + S] = out1.astype(jnp.bfloat16)

    # conv2 -> folded BN2 bias -> residual add (Cin == Cout) -> final ReLU
    out2 = conv(hf_ref, w2_ref) + b2_ref[...]
    o_ref[0] = jnp.maximum(out2 + x_ref[0], 0.0)


def basic_block(x, w1, s1, b1, w2, s2, b2):
    """x: (N, C, D, H, W) f32 (PyTorch NCDHW).  w*: (Cout, Cin, 3, 3, 3).
    s*/b*: (Cout,) folded BatchNorm scale / bias.  Returns (N, C, D, H, W)."""
    N, C, D, H, W = x.shape
    cout = w1.shape[0]
    S = D * H * W
    # Flat halo width: must cover the largest tap shift (H*W + W + 1); rounded
    # up to a lane multiple so the interior staging store stays lane-aligned.
    pad = ((H * W + W + 1 + 127) // 128) * 128

    # Fold BN scale into the conv weights on the host; reshape to the im2col
    # column order (kd, kh, kw, ci) used by the kernel; cast to bf16.
    def fold(w, s):
        wf = w * s[:, None, None, None, None]
        wf = jnp.transpose(wf, (0, 2, 3, 4, 1))      # (co, kd, kh, kw, ci)
        return wf.reshape(w.shape[0], -1).astype(jnp.bfloat16)

    w1m = fold(w1, s1)                               # (Cout, 27*Cin)
    w2m = fold(w2, s2)                               # (Cout, 27*Cout)

    # Boundary masks: tap (kd,kh,kw) contributes at output (d,h,w) only if the
    # shifted source index stays inside the volume (implements zero padding).
    dd = jnp.arange(D)[:, None, None]
    hh = jnp.arange(H)[None, :, None]
    ww = jnp.arange(W)[None, None, :]
    masks = []
    for kd in range(3):
        for kh in range(3):
            for kw in range(3):
                valid = ((dd + kd - 1 >= 0) & (dd + kd - 1 < D) &
                         (hh + kh - 1 >= 0) & (hh + kh - 1 < H) &
                         (ww + kw - 1 >= 0) & (ww + kw - 1 < W))
                masks.append(jnp.broadcast_to(valid, (D, H, W)).reshape(S))
    mask = jnp.stack(masks).astype(jnp.bfloat16)     # (27, S)

    x_flat = x.reshape(N, C, S)
    b1c = b1.reshape(cout, 1).astype(jnp.float32)
    b2c = b2.reshape(cout, 1).astype(jnp.float32)

    kernel = functools.partial(_basic_block_kernel, D, H, W, pad)

    out_flat = pl.pallas_call(
        kernel,
        out_shape=jax.ShapeDtypeStruct((N, cout, S), jnp.float32),
        grid_spec=pltpu.PrefetchScalarGridSpec(
            num_scalar_prefetch=0,
            grid=(N,),
            in_specs=[
                pl.BlockSpec((1, C, S), lambda n: (n, 0, 0)),
                pl.BlockSpec((cout, 27 * C), lambda n: (0, 0)),
                pl.BlockSpec((cout, 1), lambda n: (0, 0)),
                pl.BlockSpec((cout, 27 * cout), lambda n: (0, 0)),
                pl.BlockSpec((cout, 1), lambda n: (0, 0)),
                pl.BlockSpec((27, S), lambda n: (0, 0)),
            ],
            out_specs=pl.BlockSpec((1, cout, S), lambda n: (n, 0, 0)),
            scratch_shapes=[
                pltpu.VMEM((C, S + 2 * pad), jnp.bfloat16),
                pltpu.VMEM((cout, S + 2 * pad), jnp.bfloat16),
                pltpu.VMEM((27 * C, S), jnp.bfloat16),
            ],
        ),
        compiler_params=pltpu.CompilerParams(
            dimension_semantics=("parallel",),
            vmem_limit_bytes=32 * 1024 * 1024,
        ),
    )(x_flat, w1m, b1c, w2m, b2c, mask)

    return out_flat.reshape(N, cout, D, H, W)


def ref_forward(x, w1, s1, b1, w2, s2, b2):
    """Pure-JAX f32 reference (NCDHW, OIDHW), inference-mode BN folded."""
    dn = ("NCDHW", "OIDHW", "NCDHW")
    y = lax.conv_general_dilated(x, w1, (1, 1, 1), "SAME",
                                 dimension_numbers=dn,
                                 precision=lax.Precision.HIGHEST)
    y = jnp.maximum(y * s1[None, :, None, None, None]
                    + b1[None, :, None, None, None], 0.0)
    z = lax.conv_general_dilated(y, w2, (1, 1, 1), "SAME",
                                 dimension_numbers=dn,
                                 precision=lax.Precision.HIGHEST)
    z = z * s2[None, :, None, None, None] + b2[None, :, None, None, None]
    return jnp.maximum(z + x, 0.0)


if __name__ == "__main__":
    key = jax.random.PRNGKey(0)
    N, C, D, H, W = 2, 4, 8, 8, 8      # in_planes = planes = 4, stride = 1
    ks = jax.random.split(key, 11)

    x = jax.random.normal(ks[0], (N, C, D, H, W), jnp.float32)
    w1 = 0.1 * jax.random.normal(ks[1], (C, C, 3, 3, 3), jnp.float32)
    w2 = 0.1 * jax.random.normal(ks[2], (C, C, 3, 3, 3), jnp.float32)

    eps = 1e-5
    gamma1 = 1.0 + 0.1 * jax.random.normal(ks[3], (C,), jnp.float32)
    beta1 = 0.1 * jax.random.normal(ks[4], (C,), jnp.float32)
    mean1 = 0.1 * jax.random.normal(ks[5], (C,), jnp.float32)
    var1 = jnp.abs(1.0 + 0.1 * jax.random.normal(ks[6], (C,), jnp.float32))
    gamma2 = 1.0 + 0.1 * jax.random.normal(ks[7], (C,), jnp.float32)
    beta2 = 0.1 * jax.random.normal(ks[8], (C,), jnp.float32)
    mean2 = 0.1 * jax.random.normal(ks[9], (C,), jnp.float32)
    var2 = jnp.abs(1.0 + 0.1 * jax.random.normal(ks[10], (C,), jnp.float32))

    s1 = gamma1 / jnp.sqrt(var1 + eps)
    bb1 = beta1 - mean1 * s1
    s2 = gamma2 / jnp.sqrt(var2 + eps)
    bb2 = beta2 - mean2 * s2

    out = basic_block(x, w1, s1, bb1, w2, s2, bb2)
    jax.block_until_ready(out)

    ref = ref_forward(x, w1, s1, bb1, w2, s2, bb2)
    assert out.shape == (N, C, D, H, W)
    max_err = float(jnp.max(jnp.abs(out - ref)))
    # bf16 matmul inputs with f32 accumulation vs. an f32 HIGHEST reference.
    assert jnp.allclose(out, ref, atol=3e-2, rtol=3e-2), (
        f"mismatch vs JAX reference: max abs err {max_err}")
    print("KERNEL_OK")
</pallas_src>

<mosaic_0001>
module attributes {stable_mosaic.version = 11 : i64} {
  func.func @_basic_block_kernel(%arg0: i32, %arg1: memref<1x4x512xf32, #tpu.memory_space<vmem>>, %arg2: memref<4x108xbf16, #tpu.memory_space<vmem>>, %arg3: memref<4x1xf32, #tpu.memory_space<vmem>>, %arg4: memref<4x108xbf16, #tpu.memory_space<vmem>>, %arg5: memref<4x1xf32, #tpu.memory_space<vmem>>, %arg6: memref<27x512xbf16, #tpu.memory_space<vmem>>, %arg7: memref<1x4x512xf32, #tpu.memory_space<vmem>>, %arg8: memref<4x768xbf16, #tpu.memory_space<vmem>>, %arg9: memref<4x768xbf16, #tpu.memory_space<vmem>>, %arg10: memref<108x512xbf16, #tpu.memory_space<vmem>>) attributes {dimension_semantics = [#tpu.dimension_semantics<parallel>], iteration_bounds = array<i64: 2>, scalar_prefetch = 0 : i64, scratch_operands = 3 : i64, tpu.core_type = #tpu.core_type<tc>, window_params = [{transform_indices = @transform_0, window_bounds = array<i64: 1, 4, 512>}, {pipeline_mode = #tpu.pipeline_mode<synchronous>, transform_indices = @transform_1, window_bounds = array<i64: 4, 108>}, {pipeline_mode = #tpu.pipeline_mode<synchronous>, transform_indices = @transform_2, window_bounds = array<i64: 4, 1>}, {pipeline_mode = #tpu.pipeline_mode<synchronous>, transform_indices = @transform_3, window_bounds = array<i64: 4, 108>}, {pipeline_mode = #tpu.pipeline_mode<synchronous>, transform_indices = @transform_4, window_bounds = array<i64: 4, 1>}, {pipeline_mode = #tpu.pipeline_mode<synchronous>, transform_indices = @transform_5, window_bounds = array<i64: 27, 512>}, {transform_indices = @transform_6, window_bounds = array<i64: 1, 4, 512>}]} {
    %cst = arith.constant 0.000000e+00 : bf16
    %0 = vector.broadcast %cst : bf16 to vector<4x128xbf16>
    %c0 = arith.constant 0 : index
    %c0_0 = arith.constant 0 : index
    %1 = vector.load %arg8[%c0, %c0_0] : memref<4x768xbf16, #tpu.memory_space<vmem>>, vector<4x128xbf16>
    tpu.vector_store %arg8[%c0, %c0_0], %0 {strides = array<i32>} : memref<4x768xbf16, #tpu.memory_space<vmem>>, vector<4x128xbf16>,
    %cst_1 = arith.constant 0.000000e+00 : bf16
    %2 = vector.broadcast %cst_1 : bf16 to vector<4x128xbf16>
    %c0_2 = arith.constant 0 : index
    %c640 = arith.constant 640 : index
    %3 = vector.load %arg8[%c0_2, %c640] : memref<4x768xbf16, #tpu.memory_space<vmem>>, vector<4x128xbf16>
    tpu.vector_store %arg8[%c0_2, %c640], %2 {strides = array<i32>} : memref<4x768xbf16, #tpu.memory_space<vmem>>, vector<4x128xbf16>,
    %cst_3 = arith.constant 0.000000e+00 : bf16
    %4 = vector.broadcast %cst_3 : bf16 to vector<4x128xbf16>
    %c0_4 = arith.constant 0 : index
    %c0_5 = arith.constant 0 : index
    %5 = vector.load %arg9[%c0_4, %c0_5] : memref<4x768xbf16, #tpu.memory_space<vmem>>, vector<4x128xbf16>
    tpu.vector_store %arg9[%c0_4, %c0_5], %4 {strides = array<i32>} : memref<4x768xbf16, #tpu.memory_space<vmem>>, vector<4x128xbf16>,
    %cst_6 = arith.constant 0.000000e+00 : bf16
    %6 = vector.broadcast %cst_6 : bf16 to vector<4x128xbf16>
    %c0_7 = arith.constant 0 : index
    %c640_8 = arith.constant 640 : index
    %7 = vector.load %arg9[%c0_7, %c640_8] : memref<4x768xbf16, #tpu.memory_space<vmem>>, vector<4x128xbf16>
    tpu.vector_store %arg9[%c0_7, %c640_8], %6 {strides = array<i32>} : memref<4x768xbf16, #tpu.memory_space<vmem>>, vector<4x128xbf16>,
    %c0_9 = arith.constant 0 : index
    %c0_10 = arith.constant 0 : index
    %c0_11 = arith.constant 0 : index
    %8 = vector.load %arg1[%c0_9, %c0_10, %c0_11] : memref<1x4x512xf32, #tpu.memory_space<vmem>>, vector<1x4x512xf32>
    %9 = vector.shape_cast %8 : vector<1x4x512xf32> to vector<4x512xf32>
    %10 = arith.truncf %9 : vector<4x512xf32> to vector<4x512xbf16>
    %c0_12 = arith.constant 0 : index
    %c128 = arith.constant 128 : index
    %11 = vector.load %arg8[%c0_12, %c128] : memref<4x768xbf16, #tpu.memory_space<vmem>>, vector<4x512xbf16>
    tpu.vector_store %arg8[%c0_12, %c128], %10 {strides = array<i32>} : memref<4x768xbf16, #tpu.memory_space<vmem>>, vector<4x512xbf16>,
    %c0_13 = arith.constant 0 : index
    %c55 = arith.constant 55 : index
    %12 = vector.load %arg8[%c0_13, %c55] : memref<4x768xbf16, #tpu.memory_space<vmem>>, vector<4x512xbf16>
    %c0_14 = arith.constant 0 : index
    %c0_15 = arith.constant 0 : index
    %13 = vector.load %arg6[%c0_14, %c0_15] : memref<27x512xbf16, #tpu.memory_space<vmem>>, vector<1x512xbf16>
    %14 = vector.broadcast %13 : vector<1x512xbf16> to vector<4x512xbf16>
    %15 = arith.mulf %12, %14 : vector<4x512xbf16>
    %c0_16 = arith.constant 0 : index
    %c0_17 = arith.constant 0 : index
    %16 = vector.load %arg10[%c0_16, %c0_17] : memref<108x512xbf16, #tpu.memory_space<vmem>>, vector<4x512xbf16>
    tpu.vector_store %arg10[%c0_16, %c0_17], %15 {strides = array<i32>} : memref<108x512xbf16, #tpu.memory_space<vmem>>, vector<4x512xbf16>,
    %c0_18 = arith.constant 0 : index
    %c56 = arith.constant 56 : index
    %17 = vector.load %arg8[%c0_18, %c56] : memref<4x768xbf16, #tpu.memory_space<vmem>>, vector<4x512xbf16>
    %c1 = arith.constant 1 : index
    %c0_19 = arith.constant 0 : index
    %18 = vector.load %arg6[%c1, %c0_19] : memref<27x512xbf16, #tpu.memory_space<vmem>>, vector<1x512xbf16>
    %19 = vector.broadcast %18 : vector<1x512xbf16> to vector<4x512xbf16>
    %20 = arith.mulf %17, %19 : vector<4x512xbf16>
    %c4 = arith.constant 4 : index
    %c0_20 = arith.constant 0 : index
    %21 = vector.load %arg10[%c4, %c0_20] : memref<108x512xbf16, #tpu.memory_space<vmem>>, vector<4x512xbf16>
    tpu.vector_store %arg10[%c4, %c0_20], %20 {strides = array<i32>} : memref<108x512xbf16, #tpu.memory_space<vmem>>, vector<4x512xbf16>,
    %c0_21 = arith.constant 0 : index
    %c57 = arith.constant 57 : index
    %22 = vector.load %arg8[%c0_21, %c57] : memref<4x768xbf16, #tpu.memory_space<vmem>>, vector<4x512xbf16>
    %c2 = arith.constant 2 : index
    %c0_22 = arith.constant 0 : index
    %23 = vector.load %arg6[%c2, %c0_22] : memref<27x512xbf16, #tpu.memory_space<vmem>>, vector<1x512xbf16>
    %24 = vector.broadcast %23 : vector<1x512xbf16> to vector<4x512xbf16>
    %25 = arith.mulf %22, %24 : vector<4x512xbf16>
    %c8 = arith.constant 8 : index
    %c0_23 = arith.constant 0 : index
    %26 = vector.load %arg10[%c8, %c0_23] : memref<108x512xbf16, #tpu.memory_space<vmem>>, vector<4x512xbf16>
    tpu.vector_store %arg10[%c8, %c0_23], %25 {strides = array<i32>} : memref<108x512xbf16, #tpu.memory_space<vmem>>, vector<4x512xbf16>,
    %c0_24 = arith.constant 0 : index
    %c63 = arith.constant 63 : index
    %27 = vector.load %arg8[%c0_24, %c63] : memref<4x768xbf16, #tpu.memory_space<vmem>>, vector<4x512xbf16>
    %c3 = arith.constant 3 : index
    %c0_25 = arith.constant 0 : index
    %28 = vector.load %arg6[%c3, %c0_25] : memref<27x512xbf16, #tpu.memory_space<vmem>>, vector<1x512xbf16>
    %29 = vector.broadcast %28 : vector<1x512xbf16> to vector<4x512xbf16>
    %30 = arith.mulf %27, %29 : vector<4x512xbf16>
    %c12 = arith.constant 12 : index
    %c0_26 = arith.constant 0 : index
    %31 = vector.load %arg10[%c12, %c0_26] : memref<108x512xbf16, #tpu.memory_space<vmem>>, vector<4x512xbf16>
    tpu.vector_store %arg10[%c12, %c0_26], %30 {strides = array<i32>} : memref<108x512xbf16, #tpu.memory_space<vmem>>, vector<4x512xbf16>,
    %c0_27 = arith.constant 0 : index
    %c64 = arith.constant 64 : index
    %32 = vector.load %arg8[%c0_27, %c64] : memref<4x768xbf16, #tpu.memory_space<vmem>>, vector<4x512xbf16>
    %c4_28 = arith.constant 4 : index
    %c0_29 = arith.constant 0 : index
    %33 = vector.load %arg6[%c4_28, %c0_29] : memref<27x512xbf16, #tpu.memory_space<vmem>>, vector<1x512xbf16>
    %34 = vector.broadcast %33 : vector<1x512xbf16> to vector<4x512xbf16>
    %35 = arith.mulf %32, %34 : vector<4x512xbf16>
    %c16 = arith.constant 16 : index
    %c0_30 = arith.constant 0 : index
    %36 = vector.load %arg10[%c16, %c0_30] : memref<108x512xbf16, #tpu.memory_space<vmem>>, vector<4x512xbf16>
    tpu.vector_store %arg10[%c16, %c0_30], %35 {strides = array<i32>} : memref<108x512xbf16, #tpu.memory_space<vmem>>, vector<4x512xbf16>,
    %c0_31 = arith.constant 0 : index
    %c65 = arith.constant 65 : index
    %37 = vector.load %arg8[%c0_31, %c65] : memref<4x768xbf16, #tpu.memory_space<vmem>>, vector<4x512xbf16>
    %c5 = arith.constant 5 : index
    %c0_32 = arith.constant 0 : index
    %38 = vector.load %arg6[%c5, %c0_32] : memref<27x512xbf16, #tpu.memory_space<vmem>>, vector<1x512xbf16>
    %39 = vector.broadcast %38 : vector<1x512xbf16> to vector<4x512xbf16>
    %40 = arith.mulf %37, %39 : vector<4x512xbf16>
    %c20 = arith.constant 20 : index
    %c0_33 = arith.constant 0 : index
    %41 = vector.load %arg10[%c20, %c0_33] : memref<108x512xbf16, #tpu.memory_space<vmem>>, vector<4x512xbf16>
    tpu.vector_store %arg10[%c20, %c0_33], %40 {strides = array<i32>} : memref<108x512xbf16, #tpu.memory_space<vmem>>, vector<4x512xbf16>,
    %c0_34 = arith.constant 0 : index
    %c71 = arith.constant 71 : index
    %42 = vector.load %arg8[%c0_34, %c71] : memref<4x768xbf16, #tpu.memory_space<vmem>>, vector<4x512xbf16>
    %c6 = arith.constant 6 : index
    %c0_35 = arith.constant 0 : index
    %43 = vector.load %arg6[%c6, %c0_35] : memref<27x512xbf16, #tpu.memory_space<vmem>>, vector<1x512xbf16>
    %44 = vector.broadcast %43 : vector<1x512xbf16> to vector<4x512xbf16>
    %45 = arith.mulf %42, %44 : vector<4x512xbf16>
    %c24 = arith.constant 24 : index
    %c0_36 = arith.constant 0 : index
    %46 = vector.load %arg10[%c24, %c0_36] : memref<108x512xbf16, #tpu.memory_space<vmem>>, vector<4x512xbf16>
    tpu.vector_store %arg10[%c24, %c0_36], %45 {strides = array<i32>} : memref<108x512xbf16, #tpu.memory_space<vmem>>, vector<4x512xbf16>,
    %c0_37 = arith.constant 0 : index
    %c72 = arith.constant 72 : index
    %47 = vector.load %arg8[%c0_37, %c72] : memref<4x768xbf16, #tpu.memory_space<vmem>>, vector<4x512xbf16>
    %c7 = arith.constant 7 : index
    %c0_38 = arith.constant 0 : index
    %48 = vector.load %arg6[%c7, %c0_38] : memref<27x512xbf16, #tpu.memory_space<vmem>>, vector<1x512xbf16>
    %49 = vector.broadcast %48 : vector<1x512xbf16> to vector<4x512xbf16>
    %50 = arith.mulf %47, %49 : vector<4x512xbf16>
    %c28 = arith.constant 28 : index
    %c0_39 = arith.constant 0 : index
    %51 = vector.load %arg10[%c28, %c0_39] : memref<108x512xbf16, #tpu.memory_space<vmem>>, vector<4x512xbf16>
    tpu.vector_store %arg10[%c28, %c0_39], %50 {strides = array<i32>} : memref<108x512xbf16, #tpu.memory_space<vmem>>, vector<4x512xbf16>,
    %c0_40 = arith.constant 0 : index
    %c73 = arith.constant 73 : index
    %52 = vector.load %arg8[%c0_40, %c73] : memref<4x768xbf16, #tpu.memory_space<vmem>>, vector<4x512xbf16>
    %c8_41 = arith.constant 8 : index
    %c0_42 = arith.constant 0 : index
    %53 = vector.load %arg6[%c8_41, %c0_42] : memref<27x512xbf16, #tpu.memory_space<vmem>>, vector<1x512xbf16>
    %54 = vector.broadcast %53 : vector<1x512xbf16> to vector<4x512xbf16>
    %55 = arith.mulf %52, %54 : vector<4x512xbf16>
    %c32 = arith.constant 32 : index
    %c0_43 = arith.constant 0 : index
    %56 = vector.load %arg10[%c32, %c0_43] : memref<108x512xbf16, #tpu.memory_space<vmem>>, vector<4x512xbf16>
    tpu.vector_store %arg10[%c32, %c0_43], %55 {strides = array<i32>} : memref<108x512xbf16, #tpu.memory_space<vmem>>, vector<4x512xbf16>,
    %c0_44 = arith.constant 0 : index
    %c119 = arith.constant 119 : index
    %57 = vector.load %arg8[%c0_44, %c119] : memref<4x768xbf16, #tpu.memory_space<vmem>>, vector<4x512xbf16>
    %c9 = arith.constant 9 : index
    %c0_45 = arith.constant 0 : index
    %58 = vector.load %arg6[%c9, %c0_45] : memref<27x512xbf16, #tpu.memory_space<vmem>>, vector<1x512xbf16>
    %59 = vector.broadcast %58 : vector<1x512xbf16> to vector<4x512xbf16>
    %60 = arith.mulf %57, %59 : vector<4x512xbf16>
    %c36 = arith.constant 36 : index
    %c0_46 = arith.constant 0 : index
    %61 = vector.load %arg10[%c36, %c0_46] : memref<108x512xbf16, #tpu.memory_space<vmem>>, vector<4x512xbf16>
    tpu.vector_store %arg10[%c36, %c0_46], %60 {strides = array<i32>} : memref<108x512xbf16, #tpu.memory_space<vmem>>, vector<4x512xbf16>,
    %c0_47 = arith.constant 0 : index
    %c120 = arith.constant 120 : index
    %62 = vector.load %arg8[%c0_47, %c120] : memref<4x768xbf16, #tpu.memory_space<vmem>>, vector<4x512xbf16>
    %c10 = arith.constant 10 : index
    %c0_48 = arith.constant 0 : index
    %63 = vector.load %arg6[%c10, %c0_48] : memref<27x512xbf16, #tpu.memory_space<vmem>>, vector<1x512xbf16>
    %64 = vector.broadcast %63 : vector<1x512xbf16> to vector<4x512xbf16>
    %65 = arith.mulf %62, %64 : vector<4x512xbf16>
    %c40 = arith.constant 40 : index
    %c0_49 = arith.constant 0 : index
    %66 = vector.load %arg10[%c40, %c0_49] : memref<108x512xbf16, #tpu.memory_space<vmem>>, vector<4x512xbf16>
    tpu.vector_store %arg10[%c40, %c0_49], %65 {strides = array<i32>} : memref<108x512xbf16, #tpu.memory_space<vmem>>, vector<4x512xbf16>,
    %c0_50 = arith.constant 0 : index
    %c121 = arith.constant 121 : index
    %67 = vector.load %arg8[%c0_50, %c121] : memref<4x768xbf16, #tpu.memory_space<vmem>>, vector<4x512xbf16>
    %c11 = arith.constant 11 : index
    %c0_51 = arith.constant 0 : index
    %68 = vector.load %arg6[%c11, %c0_51] : memref<27x512xbf16, #tpu.memory_space<vmem>>, vector<1x512xbf16>
    %69 = vector.broadcast %68 : vector<1x512xbf16> to vector<4x512xbf16>
    %70 = arith.mulf %67, %69 : vector<4x512xbf16>
    %c44 = arith.constant 44 : index
    %c0_52 = arith.constant 0 : index
    %71 = vector.load %arg10[%c44, %c0_52] : memref<108x512xbf16, #tpu.memory_space<vmem>>, vector<4x512xbf16>
    tpu.vector_store %arg10[%c44, %c0_52], %70 {strides = array<i32>} : memref<108x512xbf16, #tpu.memory_space<vmem>>, vector<4x512xbf16>,
    %c0_53 = arith.constant 0 : index
    %c127 = arith.constant 127 : index
    %72 = vector.load %arg8[%c0_53, %c127] : memref<4x768xbf16, #tpu.memory_space<vmem>>, vector<4x512xbf16>
    %c12_54 = arith.constant 12 : index
    %c0_55 = arith.constant 0 : index
    %73 = vector.load %arg6[%c12_54, %c0_55] : memref<27x512xbf16, #tpu.memory_space<vmem>>, vector<1x512xbf16>
    %74 = vector.broadcast %73 : vector<1x512xbf16> to vector<4x512xbf16>
    %75 = arith.mulf %72, %74 : vector<4x512xbf16>
    %c48 = arith.constant 48 : index
    %c0_56 = arith.constant 0 : index
    %76 = vector.load %arg10[%c48, %c0_56] : memref<108x512xbf16, #tpu.memory_space<vmem>>, vector<4x512xbf16>
    tpu.vector_store %arg10[%c48, %c0_56], %75 {strides = array<i32>} : memref<108x512xbf16, #tpu.memory_space<vmem>>, vector<4x512xbf16>,
    %c0_57 = arith.constant 0 : index
    %c128_58 = arith.constant 128 : index
    %77 = vector.load %arg8[%c0_57, %c128_58] : memref<4x768xbf16, #tpu.memory_space<vmem>>, vector<4x512xbf16>
    %c13 = arith.constant 13 : index
    %c0_59 = arith.constant 0 : index
    %78 = vector.load %arg6[%c13, %c0_59] : memref<27x512xbf16, #tpu.memory_space<vmem>>, vector<1x512xbf16>
    %79 = vector.broadcast %78 : vector<1x512xbf16> to vector<4x512xbf16>
    %80 = arith.mulf %77, %79 : vector<4x512xbf16>
    %c52 = arith.constant 52 : index
    %c0_60 = arith.constant 0 : index
    %81 = vector.load %arg10[%c52, %c0_60] : memref<108x512xbf16, #tpu.memory_space<vmem>>, vector<4x512xbf16>
    tpu.vector_store %arg10[%c52, %c0_60], %80 {strides = array<i32>} : memref<108x512xbf16, #tpu.memory_space<vmem>>, vector<4x512xbf16>,
    %c0_61 = arith.constant 0 : index
    %c129 = arith.constant 129 : index
    %82 = vector.load %arg8[%c0_61, %c129] : memref<4x768xbf16, #tpu.memory_space<vmem>>, vector<4x512xbf16>
    %c14 = arith.constant 14 : index
    %c0_62 = arith.constant 0 : index
    %83 = vector.load %arg6[%c14, %c0_62] : memref<27x512xbf16, #tpu.memory_space<vmem>>, vector<1x512xbf16>
    %84 = vector.broadcast %83 : vector<1x512xbf16> to vector<4x512xbf16>
    %85 = arith.mulf %82, %84 : vector<4x512xbf16>
    %c56_63 = arith.constant 56 : index
    %c0_64 = arith.constant 0 : index
    %86 = vector.load %arg10[%c56_63, %c0_64] : memref<108x512xbf16, #tpu.memory_space<vmem>>, vector<4x512xbf16>
    tpu.vector_store %arg10[%c56_63, %c0_64], %85 {strides = array<i32>} : memref<108x512xbf16, #tpu.memory_space<vmem>>, vector<4x512xbf16>,
    %c0_65 = arith.constant 0 : index
    %c135 = arith.constant 135 : index
    %87 = vector.load %arg8[%c0_65, %c135] : memref<4x768xbf16, #tpu.memory_space<vmem>>, vector<4x512xbf16>
    %c15 = arith.constant 15 : index
    %c0_66 = arith.constant 0 : index
    %88 = vector.load %arg6[%c15, %c0_66] : memref<27x512xbf16, #tpu.memory_space<vmem>>, vector<1x512xbf16>
    %89 = vector.broadcast %88 : vector<1x512xbf16> to vector<4x512xbf16>
    %90 = arith.mulf %87, %89 : vector<4x512xbf16>
    %c60 = arith.constant 60 : index
    %c0_67 = arith.constant 0 : index
    %91 = vector.load %arg10[%c60, %c0_67] : memref<108x512xbf16, #tpu.memory_space<vmem>>, vector<4x512xbf16>
    tpu.vector_store %arg10[%c60, %c0_67], %90 {strides = array<i32>} : memref<108x512xbf16, #tpu.memory_space<vmem>>, vector<4x512xbf16>,
    %c0_68 = arith.constant 0 : index
    %c136 = arith.constant 136 : index
    %92 = vector.load %arg8[%c0_68, %c136] : memref<4x768xbf16, #tpu.memory_space<vmem>>, vector<4x512xbf16>
    %c16_69 = arith.constant 16 : index
    %c0_70 = arith.constant 0 : index
    %93 = vector.load %arg6[%c16_69, %c0_70] : memref<27x512xbf16, #tpu.memory_space<vmem>>, vector<1x512xbf16>
    %94 = vector.broadcast %93 : vector<1x512xbf16> to vector<4x512xbf16>
    %95 = arith.mulf %92, %94 : vector<4x512xbf16>
    %c64_71 = arith.constant 64 : index
    %c0_72 = arith.constant 0 : index
    %96 = vector.load %arg10[%c64_71, %c0_72] : memref<108x512xbf16, #tpu.memory_space<vmem>>, vector<4x512xbf16>
    tpu.vector_store %arg10[%c64_71, %c0_72], %95 {strides = array<i32>} : memref<108x512xbf16, #tpu.memory_space<vmem>>, vector<4x512xbf16>,
    %c0_73 = arith.constant 0 : index
    %c137 = arith.constant 137 : index
    %97 = vector.load %arg8[%c0_73, %c137] : memref<4x768xbf16, #tpu.memory_space<vmem>>, vector<4x512xbf16>
    %c17 = arith.constant 17 : index
    %c0_74 = arith.constant 0 : index
    %98 = vector.load %arg6[%c17, %c0_74] : memref<27x512xbf16, #tpu.memory_space<vmem>>, vector<1x512xbf16>
    %99 = vector.broadcast %98 : vector<1x512xbf16> to vector<4x512xbf16>
    %100 = arith.mulf %97, %99 : vector<4x512xbf16>
    %c68 = arith.constant 68 : index
    %c0_75 = arith.constant 0 : index
    %101 = vector.load %arg10[%c68, %c0_75] : memref<108x512xbf16, #tpu.memory_space<vmem>>, vector<4x512xbf16>
    tpu.vector_store %arg10[%c68, %c0_75], %100 {strides = array<i32>} : memref<108x512xbf16, #tpu.memory_space<vmem>>, vector<4x512xbf16>,
    %c0_76 = arith.constant 0 : index
    %c183 = arith.constant 183 : index
    %102 = vector.load %arg8[%c0_76, %c183] : memref<4x768xbf16, #tpu.memory_space<vmem>>, vector<4x512xbf16>
    %c18 = arith.constant 18 : index
    %c0_77 = arith.constant 0 : index
    %103 = vector.load %arg6[%c18, %c0_77] : memref<27x512xbf16, #tpu.memory_space<vmem>>, vector<1x512xbf16>
    %104 = vector.broadcast %103 : vector<1x512xbf16> to vector<4x512xbf16>
    %105 = arith.mulf %102, %104 : vector<4x512xbf16>
    %c72_78 = arith.constant 72 : index
    %c0_79 = arith.constant 0 : index
    %106 = vector.load %arg10[%c72_78, %c0_79] : memref<108x512xbf16, #tpu.memory_space<vmem>>, vector<4x512xbf16>
    tpu.vector_store %arg10[%c72_78, %c0_79], %105 {strides = array<i32>} : memref<108x512xbf16, #tpu.memory_space<vmem>>, vector<4x512xbf16>,
    %c0_80 = arith.constant 0 : index
    %c184 = arith.constant 184 : index
    %107 = vector.load %arg8[%c0_80, %c184] : memref<4x768xbf16, #tpu.memory_space<vmem>>, vector<4x512xbf16>
    %c19 = arith.constant 19 : index
    %c0_81 = arith.constant 0 : index
    %108 = vector.load %arg6[%c19, %c0_81] : memref<27x512xbf16, #tpu.memory_space<vmem>>, vector<1x512xbf16>
    %109 = vector.broadcast %108 : vector<1x512xbf16> to vector<4x512xbf16>
    %110 = arith.mulf %107, %109 : vector<4x512xbf16>
    %c76 = arith.constant 76 : index
    %c0_82 = arith.constant 0 : index
    %111 = vector.load %arg10[%c76, %c0_82] : memref<108x512xbf16, #tpu.memory_space<vmem>>, vector<4x512xbf16>
    tpu.vector_store %arg10[%c76, %c0_82], %110 {strides = array<i32>} : memref<108x512xbf16, #tpu.memory_space<vmem>>, vector<4x512xbf16>,
    %c0_83 = arith.constant 0 : index
    %c185 = arith.constant 185 : index
    %112 = vector.load %arg8[%c0_83, %c185] : memref<4x768xbf16, #tpu.memory_space<vmem>>, vector<4x512xbf16>
    %c20_84 = arith.constant 20 : index
    %c0_85 = arith.constant 0 : index
    %113 = vector.load %arg6[%c20_84, %c0_85] : memref<27x512xbf16, #tpu.memory_space<vmem>>, vector<1x512xbf16>
    %114 = vector.broadcast %113 : vector<1x512xbf16> to vector<4x512xbf16>
    %115 = arith.mulf %112, %114 : vector<4x512xbf16>
    %c80 = arith.constant 80 : index
    %c0_86 = arith.constant 0 : index
    %116 = vector.load %arg10[%c80, %c0_86] : memref<108x512xbf16, #tpu.memory_space<vmem>>, vector<4x512xbf16>
    tpu.vector_store %arg10[%c80, %c0_86], %115 {strides = array<i32>} : memref<108x512xbf16, #tpu.memory_space<vmem>>, vector<4x512xbf16>,
    %c0_87 = arith.constant 0 : index
    %c191 = arith.constant 191 : index
    %117 = vector.load %arg8[%c0_87, %c191] : memref<4x768xbf16, #tpu.memory_space<vmem>>, vector<4x512xbf16>
    %c21 = arith.constant 21 : index
    %c0_88 = arith.constant 0 : index
    %118 = vector.load %arg6[%c21, %c0_88] : memref<27x512xbf16, #tpu.memory_space<vmem>>, vector<1x512xbf16>
    %119 = vector.broadcast %118 : vector<1x512xbf16> to vector<4x512xbf16>
    %120 = arith.mulf %117, %119 : vector<4x512xbf16>
    %c84 = arith.constant 84 : index
    %c0_89 = arith.constant 0 : index
    %121 = vector.load %arg10[%c84, %c0_89] : memref<108x512xbf16, #tpu.memory_space<vmem>>, vector<4x512xbf16>
    tpu.vector_store %arg10[%c84, %c0_89], %120 {strides = array<i32>} : memref<108x512xbf16, #tpu.memory_space<vmem>>, vector<4x512xbf16>,
    %c0_90 = arith.constant 0 : index
    %c192 = arith.constant 192 : index
    %122 = vector.load %arg8[%c0_90, %c192] : memref<4x768xbf16, #tpu.memory_space<vmem>>, vector<4x512xbf16>
    %c22 = arith.constant 22 : index
    %c0_91 = arith.constant 0 : index
    %123 = vector.load %arg6[%c22, %c0_91] : memref<27x512xbf16, #tpu.memory_space<vmem>>, vector<1x512xbf16>
    %124 = vector.broadcast %123 : vector<1x512xbf16> to vector<4x512xbf16>
    %125 = arith.mulf %122, %124 : vector<4x512xbf16>
    %c88 = arith.constant 88 : index
    %c0_92 = arith.constant 0 : index
    %126 = vector.load %arg10[%c88, %c0_92] : memref<108x512xbf16, #tpu.memory_space<vmem>>, vector<4x512xbf16>
    tpu.vector_store %arg10[%c88, %c0_92], %125 {strides = array<i32>} : memref<108x512xbf16, #tpu.memory_space<vmem>>, vector<4x512xbf16>,
    %c0_93 = arith.constant 0 : index
    %c193 = arith.constant 193 : index
    %127 = vector.load %arg8[%c0_93, %c193] : memref<4x768xbf16, #tpu.memory_space<vmem>>, vector<4x512xbf16>
    %c23 = arith.constant 23 : index
    %c0_94 = arith.constant 0 : index
    %128 = vector.load %arg6[%c23, %c0_94] : memref<27x512xbf16, #tpu.memory_space<vmem>>, vector<1x512xbf16>
    %129 = vector.broadcast %128 : vector<1x512xbf16> to vector<4x512xbf16>
    %130 = arith.mulf %127, %129 : vector<4x512xbf16>
    %c92 = arith.constant 92 : index
    %c0_95 = arith.constant 0 : index
    %131 = vector.load %arg10[%c92, %c0_95] : memref<108x512xbf16, #tpu.memory_space<vmem>>, vector<4x512xbf16>
    tpu.vector_store %arg10[%c92, %c0_95], %130 {strides = array<i32>} : memref<108x512xbf16, #tpu.memory_space<vmem>>, vector<4x512xbf16>,
    %c0_96 = arith.constant 0 : index
    %c199 = arith.constant 199 : index
    %132 = vector.load %arg8[%c0_96, %c199] : memref<4x768xbf16, #tpu.memory_space<vmem>>, vector<4x512xbf16>
    %c24_97 = arith.constant 24 : index
    %c0_98 = arith.constant 0 : index
    %133 = vector.load %arg6[%c24_97, %c0_98] : memref<27x512xbf16, #tpu.memory_space<vmem>>, vector<1x512xbf16>
    %134 = vector.broadcast %133 : vector<1x512xbf16> to vector<4x512xbf16>
    %135 = arith.mulf %132, %134 : vector<4x512xbf16>
    %c96 = arith.constant 96 : index
    %c0_99 = arith.constant 0 : index
    %136 = vector.load %arg10[%c96, %c0_99] : memref<108x512xbf16, #tpu.memory_space<vmem>>, vector<4x512xbf16>
    tpu.vector_store %arg10[%c96, %c0_99], %135 {strides = array<i32>} : memref<108x512xbf16, #tpu.memory_space<vmem>>, vector<4x512xbf16>,
    %c0_100 = arith.constant 0 : index
    %c200 = arith.constant 200 : index
    %137 = vector.load %arg8[%c0_100, %c200] : memref<4x768xbf16, #tpu.memory_space<vmem>>, vector<4x512xbf16>
    %c25 = arith.constant 25 : index
    %c0_101 = arith.constant 0 : index
    %138 = vector.load %arg6[%c25, %c0_101] : memref<27x512xbf16, #tpu.memory_space<vmem>>, vector<1x512xbf16>
    %139 = vector.broadcast %138 : vector<1x512xbf16> to vector<4x512xbf16>
    %140 = arith.mulf %137, %139 : vector<4x512xbf16>
    %c100 = arith.constant 100 : index
    %c0_102 = arith.constant 0 : index
    %141 = vector.load %arg10[%c100, %c0_102] : memref<108x512xbf16, #tpu.memory_space<vmem>>, vector<4x512xbf16>
    tpu.vector_store %arg10[%c100, %c0_102], %140 {strides = array<i32>} : memref<108x512xbf16, #tpu.memory_space<vmem>>, vector<4x512xbf16>,
    %c0_103 = arith.constant 0 : index
    %c201 = arith.constant 201 : index
    %142 = vector.load %arg8[%c0_103, %c201] : memref<4x768xbf16, #tpu.memory_space<vmem>>, vector<4x512xbf16>
    %c26 = arith.constant 26 : index
    %c0_104 = arith.constant 0 : index
    %143 = vector.load %arg6[%c26, %c0_104] : memref<27x512xbf16, #tpu.memory_space<vmem>>, vector<1x512xbf16>
    %144 = vector.broadcast %143 : vector<1x512xbf16> to vector<4x512xbf16>
    %145 = arith.mulf %142, %144 : vector<4x512xbf16>
    %c104 = arith.constant 104 : index
    %c0_105 = arith.constant 0 : index
    %146 = vector.load %arg10[%c104, %c0_105] : memref<108x512xbf16, #tpu.memory_space<vmem>>, vector<4x512xbf16>
    tpu.vector_store %arg10[%c104, %c0_105], %145 {strides = array<i32>} : memref<108x512xbf16, #tpu.memory_space<vmem>>, vector<4x512xbf16>,
    %c0_106 = arith.constant 0 : index
    %c0_107 = arith.constant 0 : index
    %147 = vector.load %arg2[%c0_106, %c0_107] : memref<4x108xbf16, #tpu.memory_space<vmem>>, vector<4x108xbf16>
    %c0_108 = arith.constant 0 : index
    %c0_109 = arith.constant 0 : index
    %148 = vector.load %arg10[%c0_108, %c0_109] : memref<108x512xbf16, #tpu.memory_space<vmem>>, vector<108x512xbf16>
    %cst_110 = arith.constant dense<0.000000e+00> : vector<4x512xf32>
    %149 = tpu.matmul %147, %148, %cst_110 {dimension_numbers = #tpu.dot_dimension_numbers<[1], [0], [0], [1], [0, 0, 1, 1], [], []>} : vector<4x108xbf16>, vector<108x512xbf16>, vector<4x512xf32> -> vector<4x512xf32>
    %c0_111 = arith.constant 0 : index
    %c0_112 = arith.constant 0 : index
    %150 = vector.load %arg3[%c0_111, %c0_112] : memref<4x1xf32, #tpu.memory_space<vmem>>, vector<4x1xf32>
    %151 = vector.broadcast %150 : vector<4x1xf32> to vector<4x512xf32>
    %152 = arith.addf %149, %151 : vector<4x512xf32>
    %cst_113 = arith.constant 0.000000e+00 : f32
    %153 = vector.broadcast %cst_113 : f32 to vector<4x512xf32>
    %154 = arith.maximumf %152, %153 : vector<4x512xf32>
    %155 = arith.truncf %154 : vector<4x512xf32> to vector<4x512xbf16>
    %c0_114 = arith.constant 0 : index
    %c128_115 = arith.constant 128 : index
    %156 = vector.load %arg9[%c0_114, %c128_115] : memref<4x768xbf16, #tpu.memory_space<vmem>>, vector<4x512xbf16>
    tpu.vector_store %arg9[%c0_114, %c128_115], %155 {strides = array<i32>} : memref<4x768xbf16, #tpu.memory_space<vmem>>, vector<4x512xbf16>,
    %c0_116 = arith.constant 0 : index
    %c55_117 = arith.constant 55 : index
    %157 = vector.load %arg9[%c0_116, %c55_117] : memref<4x768xbf16, #tpu.memory_space<vmem>>, vector<4x512xbf16>
    %c0_118 = arith.constant 0 : index
    %c0_119 = arith.constant 0 : index
    %158 = vector.load %arg6[%c0_118, %c0_119] : memref<27x512xbf16, #tpu.memory_space<vmem>>, vector<1x512xbf16>
    %159 = vector.broadcast %158 : vector<1x512xbf16> to vector<4x512xbf16>
    %160 = arith.mulf %157, %159 : vector<4x512xbf16>
    %c0_120 = arith.constant 0 : index
    %c0_121 = arith.constant 0 : index
    %161 = vector.load %arg10[%c0_120, %c0_121] : memref<108x512xbf16, #tpu.memory_space<vmem>>, vector<4x512xbf16>
    tpu.vector_store %arg10[%c0_120, %c0_121], %160 {strides = array<i32>} : memref<108x512xbf16, #tpu.memory_space<vmem>>, vector<4x512xbf16>,
    %c0_122 = arith.constant 0 : index
    %c56_123 = arith.constant 56 : index
    %162 = vector.load %arg9[%c0_122, %c56_123] : memref<4x768xbf16, #tpu.memory_space<vmem>>, vector<4x512xbf16>
    %c1_124 = arith.constant 1 : index
    %c0_125 = arith.constant 0 : index
    %163 = vector.load %arg6[%c1_124, %c0_125] : memref<27x512xbf16, #tpu.memory_space<vmem>>, vector<1x512xbf16>
    %164 = vector.broadcast %163 : vector<1x512xbf16> to vector<4x512xbf16>
    %165 = arith.mulf %162, %164 : vector<4x512xbf16>
    %c4_126 = arith.constant 4 : index
    %c0_127 = arith.constant 0 : index
    %166 = vector.load %arg10[%c4_126, %c0_127] : memref<108x512xbf16, #tpu.memory_space<vmem>>, vector<4x512xbf16>
    tpu.vector_store %arg10[%c4_126, %c0_127], %165 {strides = array<i32>} : memref<108x512xbf16, #tpu.memory_space<vmem>>, vector<4x512xbf16>,
    %c0_128 = arith.constant 0 : index
    %c57_129 = arith.constant 57 : index
    %167 = vector.load %arg9[%c0_128, %c57_129] : memref<4x768xbf16, #tpu.memory_space<vmem>>, vector<4x512xbf16>
    %c2_130 = arith.constant 2 : index
    %c0_131 = arith.constant 0 : index
    %168 = vector.load %arg6[%c2_130, %c0_131] : memref<27x512xbf16, #tpu.memory_space<vmem>>, vector<1x512xbf16>
    %169 = vector.broadcast %168 : vector<1x512xbf16> to vector<4x512xbf16>
    %170 = arith.mulf %167, %169 : vector<4x512xbf16>
    %c8_132 = arith.constant 8 : index
    %c0_133 = arith.constant 0 : index
    %171 = vector.load %arg10[%c8_132, %c0_133] : memref<108x512xbf16, #tpu.memory_space<vmem>>, vector<4x512xbf16>
    tpu.vector_store %arg10[%c8_132, %c0_133], %170 {strides = array<i32>} : memref<108x512xbf16, #tpu.memory_space<vmem>>, vector<4x512xbf16>,
    %c0_134 = arith.constant 0 : index
    %c63_135 = arith.constant 63 : index
    %172 = vector.load %arg9[%c0_134, %c63_135] : memref<4x768xbf16, #tpu.memory_space<vmem>>, vector<4x512xbf16>
    %c3_136 = arith.constant 3 : index
    %c0_137 = arith.constant 0 : index
    %173 = vector.load %arg6[%c3_136, %c0_137] : memref<27x512xbf16, #tpu.memory_space<vmem>>, vector<1x512xbf16>
    %174 = vector.broadcast %173 : vector<1x512xbf16> to vector<4x512xbf16>
    %175 = arith.mulf %172, %174 : vector<4x512xbf16>
    %c12_138 = arith.constant 12 : index
    %c0_139 = arith.constant 0 : index
    %176 = vector.load %arg10[%c12_138, %c0_139] : memref<108x512xbf16, #tpu.memory_space<vmem>>, vector<4x512xbf16>
    tpu.vector_store %arg10[%c12_138, %c0_139], %175 {strides = array<i32>} : memref<108x512xbf16, #tpu.memory_space<vmem>>, vector<4x512xbf16>,
    %c0_140 = arith.constant 0 : index
    %c64_141 = arith.constant 64 : index
    %177 = vector.load %arg9[%c0_140, %c64_141] : memref<4x768xbf16, #tpu.memory_space<vmem>>, vector<4x512xbf16>
    %c4_142 = arith.constant 4 : index
    %c0_143 = arith.constant 0 : index
    %178 = vector.load %arg6[%c4_142, %c0_143] : memref<27x512xbf16, #tpu.memory_space<vmem>>, vector<1x512xbf16>
    %179 = vector.broadcast %178 : vector<1x512xbf16> to vector<4x512xbf16>
    %180 = arith.mulf %177, %179 : vector<4x512xbf16>
    %c16_144 = arith.constant 16 : index
    %c0_145 = arith.constant 0 : index
    %181 = vector.load %arg10[%c16_144, %c0_145] : memref<108x512xbf16, #tpu.memory_space<vmem>>, vector<4x512xbf16>
    tpu.vector_store %arg10[%c16_144, %c0_145], %180 {strides = array<i32>} : memref<108x512xbf16, #tpu.memory_space<vmem>>, vector<4x512xbf16>,
    %c0_146 = arith.constant 0 : index
    %c65_147 = arith.constant 65 : index
    %182 = vector.load %arg9[%c0_146, %c65_147] : memref<4x768xbf16, #tpu.memory_space<vmem>>, vector<4x512xbf16>
    %c5_148 = arith.constant 5 : index
    %c0_149 = arith.constant 0 : index
    %183 = vector.load %arg6[%c5_148, %c0_149] : memref<27x512xbf16, #tpu.memory_space<vmem>>, vector<1x512xbf16>
    %184 = vector.broadcast %183 : vector<1x512xbf16> to vector<4x512xbf16>
    %185 = arith.mulf %182, %184 : vector<4x512xbf16>
    %c20_150 = arith.constant 20 : index
    %c0_151 = arith.constant 0 : index
    %186 = vector.load %arg10[%c20_150, %c0_151] : memref<108x512xbf16, #tpu.memory_space<vmem>>, vector<4x512xbf16>
    tpu.vector_store %arg10[%c20_150, %c0_151], %185 {strides = array<i32>} : memref<108x512xbf16, #tpu.memory_space<vmem>>, vector<4x512xbf16>,
    %c0_152 = arith.constant 0 : index
    %c71_153 = arith.constant 71 : index
    %187 = vector.load %arg9[%c0_152, %c71_153] : memref<4x768xbf16, #tpu.memory_space<vmem>>, vector<4x512xbf16>
    %c6_154 = arith.constant 6 : index
    %c0_155 = arith.constant 0 : index
    %188 = vector.load %arg6[%c6_154, %c0_155] : memref<27x512xbf16, #tpu.memory_space<vmem>>, vector<1x512xbf16>
    %189 = vector.broadcast %188 : vector<1x512xbf16> to vector<4x512xbf16>
    %190 = arith.mulf %187, %189 : vector<4x512xbf16>
    %c24_156 = arith.constant 24 : index
    %c0_157 = arith.constant 0 : index
    %191 = vector.load %arg10[%c24_156, %c0_157] : memref<108x512xbf16, #tpu.memory_space<vmem>>, vector<4x512xbf16>
    tpu.vector_store %arg10[%c24_156, %c0_157], %190 {strides = array<i32>} : memref<108x512xbf16, #tpu.memory_space<vmem>>, vector<4x512xbf16>,
    %c0_158 = arith.constant 0 : index
    %c72_159 = arith.constant 72 : index
    %192 = vector.load %arg9[%c0_158, %c72_159] : memref<4x768xbf16, #tpu.memory_space<vmem>>, vector<4x512xbf16>
    %c7_160 = arith.constant 7 : index
    %c0_161 = arith.constant 0 : index
    %193 = vector.load %arg6[%c7_160, %c0_161] : memref<27x512xbf16, #tpu.memory_space<vmem>>, vector<1x512xbf16>
    %194 = vector.broadcast %193 : vector<1x512xbf16> to vector<4x512xbf16>
    %195 = arith.mulf %192, %194 : vector<4x512xbf16>
    %c28_162 = arith.constant 28 : index
    %c0_163 = arith.constant 0 : index
    %196 = vector.load %arg10[%c28_162, %c0_163] : memref<108x512xbf16, #tpu.memory_space<vmem>>, vector<4x512xbf16>
    tpu.vector_store %arg10[%c28_162, %c0_163], %195 {strides = array<i32>} : memref<108x512xbf16, #tpu.memory_space<vmem>>, vector<4x512xbf16>,
    %c0_164 = arith.constant 0 : index
    %c73_165 = arith.constant 73 : index
    %197 = vector.load %arg9[%c0_164, %c73_165] : memref<4x768xbf16, #tpu.memory_space<vmem>>, vector<4x512xbf16>
    %c8_166 = arith.constant 8 : index
    %c0_167 = arith.constant 0 : index
    %198 = vector.load %arg6[%c8_166, %c0_167] : memref<27x512xbf16, #tpu.memory_space<vmem>>, vector<1x512xbf16>
    %199 = vector.broadcast %198 : vector<1x512xbf16> to vector<4x512xbf16>
    %200 = arith.mulf %197, %199 : vector<4x512xbf16>
    %c32_168 = arith.constant 32 : index
    %c0_169 = arith.constant 0 : index
    %201 = vector.load %arg10[%c32_168, %c0_169] : memref<108x512xbf16, #tpu.memory_space<vmem>>, vector<4x512xbf16>
    tpu.vector_store %arg10[%c32_168, %c0_169], %200 {strides = array<i32>} : memref<108x512xbf16, #tpu.memory_space<vmem>>, vector<4x512xbf16>,
    %c0_170 = arith.constant 0 : index
    %c119_171 = arith.constant 119 : index
    %202 = vector.load %arg9[%c0_170, %c119_171] : memref<4x768xbf16, #tpu.memory_space<vmem>>, vector<4x512xbf16>
    %c9_172 = arith.constant 9 : index
    %c0_173 = arith.constant 0 : index
    %203 = vector.load %arg6[%c9_172, %c0_173] : memref<27x512xbf16, #tpu.memory_space<vmem>>, vector<1x512xbf16>
    %204 = vector.broadcast %203 : vector<1x512xbf16> to vector<4x512xbf16>
    %205 = arith.mulf %202, %204 : vector<4x512xbf16>
    %c36_174 = arith.constant 36 : index
    %c0_175 = arith.constant 0 : index
    %206 = vector.load %arg10[%c36_174, %c0_175] : memref<108x512xbf16, #tpu.memory_space<vmem>>, vector<4x512xbf16>
    tpu.vector_store %arg10[%c36_174, %c0_175], %205 {strides = array<i32>} : memref<108x512xbf16, #tpu.memory_space<vmem>>, vector<4x512xbf16>,
    %c0_176 = arith.constant 0 : index
    %c120_177 = arith.constant 120 : index
    %207 = vector.load %arg9[%c0_176, %c120_177] : memref<4x768xbf16, #tpu.memory_space<vmem>>, vector<4x512xbf16>
    %c10_178 = arith.constant 10 : index
    %c0_179 = arith.constant 0 : index
    %208 = vector.load %arg6[%c10_178, %c0_179] : memref<27x512xbf16, #tpu.memory_space<vmem>>, vector<1x512xbf16>
    %209 = vector.broadcast %208 : vector<1x512xbf16> to vector<4x512xbf16>
    %210 = arith.mulf %207, %209 : vector<4x512xbf16>
    %c40_180 = arith.constant 40 : index
    %c0_181 = arith.constant 0 : index
    %211 = vector.load %arg10[%c40_180, %c0_181] : memref<108x512xbf16, #tpu.memory_space<vmem>>, vector<4x512xbf16>
    tpu.vector_store %arg10[%c40_180, %c0_181], %210 {strides = array<i32>} : memref<108x512xbf16, #tpu.memory_space<vmem>>, vector<4x512xbf16>,
    %c0_182 = arith.constant 0 : index
    %c121_183 = arith.constant 121 : index
    %212 = vector.load %arg9[%c0_182, %c121_183] : memref<4x768xbf16, #tpu.memory_space<vmem>>, vector<4x512xbf16>
    %c11_184 = arith.constant 11 : index
    %c0_185 = arith.constant 0 : index
    %213 = vector.load %arg6[%c11_184, %c0_185] : memref<27x512xbf16, #tpu.memory_space<vmem>>, vector<1x512xbf16>
    %214 = vector.broadcast %213 : vector<1x512xbf16> to vector<4x512xbf16>
    %215 = arith.mulf %212, %214 : vector<4x512xbf16>
    %c44_186 = arith.constant 44 : index
    %c0_187 = arith.constant 0 : index
    %216 = vector.load %arg10[%c44_186, %c0_187] : memref<108x512xbf16, #tpu.memory_space<vmem>>, vector<4x512xbf16>
    tpu.vector_store %arg10[%c44_186, %c0_187], %215 {strides = array<i32>} : memref<108x512xbf16, #tpu.memory_space<vmem>>, vector<4x512xbf16>,
    %c0_188 = arith.constant 0 : index
    %c127_189 = arith.constant 127 : index
    %217 = vector.load %arg9[%c0_188, %c127_189] : memref<4x768xbf16, #tpu.memory_space<vmem>>, vector<4x512xbf16>
    %c12_190 = arith.constant 12 : index
    %c0_191 = arith.constant 0 : index
    %218 = vector.load %arg6[%c12_190, %c0_191] : memref<27x512xbf16, #tpu.memory_space<vmem>>, vector<1x512xbf16>
    %219 = vector.broadcast %218 : vector<1x512xbf16> to vector<4x512xbf16>
    %220 = arith.mulf %217, %219 : vector<4x512xbf16>
    %c48_192 = arith.constant 48 : index
    %c0_193 = arith.constant 0 : index
    %221 = vector.load %arg10[%c48_192, %c0_193] : memref<108x512xbf16, #tpu.memory_space<vmem>>, vector<4x512xbf16>
    tpu.vector_store %arg10[%c48_192, %c0_193], %220 {strides = array<i32>} : memref<108x512xbf16, #tpu.memory_space<vmem>>, vector<4x512xbf16>,
    %c0_194 = arith.constant 0 : index
    %c128_195 = arith.constant 128 : index
    %222 = vector.load %arg9[%c0_194, %c128_195] : memref<4x768xbf16, #tpu.memory_space<vmem>>, vector<4x512xbf16>
    %c13_196 = arith.constant 13 : index
    %c0_197 = arith.constant 0 : index
    %223 = vector.load %arg6[%c13_196, %c0_197] : memref<27x512xbf16, #tpu.memory_space<vmem>>, vector<1x512xbf16>
    %224 = vector.broadcast %223 : vector<1x512xbf16> to vector<4x512xbf16>
    %225 = arith.mulf %222, %224 : vector<4x512xbf16>
    %c52_198 = arith.constant 52 : index
    %c0_199 = arith.constant 0 : index
    %226 = vector.load %arg10[%c52_198, %c0_199] : memref<108x512xbf16, #tpu.memory_space<vmem>>, vector<4x512xbf16>
    tpu.vector_store %arg10[%c52_198, %c0_199], %225 {strides = array<i32>} : memref<108x512xbf16, #tpu.memory_space<vmem>>, vector<4x512xbf16>,
    %c0_200 = arith.constant 0 : index
    %c129_201 = arith.constant 129 : index
    %227 = vector.load %arg9[%c0_200, %c129_201] : memref<4x768xbf16, #tpu.memory_space<vmem>>, vector<4x512xbf16>
    %c14_202 = arith.constant 14 : index
    %c0_203 = arith.constant 0 : index
    %228 = vector.load %arg6[%c14_202, %c0_203] : memref<27x512xbf16, #tpu.memory_space<vmem>>, vector<1x512xbf16>
    %229 = vector.broadcast %228 : vector<1x512xbf16> to vector<4x512xbf16>
    %230 = arith.mulf %227, %229 : vector<4x512xbf16>
    %c56_204 = arith.constant 56 : index
    %c0_205 = arith.constant 0 : index
    %231 = vector.load %arg10[%c56_204, %c0_205] : memref<108x512xbf16, #tpu.memory_space<vmem>>, vector<4x512xbf16>
    tpu.vector_store %arg10[%c56_204, %c0_205], %230 {strides = array<i32>} : memref<108x512xbf16, #tpu.memory_space<vmem>>, vector<4x512xbf16>,
    %c0_206 = arith.constant 0 : index
    %c135_207 = arith.constant 135 : index
    %232 = vector.load %arg9[%c0_206, %c135_207] : memref<4x768xbf16, #tpu.memory_space<vmem>>, vector<4x512xbf16>
    %c15_208 = arith.constant 15 : index
    %c0_209 = arith.constant 0 : index
    %233 = vector.load %arg6[%c15_208, %c0_209] : memref<27x512xbf16, #tpu.memory_space<vmem>>, vector<1x512xbf16>
    %234 = vector.broadcast %233 : vector<1x512xbf16> to vector<4x512xbf16>
    %235 = arith.mulf %232, %234 : vector<4x512xbf16>
    %c60_210 = arith.constant 60 : index
    %c0_211 = arith.constant 0 : index
    %236 = vector.load %arg10[%c60_210, %c0_211] : memref<108x512xbf16, #tpu.memory_space<vmem>>, vector<4x512xbf16>
    tpu.vector_store %arg10[%c60_210, %c0_211], %235 {strides = array<i32>} : memref<108x512xbf16, #tpu.memory_space<vmem>>, vector<4x512xbf16>,
    %c0_212 = arith.constant 0 : index
    %c136_213 = arith.constant 136 : index
    %237 = vector.load %arg9[%c0_212, %c136_213] : memref<4x768xbf16, #tpu.memory_space<vmem>>, vector<4x512xbf16>
    %c16_214 = arith.constant 16 : index
    %c0_215 = arith.constant 0 : index
    %238 = vector.load %arg6[%c16_214, %c0_215] : memref<27x512xbf16, #tpu.memory_space<vmem>>, vector<1x512xbf16>
    %239 = vector.broadcast %238 : vector<1x512xbf16> to vector<4x512xbf16>
    %240 = arith.mulf %237, %239 : vector<4x512xbf16>
    %c64_216 = arith.constant 64 : index
    %c0_217 = arith.constant 0 : index
    %241 = vector.load %arg10[%c64_216, %c0_217] : memref<108x512xbf16, #tpu.memory_space<vmem>>, vector<4x512xbf16>
    tpu.vector_store %arg10[%c64_216, %c0_217], %240 {strides = array<i32>} : memref<108x512xbf16, #tpu.memory_space<vmem>>, vector<4x512xbf16>,
    %c0_218 = arith.constant 0 : index
    %c137_219 = arith.constant 137 : index
    %242 = vector.load %arg9[%c0_218, %c137_219] : memref<4x768xbf16, #tpu.memory_space<vmem>>, vector<4x512xbf16>
    %c17_220 = arith.constant 17 : index
    %c0_221 = arith.constant 0 : index
    %243 = vector.load %arg6[%c17_220, %c0_221] : memref<27x512xbf16, #tpu.memory_space<vmem>>, vector<1x512xbf16>
    %244 = vector.broadcast %243 : vector<1x512xbf16> to vector<4x512xbf16>
    %245 = arith.mulf %242, %244 : vector<4x512xbf16>
    %c68_222 = arith.constant 68 : index
    %c0_223 = arith.constant 0 : index
    %246 = vector.load %arg10[%c68_222, %c0_223] : memref<108x512xbf16, #tpu.memory_space<vmem>>, vector<4x512xbf16>
    tpu.vector_store %arg10[%c68_222, %c0_223], %245 {strides = array<i32>} : memref<108x512xbf16, #tpu.memory_space<vmem>>, vector<4x512xbf16>,
    %c0_224 = arith.constant 0 : index
    %c183_225 = arith.constant 183 : index
    %247 = vector.load %arg9[%c0_224, %c183_225] : memref<4x768xbf16, #tpu.memory_space<vmem>>, vector<4x512xbf16>
    %c18_226 = arith.constant 18 : index
    %c0_227 = arith.constant 0 : index
    %248 = vector.load %arg6[%c18_226, %c0_227] : memref<27x512xbf16, #tpu.memory_space<vmem>>, vector<1x512xbf16>
    %249 = vector.broadcast %248 : vector<1x512xbf16> to vector<4x512xbf16>
    %250 = arith.mulf %247, %249 : vector<4x512xbf16>
    %c72_228 = arith.constant 72 : index
    %c0_229 = arith.constant 0 : index
    %251 = vector.load %arg10[%c72_228, %c0_229] : memref<108x512xbf16, #tpu.memory_space<vmem>>, vector<4x512xbf16>
    tpu.vector_store %arg10[%c72_228, %c0_229], %250 {strides = array<i32>} : memref<108x512xbf16, #tpu.memory_space<vmem>>, vector<4x512xbf16>,
    %c0_230 = arith.constant 0 : index
    %c184_231 = arith.constant 184 : index
    %252 = vector.load %arg9[%c0_230, %c184_231] : memref<4x768xbf16, #tpu.memory_space<vmem>>, vector<4x512xbf16>
    %c19_232 = arith.constant 19 : index
    %c0_233 = arith.constant 0 : index
    %253 = vector.load %arg6[%c19_232, %c0_233] : memref<27x512xbf16, #tpu.memory_space<vmem>>, vector<1x512xbf16>
    %254 = vector.broadcast %253 : vector<1x512xbf16> to vector<4x512xbf16>
    %255 = arith.mulf %252, %254 : vector<4x512xbf16>
    %c76_234 = arith.constant 76 : index
    %c0_235 = arith.constant 0 : index
    %256 = vector.load %arg10[%c76_234, %c0_235] : memref<108x512xbf16, #tpu.memory_space<vmem>>, vector<4x512xbf16>
    tpu.vector_store %arg10[%c76_234, %c0_235], %255 {strides = array<i32>} : memref<108x512xbf16, #tpu.memory_space<vmem>>, vector<4x512xbf16>,
    %c0_236 = arith.constant 0 : index
    %c185_237 = arith.constant 185 : index
    %257 = vector.load %arg9[%c0_236, %c185_237] : memref<4x768xbf16, #tpu.memory_space<vmem>>, vector<4x512xbf16>
    %c20_238 = arith.constant 20 : index
    %c0_239 = arith.constant 0 : index
    %258 = vector.load %arg6[%c20_238, %c0_239] : memref<27x512xbf16, #tpu.memory_space<vmem>>, vector<1x512xbf16>
    %259 = vector.broadcast %258 : vector<1x512xbf16> to vector<4x512xbf16>
    %260 = arith.mulf %257, %259 : vector<4x512xbf16>
    %c80_240 = arith.constant 80 : index
    %c0_241 = arith.constant 0 : index
    %261 = vector.load %arg10[%c80_240, %c0_241] : memref<108x512xbf16, #tpu.memory_space<vmem>>, vector<4x512xbf16>
    tpu.vector_store %arg10[%c80_240, %c0_241], %260 {strides = array<i32>} : memref<108x512xbf16, #tpu.memory_space<vmem>>, vector<4x512xbf16>,
    %c0_242 = arith.constant 0 : index
    %c191_243 = arith.constant 191 : index
    %262 = vector.load %arg9[%c0_242, %c191_243] : memref<4x768xbf16, #tpu.memory_space<vmem>>, vector<4x512xbf16>
    %c21_244 = arith.constant 21 : index
    %c0_245 = arith.constant 0 : index
    %263 = vector.load %arg6[%c21_244, %c0_245] : memref<27x512xbf16, #tpu.memory_space<vmem>>, vector<1x512xbf16>
    %264 = vector.broadcast %263 : vector<1x512xbf16> to vector<4x512xbf16>
    %265 = arith.mulf %262, %264 : vector<4x512xbf16>
    %c84_246 = arith.constant 84 : index
    %c0_247 = arith.constant 0 : index
    %266 = vector.load %arg10[%c84_246, %c0_247] : memref<108x512xbf16, #tpu.memory_space<vmem>>, vector<4x512xbf16>
    tpu.vector_store %arg10[%c84_246, %c0_247], %265 {strides = array<i32>} : memref<108x512xbf16, #tpu.memory_space<vmem>>, vector<4x512xbf16>,
    %c0_248 = arith.constant 0 : index
    %c192_249 = arith.constant 192 : index
    %267 = vector.load %arg9[%c0_248, %c192_249] : memref<4x768xbf16, #tpu.memory_space<vmem>>, vector<4x512xbf16>
    %c22_250 = arith.constant 22 : index
    %c0_251 = arith.constant 0 : index
    %268 = vector.load %arg6[%c22_250, %c0_251] : memref<27x512xbf16, #tpu.memory_space<vmem>>, vector<1x512xbf16>
    %269 = vector.broadcast %268 : vector<1x512xbf16> to vector<4x512xbf16>
    %270 = arith.mulf %267, %269 : vector<4x512xbf16>
    %c88_252 = arith.constant 88 : index
    %c0_253 = arith.constant 0 : index
    %271 = vector.load %arg10[%c88_252, %c0_253] : memref<108x512xbf16, #tpu.memory_space<vmem>>, vector<4x512xbf16>
    tpu.vector_store %arg10[%c88_252, %c0_253], %270 {strides = array<i32>} : memref<108x512xbf16, #tpu.memory_space<vmem>>, vector<4x512xbf16>,
    %c0_254 = arith.constant 0 : index
    %c193_255 = arith.constant 193 : index
    %272 = vector.load %arg9[%c0_254, %c193_255] : memref<4x768xbf16, #tpu.memory_space<vmem>>, vector<4x512xbf16>
    %c23_256 = arith.constant 23 : index
    %c0_257 = arith.constant 0 : index
    %273 = vector.load %arg6[%c23_256, %c0_257] : memref<27x512xbf16, #tpu.memory_space<vmem>>, vector<1x512xbf16>
    %274 = vector.broadcast %273 : vector<1x512xbf16> to vector<4x512xbf16>
    %275 = arith.mulf %272, %274 : vector<4x512xbf16>
    %c92_258 = arith.constant 92 : index
    %c0_259 = arith.constant 0 : index
    %276 = vector.load %arg10[%c92_258, %c0_259] : memref<108x512xbf16, #tpu.memory_space<vmem>>, vector<4x512xbf16>
    tpu.vector_store %arg10[%c92_258, %c0_259], %275 {strides = array<i32>} : memref<108x512xbf16, #tpu.memory_space<vmem>>, vector<4x512xbf16>,
    %c0_260 = arith.constant 0 : index
    %c199_261 = arith.constant 199 : index
    %277 = vector.load %arg9[%c0_260, %c199_261] : memref<4x768xbf16, #tpu.memory_space<vmem>>, vector<4x512xbf16>
    %c24_262 = arith.constant 24 : index
    %c0_263 = arith.constant 0 : index
    %278 = vector.load %arg6[%c24_262, %c0_263] : memref<27x512xbf16, #tpu.memory_space<vmem>>, vector<1x512xbf16>
    %279 = vector.broadcast %278 : vector<1x512xbf16> to vector<4x512xbf16>
    %280 = arith.mulf %277, %279 : vector<4x512xbf16>
    %c96_264 = arith.constant 96 : index
    %c0_265 = arith.constant 0 : index
    %281 = vector.load %arg10[%c96_264, %c0_265] : memref<108x512xbf16, #tpu.memory_space<vmem>>, vector<4x512xbf16>
    tpu.vector_store %arg10[%c96_264, %c0_265], %280 {strides = array<i32>} : memref<108x512xbf16, #tpu.memory_space<vmem>>, vector<4x512xbf16>,
    %c0_266 = arith.constant 0 : index
    %c200_267 = arith.constant 200 : index
    %282 = vector.load %arg9[%c0_266, %c200_267] : memref<4x768xbf16, #tpu.memory_space<vmem>>, vector<4x512xbf16>
    %c25_268 = arith.constant 25 : index
    %c0_269 = arith.constant 0 : index
    %283 = vector.load %arg6[%c25_268, %c0_269] : memref<27x512xbf16, #tpu.memory_space<vmem>>, vector<1x512xbf16>
    %284 = vector.broadcast %283 : vector<1x512xbf16> to vector<4x512xbf16>
    %285 = arith.mulf %282, %284 : vector<4x512xbf16>
    %c100_270 = arith.constant 100 : index
    %c0_271 = arith.constant 0 : index
    %286 = vector.load %arg10[%c100_270, %c0_271] : memref<108x512xbf16, #tpu.memory_space<vmem>>, vector<4x512xbf16>
    tpu.vector_store %arg10[%c100_270, %c0_271], %285 {strides = array<i32>} : memref<108x512xbf16, #tpu.memory_space<vmem>>, vector<4x512xbf16>,
    %c0_272 = arith.constant 0 : index
    %c201_273 = arith.constant 201 : index
    %287 = vector.load %arg9[%c0_272, %c201_273] : memref<4x768xbf16, #tpu.memory_space<vmem>>, vector<4x512xbf16>
    %c26_274 = arith.constant 26 : index
    %c0_275 = arith.constant 0 : index
    %288 = vector.load %arg6[%c26_274, %c0_275] : memref<27x512xbf16, #tpu.memory_space<vmem>>, vector<1x512xbf16>
    %289 = vector.broadcast %288 : vector<1x512xbf16> to vector<4x512xbf16>
    %290 = arith.mulf %287, %289 : vector<4x512xbf16>
    %c104_276 = arith.constant 104 : index
    %c0_277 = arith.constant 0 : index
    %291 = vector.load %arg10[%c104_276, %c0_277] : memref<108x512xbf16, #tpu.memory_space<vmem>>, vector<4x512xbf16>
    tpu.vector_store %arg10[%c104_276, %c0_277], %290 {strides = array<i32>} : memref<108x512xbf16, #tpu.memory_space<vmem>>, vector<4x512xbf16>,
    %c0_278 = arith.constant 0 : index
    %c0_279 = arith.constant 0 : index
    %292 = vector.load %arg4[%c0_278, %c0_279] : memref<4x108xbf16, #tpu.memory_space<vmem>>, vector<4x108xbf16>
    %c0_280 = arith.constant 0 : index
    %c0_281 = arith.constant 0 : index
    %293 = vector.load %arg10[%c0_280, %c0_281] : memref<108x512xbf16, #tpu.memory_space<vmem>>, vector<108x512xbf16>
    %cst_282 = arith.constant dense<0.000000e+00> : vector<4x512xf32>
    %294 = tpu.matmul %292, %293, %cst_282 {dimension_numbers = #tpu.dot_dimension_numbers<[1], [0], [0], [1], [0, 0, 1, 1], [], []>} : vector<4x108xbf16>, vector<108x512xbf16>, vector<4x512xf32> -> vector<4x512xf32>
    %c0_283 = arith.constant 0 : index
    %c0_284 = arith.constant 0 : index
    %295 = vector.load %arg5[%c0_283, %c0_284] : memref<4x1xf32, #tpu.memory_space<vmem>>, vector<4x1xf32>
    %296 = vector.broadcast %295 : vector<4x1xf32> to vector<4x512xf32>
    %297 = arith.addf %294, %296 : vector<4x512xf32>
    %c0_285 = arith.constant 0 : index
    %c0_286 = arith.constant 0 : index
    %c0_287 = arith.constant 0 : index
    %298 = vector.load %arg1[%c0_285, %c0_286, %c0_287] : memref<1x4x512xf32, #tpu.memory_space<vmem>>, vector<1x4x512xf32>
    %299 = vector.shape_cast %298 : vector<1x4x512xf32> to vector<4x512xf32>
    %300 = arith.addf %297, %299 : vector<4x512xf32>
    %cst_288 = arith.constant 0.000000e+00 : f32
    %301 = vector.broadcast %cst_288 : f32 to vector<4x512xf32>
    %302 = arith.maximumf %300, %301 : vector<4x512xf32>
    %c0_289 = arith.constant 0 : index
    %c0_290 = arith.constant 0 : index
    %c0_291 = arith.constant 0 : index
    %303 = vector.load %arg7[%c0_289, %c0_290, %c0_291] : memref<1x4x512xf32, #tpu.memory_space<vmem>>, vector<1x4x512xf32>
    %304 = vector.shape_cast %303 : vector<1x4x512xf32> to vector<4x512xf32>
    %305 = vector.shape_cast %302 : vector<4x512xf32> to vector<1x4x512xf32>
    tpu.vector_store %arg7[%c0_289, %c0_290, %c0_291], %305 {strides = array<i32>} : memref<1x4x512xf32, #tpu.memory_space<vmem>>, vector<1x4x512xf32>,
    return
  }
  func.func @transform_0(%arg0: i32) -> (i32, i32, i32) {
    %c0_i32 = arith.constant 0 : i32
    %c0_i32_0 = arith.constant 0 : i32
    %c0_i32_1 = arith.constant 0 : i32
    return %arg0, %c0_i32, %c0_i32_0 : i32, i32, i32
  }
  func.func @transform_1(%arg0: i32) -> (i32, i32) {
    %c0_i32 = arith.constant 0 : i32
    %c0_i32_0 = arith.constant 0 : i32
    %c0_i32_1 = arith.constant 0 : i32
    return %c0_i32, %c0_i32_0 : i32, i32
  }
  func.func @transform_2(%arg0: i32) -> (i32, i32) {
    %c0_i32 = arith.constant 0 : i32
    %c0_i32_0 = arith.constant 0 : i32
    %c0_i32_1 = arith.constant 0 : i32
    return %c0_i32, %c0_i32_0 : i32, i32
  }
  func.func @transform_3(%arg0: i32) -> (i32, i32) {
    %c0_i32 = arith.constant 0 : i32
    %c0_i32_0 = arith.constant 0 : i32
    %c0_i32_1 = arith.constant 0 : i32
    return %c0_i32, %c0_i32_0 : i32, i32
  }
  func.func @transform_4(%arg0: i32) -> (i32, i32) {
    %c0_i32 = arith.constant 0 : i32
    %c0_i32_0 = arith.constant 0 : i32
    %c0_i32_1 = arith.constant 0 : i32
    return %c0_i32, %c0_i32_0 : i32, i32
  }
  func.func @transform_5(%arg0: i32) -> (i32, i32) {
    %c0_i32 = arith.constant 0 : i32
    %c0_i32_0 = arith.constant 0 : i32
    %c0_i32_1 = arith.constant 0 : i32
    return %c0_i32, %c0_i32_0 : i32, i32
  }
  func.func @transform_6(%arg0: i32) -> (i32, i32, i32) {
    %c0_i32 = arith.constant 0 : i32
    %c0_i32_0 = arith.constant 0 : i32
    %c0_i32_1 = arith.constant 0 : i32
    return %arg0, %c0_i32, %c0_i32_0 : i32, i32, i32
  }
}

</mosaic_0001>

<bundles_post_ra>
// kernel: tpu_custom_call.1
= control target key start
LH: loop header
LB: loop body
LE: loop exit
PB: predicated region body
PF: predicated region fallthrough
CT: control target
= control target key end

     0   :  { %s10001_s0 = inlined_call_operand.hbm [shape: f32[2,4,512], index: 0, kind: input, shape index: {}]   ;;  %s10002_s1 = inlined_call_operand.vmem [shape: bf16[4,108], index: 1, kind: input, shape index: {}]   ;;  %s10003_s2 = inlined_call_operand.vmem [shape: f32[4,1], index: 2, kind: input, shape index: {}]   ;;  %s10004_s3 = inlined_call_operand.vmem [shape: bf16[4,108], index: 3, kind: input, shape index: {}]   ;;  %s10005_s4 = inlined_call_operand.vmem [shape: f32[4,1], index: 4, kind: input, shape index: {}]   ;;  %s10006_s5 = inlined_call_operand.hbm [shape: bf16[27,512], index: 5, kind: input, shape index: {}]   ;;  %s10007_s6 = inlined_call_operand.hbm [shape: f32[2,4,512], index: 6, kind: output, shape index: {}]  }
   0x1   :  { %10053 = sst [smem:[#allocation14_spill]] %s10001_s0 }
   0x2   :  { %10054 = sst [smem:[#allocation15_spill]] %s10002_s1 }
   0x3   :  { %10055 = sst [smem:[#allocation16_spill]] %s10003_s2 }
   0x4   :  { %10056 = sst [smem:[#allocation17_spill]] %s10006_s5 }
   0x5   :  { %11 = vsyncpa [#allocation6], 0 }
   0x6   :  { %13 = vsyncpa [#allocation6 + $0x1], 0 }
   0x7   :  { %14 = vsyncpa [#allocation9], 0 }
   0x8   :  { %15 = vsyncpa [#allocation7], 0 }
   0x9   :  { %17 = vsyncpa [#allocation7 + $0x1], 0  ;;  %s8029_s21 = smov 0   ;;  %s8031_s22 = smov 0  }
   0xa   :  { %s8033_s23 = smov 0   ;;  %s8035_s24 = smov 0  }
   0xb LB: > { %s8050_s25 = sadd.s32 4294967295, %s7968_s24   ;;  %s7151_s26 = sadd.s32 4294967294, %s7968_s24   ;;  %s7968_s24 = sphi %s8035_s24, %s10117_s24   ;;  %s7964_s23 = sphi %s8033_s23, %s10116_s23   ;;  %s7960_s22 = sphi %s8031_s22, %s10115_s22   ;;  %s7956_s21 = sphi %s8029_s21, %s10114_s21  }
   0xc   : > { %p43_p0 = scmp.ne.s32.totalorder %s7960_s22, %s7956_s21  ;;  %p10008_p1 = scmp.eq.s32.totalorder %s8050_s25, 0 }
   0xd   : > { %p178_p3 = scmp.eq.s32.totalorder %s7151_s26, 1  ;;  %p7152_p5 = scmp.ge.s32.totalorder %s7968_s24, 1 }
   0xe   : > { %p8059_p4 = por %p10008_p1, %p43_p0  ;;  %p185_p7 = scmp.lt.s32.totalorder %s7968_s24, 3 }
   0xf   : > { %p8064_p6 = por %p178_p3, %p43_p0  ;;  %s7970_s30 = smov [#allocation8]  }
  0x10   : > { %s10057_s27 = scalar_select %p8059_p4, 1, 0 }
  0x11   : > { %s10058_s28 = scalar_select %p8064_p6, 1, 0 }
  0x12   : > { %p8069_p8 = pnand %p7152_p5, %p185_p7  ;;  %s209_s7 = sshll.u32 %s7970_s30, 4  ;;  %s8073_s7 = int_to_ptr.vmem [resolvable:$true] %s209_s7 }
  0x13   : > { %s8085_s9 = sadd.s32 1, %s7968_s24   ;;  %s30_s10 = sadd.s32 1, %s7964_s23 }
  0x14   : > { %s10059_s29 = scalar_select %p8069_p8, 1, 0 }
  0x15   : > { %p7465_p9 = pneg %p8069_p8  ;;  %s27_s11 = ssub.s32 %s7968_s24, %s8085_s9 }
  0x16   : > { %s10061_s5 = sld [smem:[#allocation17_spill]] }
  0x17   : > { %p8080_p11 = pnand %p7465_p9, %p10008_p1 }
  0x19   : > { %p7842_p13 = pneg %p8080_p11 }
  0x1c   : > { %s7840_s14 = scalar_lea.hbm %s10061_s5, 1024 }
  0x1d   : > { %p7841_p12 = scmp.ne.s32.totalorder %s10061_s5, %s7840_s14  ;;  %p7847_p5 = scmp.lt.u32.totalorder %s7840_s14, %s10061_s5 }
  0x1f   : > { %p7843_p0 = pnand %p7842_p13, %p7841_p12 }
  0x21   : > { %p7844_p3 = pneg %p7843_p0 }
  0x23   : > { %p7849_p7 = pnand %p7847_p5, %p7844_p3 }
  0x25   : > { %7852 = shalt.err (!%p7849_p7)
}
  0x26   : > { %s7853_s19 = scalar_lea.vmem %s8073_s7, 1024  ;;  %p7861_p2 = scmp.lt.s32.totalorder %s8073_s7, %s8073_s7 }
  0x27   : > { %p7854_p9 = scmp.ne.s32.totalorder %s8073_s7, %s7853_s19  ;;  %p7862_p6 = scmp.lt.s32.totalorder %s7853_s19, %s7853_s19 }
  0x29   : > { %p7856_p10 = pnand %p7854_p9, %p7842_p13  ;;  %p7863_p4 = por %p7862_p6, %p7861_p2 }
  0x2b   : > { %p7857_p1 = pneg %p7856_p10 }
  0x2d   : > { %p7864_p8 = pnand %p7863_p4, %p7857_p1 }
  0x2f   : > { %7867 = shalt.err (!%p7864_p8)
}
  0x30   : > { %s7971_s20 = smov 256   ;;  %s7972_s26 = smov 16  }
  0x31   : > { %7468 = dma.hbm_to_vmem [thread:$0]  (!%p8080_p11), %s10061_s5, 1024, %s8073_s7, [#allocation9], %s7971_s20, %s7971_s20, %s7972_s26  }
  0x32   : > { %p28_p2 = scmp.eq.s32.totalorder %s27_s11, 0  ;;  %p37_p1 = scmp.ne.s32.totalorder %s7964_s23, %s7960_s22 }
  0x33   : > { %p38_p4 = scmp.eq.s32.totalorder %s7968_s24, 0  ;;  %p7478_p6 = scmp.lt.s32.totalorder %s7968_s24, 2 }
  0x34   : > { %s8116_s13 = scalar_select %p28_p2, %s7964_s23, %s30_s10  }
  0x35   : > { %p39_p8 = por %p38_p4, %p37_p1  ;;  %p10062_p10 = scmp.eq.s32.totalorder %s8050_s25, 1 }
  0x36   : > { %s223_s15 = sand.u32 1, %s7964_s23   ;;  %s7455_s16 = sshll.u32 %s7968_s24, 8 }
  0x37   : > { %p8120_p12 = por %p10062_p10, %p37_p1  ;;  %s7155_s17 = sshll.u32 %s223_s15, 4 }
  0x38   : > { %s10064_s0 = sld [smem:[#allocation14_spill]]  ;;  %s227_s7 = scalar_lea.vmem [#allocation5], %s7155_s17 }
  0x39   : > { %s235_s10 = sshll.u32 %s227_s7, 4  ;;  %p8131_p11 = pnand %p7478_p6, %p39_p8  ;;  %s8135_s10 = int_to_ptr.vmem [resolvable:$true] %s235_s10 }
  0x3a   : > { %s224_s20 = scalar_lea.sflag [#allocation6], %s223_s15 }
  0x3b   : > { %p7870_p0 = pneg %p8131_p11 }
  0x3e   : > { %s8129_s19 = scalar_lea.hbm %s10064_s0, %s7455_s16  ;;  %s7873_s16 = scalar_lea.hbm %s10064_s0, 512 }
  0x3f   : > { %s7868_s26 = scalar_lea.hbm %s8129_s19, 256  ;;  %p7874_p7 = scmp.lt.u32.totalorder %s8129_s19, %s10064_s0 }
  0x40   : > { %p7869_p13 = scmp.ne.s32.totalorder %s8129_s19, %s7868_s26  ;;  %p7875_p9 = scmp.lt.u32.totalorder %s7873_s16, %s7868_s26 }
  0x41   : > { %p7877_p1 = scmp.lt.u32.totalorder %s7868_s26, %s8129_s19 }
  0x42   : > { %p7871_p3 = pnand %p7870_p0, %p7869_p13  ;;  %p7876_p2 = por %p7875_p9, %p7874_p7 }
  0x44   : > { %p7872_p5 = pneg %p7871_p3  ;;  %p7878_p4 = por %p7877_p1, %p7876_p2 }
  0x46   : > { %p7879_p6 = pnand %p7878_p4, %p7872_p5 }
  0x48   : > { %7882 = shalt.err (!%p7879_p6)
}
  0x49   : > { %s7883_s15 = scalar_lea.vmem %s8135_s10, 256  ;;  %s7973_s18 = smov [#allocation5]  }
  0x4a   : > { %p7884_p8 = scmp.ne.s32.totalorder %s8135_s10, %s7883_s15  ;;  %s7888_s7 = sshll.u32 %s7973_s18, 4  ;;  %s7889_s7 = int_to_ptr.vmem [resolvable:$false] %s7888_s7 }
  0x4b   : > { %s7890_s30 = scalar_lea.vmem %s7889_s7, 512  ;;  %p7891_p3 = scmp.lt.s32.totalorder %s8135_s10, %s7889_s7 }
  0x4c   : > { %p7886_p10 = pnand %p7884_p8, %p7870_p0  ;;  %p7892_p7 = scmp.lt.s32.totalorder %s7890_s30, %s7883_s15 }
  0x4e   : > { %p7887_p13 = pneg %p7886_p10  ;;  %p7893_p9 = por %p7892_p7, %p7891_p3 }
  0x50   : > { %p7894_p2 = pnand %p7893_p9, %p7887_p13 }
  0x52   : > { %7897 = shalt.err (!%p7894_p2)
}
  0x53   : > { %7472 = dma.hbm_to_vmem [thread:$0]  (!%p8131_p11), %s8129_s19, 256, %s8135_s10, %s224_s20  }
  0x54   : > { %p10066_p5 = scmp.ne.s32.totalorder %s10059_s29, 0 }
  0x55   : > { %s8165_s26 = sand.u32 (!%p10066_p5), 1, %s7960_s22   ;;  %p10067_p0 = scmp.ne.s32.totalorder (!%p10066_p5), %s10057_s27, 0 }
  0x56   : > { %244 = sbr.rel (%p10066_p5) target bundleno = 1319 (0x527), region = 44  ;;  %s10011_s12 = sshll.u32 (!%p10066_p5), %s8165_s26, 4 }
  0x57   : > { %s247_s16 = scalar_lea.sflag (!%p10066_p5), [#allocation6], %s8165_s26  ;;  %s8171_s17 = scalar_lea.vmem (!%p10066_p5), [#allocation5], %s10011_s12 }
  0x5d   : > { %7943 = dma.done.wait (%p10067_p0), %s247_s16, 256  }
  0x5e   : > { %7945 = vsyncadd (%p10067_p0), %s247_s16, 4294967040  ;;  %p10068_p11 = scmp.eq.s32.totalorder %s8050_s25, 0 }
  0x60   : > { %7947 = dma.done.wait (%p10068_p11), [#allocation9], 1024   ;;  %p10069_p1 = pmov %p10068_p11 }
  0x61   : > { %v309_v0 = vlaneseq  ;;  %v7974_v1 = vmov 1983009808   ;;  %v7975_v4 = vmov 0   ;;  %v559_v11 = vld [vmem:[#allocation8] sm:$0x22]  ;;  %s10046_s27 = smov 57  }
  0x62   : > { %7949 = vsyncadd (%p10069_p1), [#allocation9], 4294966272  ;;  %v307_v2 = vunpack.c.l.s4 %v7974_v1  ;;  %284 = vst [vmem:[#allocation2] sm:$0x3] %v7975_v4  ;;  %3621 = vmatprep.mubr.bf16.mxu0 %v7975_v4  ;;  %3662 = vmatprep.mubr.bf16.mxu1 %v7975_v4  ;;  %v560_v12 = vld [vmem:[#allocation8 + $0x8] sm:$0x22]  ;;  %v7172_v14 = vcombine.low %v559_v11, %v559_v11  ;;  %v7173_v15 = vcombine.high %v559_v11, %v559_v11 }
  0x63   : > { %v310_v3 = vshrl.u32 %v309_v0, 7  ;;  %285 = vst [vmem:[#allocation2 + $0xa] sm:$0x3] %v7975_v4  ;;  %286 = vst [vmem:[#allocation3] sm:$0x3] %v7975_v4  ;;  %7535 = vset.pattern.permute.xlu0 %v7975_v4  ;;  %v7174_v16 = vcombine.low %v560_v12, %v560_v12  ;;  %v7175_v17 = vcombine.high %v560_v12, %v560_v12  ;;  %s10026_s29 = smov 55  }
  0x64   : > { %287 = vst [vmem:[#allocation3 + $0xa] sm:$0x3] %v7975_v4  ;;  %v308_v5 = vunpack.c.0.s8 %v307_v2  ;;  %v325_v13 = vld [vmem:[#allocation8] sm:$0x11]  ;;  %v326_v18 = vld [vmem:[#allocation8 + $0x8] sm:$0x11]  ;;  %v572_v23 = vpack.i.b16 %v7172_v14, %v7172_v14  ;;  %v579_v24 = vpack.i.b16 %v7173_v15, %v7173_v15 }
  0x65   : > { %v8188_v6 = vsub.s32 0, %v310_v3  ;;  %v8190_v7 = vsub.s32 1, %v310_v3  ;;  %v8192_v8 = vsub.s32 2, %v310_v3  ;;  %v8194_v9 = vsub.s32 3, %v310_v3  ;;  %v673_v31 = vld [vmem:[#allocation8] sm:$0x22] }
  0x66   : > { %v8196_v10 = vsub.s32 %v308_v5, %v310_v3  ;;  %v7164_v19 = vcombine.low %v325_v13, %v325_v13  ;;  %v7165_v20 = vcombine.high %v325_v13, %v325_v13  ;;  %v7166_v21 = vcombine.low %v326_v18, %v326_v18  ;;  %v674_v36 = vld [vmem:[#allocation8 + $0x8] sm:$0x22]  ;;  %v792_v49 = vld [vmem:[#allocation8] sm:$0x44]  ;;  %v793_v58 = vld [vmem:[#allocation8 + $0x8] sm:$0x44] }
  0x67   : > { %v7167_v22 = vcombine.high %v326_v18, %v326_v18  ;;  %v586_v25 = vpack.i.b16 %v7174_v16, %v7174_v16  ;;  %v593_v26 = vpack.i.b16 %v7175_v17, %v7175_v17  ;;  %v577_v32 = vrot.slane %v572_v23, %v8190_v7  ;;  %v905_v3 = vld [vmem:[#allocation8] sm:$0x44]  ;;  %v906_v18 = vld [vmem:[#allocation8 + $0x8] sm:$0x44]  ;;  %s10044_s19 = smov 63   ;;  %s10042_s10 = smov 64  }
  0x68   : > { %v338_v27 = vpack.i.b16 %v7164_v19, %v7164_v19  ;;  %v345_v28 = vpack.i.b16 %v7165_v20, %v7165_v20  ;;  %v352_v29 = vpack.i.b16 %v7166_v21, %v7166_v21  ;;  %v584_v33 = vrot.slane %v579_v24, %v8190_v7  ;;  %s10040_s11 = smov 65   ;;  %s10036_s20 = smov 71  }
  0x69   : > { %v359_v30 = vpack.i.b16 %v7167_v22, %v7167_v22  ;;  %v591_v34 = vrot.slane %v586_v25, %v8190_v7  ;;  %v598_v35 = vrot.slane %v593_v26, %v8190_v7  ;;  %v7176_v43 = vcombine.low %v673_v31, %v673_v31  ;;  %s10034_s8 = smov 72   ;;  %s10031_s15 = smov 73  }
  0x6a   : > { %v343_v37 = vrot.slane %v338_v27, %v8188_v6  ;;  %v350_v38 = vrot.slane %v345_v28, %v8188_v6  ;;  %v357_v39 = vrot.slane %v352_v29, %v8188_v6  ;;  %v603_v41 = vcombine.low %v577_v32, %v584_v33  ;;  %v1022_v27 = vld [vmem:[#allocation8] sm:$0x88]  ;;  %s10012_s18 = smov 119   ;;  %s10016_s7 = smov 120  }
  0x6b   : > { %v364_v40 = vrot.slane %v359_v30, %v8188_v6  ;;  %v604_v42 = vcombine.low %v591_v34, %v598_v35  ;;  %v7177_v44 = vcombine.high %v673_v31, %v673_v31  ;;  %v7178_v47 = vcombine.low %v674_v36, %v674_v36  ;;  %s10014_s30 = smov 121   ;;  %s10048_s16 = smov 56  }
  0x6c   : > { %v369_v45 = vcombine.low %v343_v37, %v350_v38  ;;  %v7179_v48 = vcombine.high %v674_v36, %v674_v36  ;;  %v611_v50 = vrot.slane %v603_v41, %v8196_v10  ;;  %v686_v52 = vshrl.u32 %v7176_v43, 16  ;;  %s10024_s12 = smov 1   ;;  %s10076_s2 = sld [smem:[#allocation16_spill]] }
  0x6d   : > { %v370_v46 = vcombine.low %v357_v39, %v364_v40  ;;  %v618_v51 = vrot.slane %v604_v42, %v8196_v10  ;;  %v694_v53 = vshrl.u32 %v7177_v44, 16  ;;  %v702_v56 = vshrl.u32 %v7178_v47, 16  ;;  %v1023_v39 = vld [vmem:[#allocation8 + $0x8] sm:$0x88]  ;;  %s10086_s1 = sld [smem:[#allocation15_spill]]  ;;  %s10087_s0 = smov 56  }
  0x6e   : > { %v377_v54 = vrot.slane %v369_v45, %v8196_v10  ;;  %v710_v57 = vshrl.u32 %v7179_v48, 16  ;;  %v687_v60 = vpack.i.b16 %v686_v52, %v686_v52  ;;  %v7180_v62 = vcombine.low %v792_v49, %v792_v49  ;;  %s10091_s5 = smov 65  }
  0x6f   : > { %v384_v55 = vrot.slane %v370_v46, %v8196_v10  ;;  %v619_v59 = vcombine.low %v611_v50, %v618_v51  ;;  %v695_v61 = vpack.i.b16 %v694_v53, %v694_v53  ;;  %v703_v0 = vpack.i.b16 %v702_v56, %v702_v56  ;;  %v1134_v53 = vld [vmem:[#allocation8] sm:$0x88] }
  0x70   : > { %v711_v1 = vpack.i.b16 %v710_v57, %v710_v57  ;;  %v7181_v2 = vcombine.high %v792_v49, %v792_v49  ;;  %v692_v5 = vrot.slane %v687_v60, %v8190_v7  ;;  %v7182_v12 = vcombine.low %v793_v58, %v793_v58 }
  0x71   : > { %v385_v63 = vcombine.low %v377_v54, %v384_v55  ;;  %620 = vrot.lane.b32.xlu1 %v619_v59, %s10046_s27  ;;  %v700_v11 = vrot.slane %v695_v61, %v8190_v7  ;;  %v7183_v13 = vcombine.high %v793_v58, %v793_v58  ;;  %v708_v14 = vrot.slane %v703_v0, %v8190_v7 }
  0x72   : > { %v716_v15 = vrot.slane %v711_v1, %v8190_v7  ;;  %v805_v16 = vpack.i.b16 %v7180_v62, %v7180_v62  ;;  %v812_v17 = vpack.i.b16 %v7181_v2, %v7181_v2  ;;  %v819_v20 = vpack.i.b16 %v7182_v12, %v7182_v12  ;;  %v1135_v62 = vld [vmem:[#allocation8 + $0x8] sm:$0x88] }
  0x73   : > { %386 = vrot.lane.b32.xlu0 %v385_v63, %s10026_s29  ;;  %v721_v19 = vcombine.low %v692_v5, %v700_v11  ;;  %v826_v21 = vpack.i.b16 %v7183_v13, %v7183_v13  ;;  %v7184_v22 = vcombine.low %v905_v3, %v905_v3  ;;  %v7185_v26 = vcombine.high %v905_v3, %v905_v3  ;;  %v1251_v13 = vld [vmem:[#allocation8 + $0x10] sm:$0x11] }
  0x74   : > { %v722_v23 = vcombine.low %v708_v14, %v716_v15  ;;  %v810_v24 = vrot.slane %v805_v16, %v8192_v8  ;;  %v817_v25 = vrot.slane %v812_v17, %v8192_v8  ;;  %v824_v29 = vrot.slane %v819_v20, %v8192_v8 }
  0x75   : > { %v729_v28 = vrot.slane %v721_v19, %v8196_v10  ;;  %v831_v30 = vrot.slane %v826_v21, %v8192_v8  ;;  %v7186_v31 = vcombine.low %v906_v18, %v906_v18  ;;  %v7187_v34 = vcombine.high %v906_v18, %v906_v18 }
  0x76   : > { %v736_v32 = vrot.slane %v722_v23, %v8196_v10  ;;  %v836_v33 = vcombine.low %v810_v24, %v817_v25  ;;  %v918_v35 = vshrl.u32 %v7184_v22, 16  ;;  %v926_v37 = vshrl.u32 %v7185_v26, 16  ;;  %v1252_v25 = vld [vmem:[#allocation8 + $0x18] sm:$0x11] }
  0x77   : > { %v837_v36 = vcombine.low %v824_v29, %v831_v30  ;;  %v934_v38 = vshrl.u32 %v7186_v31, 16  ;;  %v7188_v40 = vcombine.low %v1022_v27, %v1022_v27  ;;  %v942_v44 = vshrl.u32 %v7187_v34, 16 }
  0x78   : > { %v737_v41 = vcombine.low %v729_v28, %v736_v32  ;;  %v844_v42 = vrot.slane %v836_v33, %v8196_v10  ;;  %v919_v43 = vpack.i.b16 %v918_v35, %v918_v35  ;;  %v927_v46 = vpack.i.b16 %v926_v37, %v926_v37  ;;  %v1363_v35 = vld [vmem:[#allocation8 + $0x10] sm:$0x11] }
  0x79   : > { %v851_v45 = vrot.slane %v837_v36, %v8196_v10  ;;  %v935_v47 = vpack.i.b16 %v934_v38, %v934_v38  ;;  %v7189_v48 = vcombine.high %v1022_v27, %v1022_v27  ;;  %v943_v50 = vpack.i.b16 %v942_v44, %v942_v44  ;;  %v1364_v44 = vld [vmem:[#allocation8 + $0x18] sm:$0x11] }
  0x7a   : > { %738 = vrot.lane.b32.xlu1 %v737_v41, %s10044_s19  ;;  %v924_v49 = vrot.slane %v919_v43, %v8192_v8  ;;  %v7190_v51 = vcombine.low %v1023_v39, %v1023_v39  ;;  %v7191_v52 = vcombine.high %v1023_v39, %v1023_v39  ;;  %v932_v55 = vrot.slane %v927_v46, %v8192_v8 }
  0x7b   : > { %v852_v54 = vcombine.low %v844_v42, %v851_v45  ;;  %v940_v56 = vrot.slane %v935_v47, %v8192_v8  ;;  %v1035_v57 = vpack.i.b16 %v7188_v40, %v7188_v40  ;;  %v948_v58 = vrot.slane %v943_v50, %v8192_v8 }
  0x7c   : > { %v1042_v59 = vpack.i.b16 %v7189_v48, %v7189_v48  ;;  %v1049_v60 = vpack.i.b16 %v7190_v51, %v7190_v51  ;;  %v1056_v61 = vpack.i.b16 %v7191_v52, %v7191_v52  ;;  %v953_v63 = vcombine.low %v924_v49, %v932_v55 }
  0x7d   : > { %853 = vrot.lane.b32.xlu0 %v852_v54, %s10042_s10  ;;  %v1040_v0 = vrot.slane %v1035_v57, %v8194_v9  ;;  %v7192_v1 = vcombine.low %v1134_v53, %v1134_v53  ;;  %v7193_v2 = vcombine.high %v1134_v53, %v1134_v53  ;;  %v954_v3 = vcombine.low %v940_v56, %v948_v58  ;;  %v1482_v53 = vld [vmem:[#allocation8 + $0x10] sm:$0x22] }
  0x7e   : > { %v1047_v5 = vrot.slane %v1042_v59, %v8194_v9  ;;  %v1054_v11 = vrot.slane %v1049_v60, %v8194_v9  ;;  %v1061_v12 = vrot.slane %v1056_v61, %v8194_v9  ;;  %v961_v14 = vrot.slane %v953_v63, %v8196_v10 }
  0x7f   : > { %v7194_v15 = vcombine.low %v1135_v62, %v1135_v62  ;;  %v7195_v16 = vcombine.high %v1135_v62, %v1135_v62  ;;  %v1147_v17 = vshrl.u32 %v7192_v1, 16  ;;  %v968_v18 = vrot.slane %v954_v3, %v8196_v10  ;;  %v1483_v1 = vld [vmem:[#allocation8 + $0x18] sm:$0x22] }
  0x80   : > { %v1066_v19 = vcombine.low %v1040_v0, %v1047_v5  ;;  %v1067_v20 = vcombine.low %v1054_v11, %v1061_v12  ;;  %v1155_v21 = vshrl.u32 %v7193_v2, 16  ;;  %v7196_v26 = vcombine.low %v1251_v13, %v1251_v13 }
  0x81   : > { %v1148_v22 = vpack.i.b16 %v1147_v17, %v1147_v17  ;;  %v1163_v23 = vshrl.u32 %v7194_v15, 16  ;;  %v1171_v24 = vshrl.u32 %v7195_v16, 16  ;;  %v969_v27 = vcombine.low %v961_v14, %v968_v18 }
  0x82   : > { %v1074_v28 = vrot.slane %v1066_v19, %v8196_v10  ;;  %v1081_v29 = vrot.slane %v1067_v20, %v8196_v10  ;;  %v1156_v30 = vpack.i.b16 %v1155_v21, %v1155_v21  ;;  %v7197_v34 = vcombine.high %v1251_v13, %v1251_v13  ;;  %v1596_v21 = vld [vmem:[#allocation8 + $0x10] sm:$0x22] }
  0x83   : > { %v1153_v31 = vrot.slane %v1148_v22, %v8194_v9  ;;  %v1164_v32 = vpack.i.b16 %v1163_v23, %v1163_v23  ;;  %v1172_v33 = vpack.i.b16 %v1171_v24, %v1171_v24  ;;  %970 = vrot.lane.b32.xlu1 %v969_v27, %s10040_s11  ;;  %v7198_v38 = vcombine.low %v1252_v25, %v1252_v25 }
  0x84   : > { %v1082_v36 = vcombine.low %v1074_v28, %v1081_v29  ;;  %v1161_v37 = vrot.slane %v1156_v30, %v8194_v9  ;;  %v7199_v39 = vcombine.high %v1252_v25, %v1252_v25  ;;  %v1264_v42 = vpack.i.b16 %v7196_v26, %v7196_v26  ;;  %v1597_v30 = vld [vmem:[#allocation8 + $0x18] sm:$0x22] }
  0x85   : > { %v1169_v40 = vrot.slane %v1164_v32, %v8194_v9  ;;  %v1177_v41 = vrot.slane %v1172_v33, %v8194_v9  ;;  %v1271_v43 = vpack.i.b16 %v7197_v34, %v7197_v34  ;;  %v1278_v46 = vpack.i.b16 %v7198_v38, %v7198_v38 }
  0x86   : > { %1083 = vrot.lane.b32.xlu0 %v1082_v36, %s10036_s20  ;;  %v1182_v45 = vcombine.low %v1153_v31, %v1161_v37  ;;  %v1285_v47 = vpack.i.b16 %v7199_v39, %v7199_v39  ;;  %v7200_v48 = vcombine.low %v1363_v35, %v1363_v35  ;;  %v1269_v50 = vrot.slane %v1264_v42, %v8188_v6  ;;  %v440_v39 = vld [vmem:[#allocation8] sm:$0x11] }
  0x87   : > { %v1183_v49 = vcombine.low %v1169_v40, %v1177_v41  ;;  %v1276_v51 = vrot.slane %v1271_v43, %v8188_v6  ;;  %v7201_v52 = vcombine.high %v1363_v35, %v1363_v35  ;;  %v1283_v55 = vrot.slane %v1278_v46, %v8188_v6 }
  0x88   : > { %v1190_v54 = vrot.slane %v1182_v45, %v8196_v10  ;;  %v1290_v56 = vrot.slane %v1285_v47, %v8188_v6  ;;  %v7202_v57 = vcombine.low %v1364_v44, %v1364_v44  ;;  %v7203_v60 = vcombine.high %v1364_v44, %v1364_v44 }
  0x89   : > { %v1197_v58 = vrot.slane %v1183_v49, %v8196_v10  ;;  %v1295_v59 = vcombine.low %v1269_v50, %v1276_v51  ;;  %v1376_v61 = vshrl.u32 %v7200_v48, 16  ;;  %v1384_v63 = vshrl.u32 %v7201_v52, 16  ;;  %v441_v51 = vld [vmem:[#allocation8 + $0x8] sm:$0x11] }
  0x8a   : > { %v1296_v62 = vcombine.low %v1283_v55, %v1290_v56  ;;  %v1392_v0 = vshrl.u32 %v7202_v57, 16  ;;  %v7204_v2 = vcombine.low %v1482_v53, %v1482_v53  ;;  %v1400_v12 = vshrl.u32 %v7203_v60, 16 }
  0x8b   : > { %v1198_v3 = vcombine.low %v1190_v54, %v1197_v58  ;;  %v1303_v5 = vrot.slane %v1295_v59, %v8196_v10  ;;  %v1377_v11 = vpack.i.b16 %v1376_v61, %v1376_v61  ;;  %v1385_v14 = vpack.i.b16 %v1384_v63, %v1384_v63  ;;  %v1917_v61 = vld [vmem:[#allocation8 + $0x10] sm:$0x88] }
  0x8c   : > { %v1310_v13 = vrot.slane %v1296_v62, %v8196_v10  ;;  %v1393_v15 = vpack.i.b16 %v1392_v0, %v1392_v0  ;;  %v7205_v16 = vcombine.high %v1482_v53, %v1482_v53  ;;  %v1401_v18 = vpack.i.b16 %v1400_v12, %v1400_v12  ;;  %v1918_v12 = vld [vmem:[#allocation8 + $0x18] sm:$0x88] }
  0x8d   : > { %1199 = vrot.lane.b32.xlu1 %v1198_v3, %s10034_s8  ;;  %v1382_v17 = vrot.slane %v1377_v11, %v8188_v6  ;;  %v7206_v19 = vcombine.low %v1483_v1, %v1483_v1  ;;  %v7207_v20 = vcombine.high %v1483_v1, %v1483_v1  ;;  %v1390_v23 = vrot.slane %v1385_v14, %v8188_v6 }
  0x8e   : > { %v1311_v22 = vcombine.low %v1303_v5, %v1310_v13  ;;  %v1398_v24 = vrot.slane %v1393_v15, %v8188_v6  ;;  %v1495_v25 = vpack.i.b16 %v7204_v2, %v7204_v2  ;;  %v1406_v26 = vrot.slane %v1401_v18, %v8188_v6 }
  0x8f   : > { %v1502_v27 = vpack.i.b16 %v7205_v16, %v7205_v16  ;;  %v1509_v28 = vpack.i.b16 %v7206_v19, %v7206_v19  ;;  %v1516_v29 = vpack.i.b16 %v7207_v20, %v7207_v20  ;;  %v1411_v31 = vcombine.low %v1382_v17, %v1390_v23 }
  0x90   : > { %1312 = vrot.lane.b32.xlu0 %v1311_v22, %s10031_s15  ;;  %v1500_v32 = vrot.slane %v1495_v25, %v8190_v7  ;;  %v7208_v33 = vcombine.low %v1596_v21, %v1596_v21  ;;  %v7209_v34 = vcombine.high %v1596_v21, %v1596_v21  ;;  %v1412_v35 = vcombine.low %v1398_v24, %v1406_v26 }
  0x91   : > { %v1507_v36 = vrot.slane %v1502_v27, %v8190_v7  ;;  %v1514_v37 = vrot.slane %v1509_v28, %v8190_v7  ;;  %v1521_v38 = vrot.slane %v1516_v29, %v8190_v7  ;;  %v1419_v40 = vrot.slane %v1411_v31, %v8196_v10  ;;  %v1715_v29 = vld [vmem:[#allocation8 + $0x10] sm:$0x44] }
  0x92   : > { %v7210_v41 = vcombine.low %v1597_v30, %v1597_v30  ;;  %v7211_v42 = vcombine.high %v1597_v30, %v1597_v30  ;;  %v1609_v43 = vshrl.u32 %v7208_v33, 16  ;;  %v1426_v44 = vrot.slane %v1412_v35, %v8196_v10 }
  0x93   : > { %v1526_v45 = vcombine.low %v1500_v32, %v1507_v36  ;;  %v1527_v46 = vcombine.low %v1514_v37, %v1521_v38  ;;  %v1617_v47 = vshrl.u32 %v7209_v34, 16  ;;  %v7168_v52 = vcombine.low %v440_v39, %v440_v39  ;;  %v1716_v38 = vld [vmem:[#allocation8 + $0x18] sm:$0x44] }
  0x94   : > { %v1610_v48 = vpack.i.b16 %v1609_v43, %v1609_v43  ;;  %v1625_v49 = vshrl.u32 %v7210_v41, 16  ;;  %v1633_v50 = vshrl.u32 %v7211_v42, 16  ;;  %v1427_v53 = vcombine.low %v1419_v40, %v1426_v44  ;;  %v2146_v43 = vld [vmem:[#allocation8 + $0x20] sm:$0x11] }
  0x95   : > { %v1534_v54 = vrot.slane %v1526_v45, %v8196_v10  ;;  %v1541_v55 = vrot.slane %v1527_v46, %v8196_v10  ;;  %v1618_v56 = vpack.i.b16 %v1617_v47, %v1617_v47  ;;  %v7169_v60 = vcombine.high %v440_v39, %v440_v39 }
  0x96   : > { %v1615_v57 = vrot.slane %v1610_v48, %v8190_v7  ;;  %v1626_v58 = vpack.i.b16 %v1625_v49, %v1625_v49  ;;  %v1634_v59 = vpack.i.b16 %v1633_v50, %v1633_v50  ;;  %1428 = vrot.lane.b32.xlu1 %v1427_v53, %s10012_s18  ;;  %v7170_v0 = vcombine.low %v441_v51, %v441_v51  ;;  %s10029_s18 = smov 127  }
  0x97   : > { %v1542_v62 = vcombine.low %v1534_v54, %v1541_v55  ;;  %v1623_v63 = vrot.slane %v1618_v56, %v8190_v7  ;;  %v7171_v1 = vcombine.high %v441_v51, %v441_v51  ;;  %v453_v5 = vshrl.u32 %v7168_v52, 16  ;;  %v2147_v55 = vld [vmem:[#allocation8 + $0x28] sm:$0x11] }
  0x98   : > { %v1631_v2 = vrot.slane %v1626_v58, %v8190_v7  ;;  %v1639_v3 = vrot.slane %v1634_v59, %v8190_v7  ;;  %v461_v11 = vshrl.u32 %v7169_v60, 16  ;;  %v469_v14 = vshrl.u32 %v7170_v0, 16 }
  0x99   : > { %1543 = vrot.lane.b32.xlu0 %v1542_v62, %s10016_s7  ;;  %v1644_v13 = vcombine.low %v1615_v57, %v1623_v63  ;;  %v477_v15 = vshrl.u32 %v7171_v1, 16  ;;  %v7222_v16 = vcombine.low %v1917_v61, %v1917_v61  ;;  %v454_v18 = vpack.i.b16 %v453_v5, %v453_v5  ;;  %v2029_v1 = vld [vmem:[#allocation8 + $0x10] sm:$0x88]  ;;  %s10018_s7 = smov 7  }
  0x9a   : > { %v1645_v17 = vcombine.low %v1631_v2, %v1639_v3  ;;  %v462_v19 = vpack.i.b16 %v461_v11, %v461_v11  ;;  %v7223_v20 = vcombine.high %v1917_v61, %v1917_v61  ;;  %v470_v22 = vpack.i.b16 %v469_v14, %v469_v14 }
  0x9b   : > { %v1652_v21 = vrot.slane %v1644_v13, %v8196_v10  ;;  %v478_v23 = vpack.i.b16 %v477_v15, %v477_v15  ;;  %v7224_v24 = vcombine.low %v1918_v12, %v1918_v12  ;;  %v459_v26 = vrot.slane %v454_v18, %v8188_v6 }
  0x9c   : > { %v1659_v25 = vrot.slane %v1645_v17, %v8196_v10  ;;  %v467_v27 = vrot.slane %v462_v19, %v8188_v6  ;;  %v7225_v28 = vcombine.high %v1918_v12, %v1918_v12  ;;  %v475_v30 = vrot.slane %v470_v22, %v8188_v6 }
  0x9d   : > { %v483_v31 = vrot.slane %v478_v23, %v8188_v6  ;;  %v1930_v32 = vpack.i.b16 %v7222_v16, %v7222_v16  ;;  %v1937_v33 = vpack.i.b16 %v7223_v20, %v7223_v20  ;;  %v1944_v36 = vpack.i.b16 %v7224_v24, %v7224_v24  ;;  %v2030_v16 = vld [vmem:[#allocation8 + $0x18] sm:$0x88] }
  0x9e   : > { %v1660_v34 = vcombine.low %v1652_v21, %v1659_v25  ;;  %v488_v35 = vcombine.low %v459_v26, %v467_v27  ;;  %v1951_v37 = vpack.i.b16 %v7225_v28, %v7225_v28  ;;  %v7212_v42 = vcombine.low %v1715_v29, %v1715_v29  ;;  %v2258_v25 = vld [vmem:[#allocation8 + $0x20] sm:$0x11] }
  0x9f   : > { %v489_v39 = vcombine.low %v475_v30, %v483_v31  ;;  %v1935_v40 = vrot.slane %v1930_v32, %v8194_v9  ;;  %v1942_v41 = vrot.slane %v1937_v33, %v8194_v9  ;;  %v1949_v45 = vrot.slane %v1944_v36, %v8194_v9 }
  0xa0   : > { %1661 = vrot.lane.b32.xlu1 %v1660_v34, %s10014_s30  ;;  %v496_v44 = vrot.slane %v488_v35, %v8196_v10  ;;  %v1956_v46 = vrot.slane %v1951_v37, %v8194_v9  ;;  %v7213_v47 = vcombine.high %v1715_v29, %v1715_v29  ;;  %v7214_v50 = vcombine.low %v1716_v38, %v1716_v38  ;;  %v2259_v34 = vld [vmem:[#allocation8 + $0x28] sm:$0x11]  ;;  %s10022_s30 = smov 8  }
  0xa1   : > { %v503_v48 = vrot.slane %v489_v39, %v8196_v10  ;;  %v1961_v49 = vcombine.low %v1935_v40, %v1942_v41  ;;  %v7215_v51 = vcombine.high %v1716_v38, %v1716_v38  ;;  %v1728_v53 = vpack.i.b16 %v7212_v42, %v7212_v42 }
  0xa2   : > { %v1962_v52 = vcombine.low %v1949_v45, %v1956_v46  ;;  %v1735_v54 = vpack.i.b16 %v7213_v47, %v7213_v47  ;;  %v7230_v56 = vcombine.low %v2146_v43, %v2146_v43  ;;  %v1742_v59 = vpack.i.b16 %v7214_v50, %v7214_v50 }
  0xa3   : > { %v504_v57 = vcombine.low %v496_v44, %v503_v48  ;;  %v1969_v58 = vrot.slane %v1961_v49, %v8196_v10  ;;  %v1749_v60 = vpack.i.b16 %v7215_v51, %v7215_v51  ;;  %v1733_v62 = vrot.slane %v1728_v53, %v8192_v8  ;;  %v2375_v51 = vld [vmem:[#allocation8 + $0x20] sm:$0x22] }
  0xa4   : > { %v1976_v61 = vrot.slane %v1962_v52, %v8196_v10  ;;  %v1740_v63 = vrot.slane %v1735_v54, %v8192_v8  ;;  %v7231_v0 = vcombine.high %v2146_v43, %v2146_v43  ;;  %v1747_v2 = vrot.slane %v1742_v59, %v8192_v8 }
  0xa5   : > { %505 = vrot.lane.b32.xlu0 %v504_v57, %s10048_s16  ;;  %v1754_v3 = vrot.slane %v1749_v60, %v8192_v8  ;;  %v7232_v5 = vcombine.low %v2147_v55, %v2147_v55  ;;  %v7233_v11 = vcombine.high %v2147_v55, %v2147_v55  ;;  %v2159_v14 = vpack.i.b16 %v7230_v56, %v7230_v56  ;;  %v2376_v60 = vld [vmem:[#allocation8 + $0x28] sm:$0x22] }
  0xa6   : > { %v1977_v12 = vcombine.low %v1969_v58, %v1976_v61  ;;  %v1759_v13 = vcombine.low %v1733_v62, %v1740_v63  ;;  %v2166_v15 = vpack.i.b16 %v7231_v0, %v7231_v0  ;;  %v7226_v20 = vcombine.low %v2029_v1, %v2029_v1 }
  0xa7   : > { %v1760_v17 = vcombine.low %v1747_v2, %v1754_v3  ;;  %v2173_v18 = vpack.i.b16 %v7232_v5, %v7232_v5  ;;  %v2180_v19 = vpack.i.b16 %v7233_v11, %v7233_v11  ;;  %v2164_v22 = vrot.slane %v2159_v14, %v8188_v6 }
  0xa8   : > { %1978 = vrot.lane.b32.xlu1 %v1977_v12, %s10024_s12  ;;  %v1767_v21 = vrot.slane %v1759_v13, %v8196_v10  ;;  %v2171_v23 = vrot.slane %v2166_v15, %v8188_v6  ;;  %v7227_v24 = vcombine.high %v2029_v1, %v2029_v1  ;;  %v7228_v29 = vcombine.low %v2030_v16, %v2030_v16  ;;  %v2487_v15 = vld [vmem:[#allocation8 + $0x20] sm:$0x22] }
  0xa9   : > { %v1774_v26 = vrot.slane %v1760_v17, %v8196_v10  ;;  %v2178_v27 = vrot.slane %v2173_v18, %v8188_v6  ;;  %v2185_v28 = vrot.slane %v2180_v19, %v8188_v6  ;;  %v7229_v31 = vcombine.high %v2030_v16, %v2030_v16 }
  0xaa   : > { %v2190_v30 = vcombine.low %v2164_v22, %v2171_v23  ;;  %v2042_v32 = vshrl.u32 %v7226_v20, 16  ;;  %v2050_v33 = vshrl.u32 %v7227_v24, 16  ;;  %v2058_v37 = vshrl.u32 %v7228_v29, 16  ;;  %v2488_v24 = vld [vmem:[#allocation8 + $0x28] sm:$0x22] }
  0xab   : > { %v1775_v35 = vcombine.low %v1767_v21, %v1774_v26  ;;  %v2191_v36 = vcombine.low %v2178_v27, %v2185_v28  ;;  %v7234_v38 = vcombine.low %v2258_v25, %v2258_v25  ;;  %v2066_v42 = vshrl.u32 %v7229_v31, 16  ;;  %v2716_v29 = vld [vmem:[#allocation8 + $0x20] sm:$0x44] }
  0xac   : > { %v2198_v39 = vrot.slane %v2190_v30, %v8196_v10  ;;  %v2043_v40 = vpack.i.b16 %v2042_v32, %v2042_v32  ;;  %v2051_v41 = vpack.i.b16 %v2050_v33, %v2050_v33  ;;  %v2059_v44 = vpack.i.b16 %v2058_v37, %v2058_v37 }
  0xad   : > { %1776 = vrot.lane.b32.xlu0 %v1775_v35, %s10029_s18  ;;  %v2205_v43 = vrot.slane %v2191_v36, %v8196_v10  ;;  %v7235_v45 = vcombine.high %v2258_v25, %v2258_v25  ;;  %v7236_v46 = vcombine.low %v2259_v34, %v2259_v34  ;;  %v2067_v49 = vpack.i.b16 %v2066_v42, %v2066_v42 }
  0xae   : > { %v2048_v47 = vrot.slane %v2043_v40, %v8194_v9  ;;  %v2056_v48 = vrot.slane %v2051_v41, %v8194_v9  ;;  %v7237_v50 = vcombine.high %v2259_v34, %v2259_v34  ;;  %v2064_v53 = vrot.slane %v2059_v44, %v8194_v9  ;;  %v2717_v41 = vld [vmem:[#allocation8 + $0x28] sm:$0x44] }
  0xaf   : > { %v2206_v52 = vcombine.low %v2198_v39, %v2205_v43  ;;  %v2271_v54 = vshrl.u32 %v7234_v38, 16  ;;  %v2279_v55 = vshrl.u32 %v7235_v45, 16  ;;  %v2072_v56 = vrot.slane %v2067_v49, %v8194_v9 }
  0xb0   : > { %v2077_v57 = vcombine.low %v2048_v47, %v2056_v48  ;;  %v2287_v58 = vshrl.u32 %v7236_v46, 16  ;;  %v2295_v59 = vshrl.u32 %v7237_v50, 16  ;;  %v7238_v63 = vcombine.low %v2375_v51, %v2375_v51 }
  0xb1   : > { %2207 = vrot.lane.b32.xlu1 %v2206_v52, %s10022_s30  ;;  %v2272_v61 = vpack.i.b16 %v2271_v54, %v2271_v54  ;;  %v2280_v62 = vpack.i.b16 %v2279_v55, %v2279_v55  ;;  %v7239_v0 = vcombine.high %v2375_v51, %v2375_v51  ;;  %v2078_v1 = vcombine.low %v2064_v53, %v2072_v56  ;;  %v2604_v55 = vld [vmem:[#allocation8 + $0x20] sm:$0x44] }
  0xb2   : > { %v2085_v2 = vrot.slane %v2077_v57, %v8196_v10  ;;  %v2288_v3 = vpack.i.b16 %v2287_v58, %v2287_v58  ;;  %v2296_v5 = vpack.i.b16 %v2295_v59, %v2295_v59  ;;  %v7240_v13 = vcombine.low %v2376_v60, %v2376_v60 }
  0xb3   : > { %v2277_v11 = vrot.slane %v2272_v61, %v8188_v6  ;;  %v2285_v12 = vrot.slane %v2280_v62, %v8188_v6  ;;  %v7241_v14 = vcombine.high %v2376_v60, %v2376_v60  ;;  %v2092_v16 = vrot.slane %v2078_v1, %v8196_v10 }
  0xb4   : > { %v2293_v17 = vrot.slane %v2288_v3, %v8188_v6  ;;  %v2301_v18 = vrot.slane %v2296_v5, %v8188_v6  ;;  %v2388_v19 = vpack.i.b16 %v7238_v63, %v7238_v63  ;;  %v2395_v21 = vpack.i.b16 %v7239_v0, %v7239_v0  ;;  %v2605_v0 = vld [vmem:[#allocation8 + $0x28] sm:$0x44] }
  0xb5   : > { %v2306_v20 = vcombine.low %v2277_v11, %v2285_v12  ;;  %v2402_v22 = vpack.i.b16 %v7240_v13, %v7240_v13  ;;  %v2409_v23 = vpack.i.b16 %v7241_v14, %v7241_v14  ;;  %v2093_v25 = vcombine.low %v2085_v2, %v2092_v16 }
  0xb6   : > { %v2307_v26 = vcombine.low %v2293_v17, %v2301_v18  ;;  %v2393_v27 = vrot.slane %v2388_v19, %v8190_v7  ;;  %v7242_v28 = vcombine.low %v2487_v15, %v2487_v15  ;;  %v2400_v31 = vrot.slane %v2395_v21, %v8190_v7 }
  0xb7   : > { %v2314_v30 = vrot.slane %v2306_v20, %v8196_v10  ;;  %v2407_v32 = vrot.slane %v2402_v22, %v8190_v7  ;;  %v2414_v33 = vrot.slane %v2409_v23, %v8190_v7  ;;  %2094 = vrot.lane.b32.xlu0 %v2093_v25, %s10018_s7  ;;  %v7243_v35 = vcombine.high %v2487_v15, %v2487_v15  ;;  %s10020_s7 = smov 9   ;;  %v2945_v23 = vld [vmem:[#allocation8 + $0x20] sm:$0x88] }
  0xb8   : > { %v2321_v34 = vrot.slane %v2307_v26, %v8196_v10  ;;  %v7244_v36 = vcombine.low %v2488_v24, %v2488_v24  ;;  %v7245_v37 = vcombine.high %v2488_v24, %v2488_v24  ;;  %v2419_v38 = vcombine.low %v2393_v27, %v2400_v31 }
  0xb9   : > { %v2420_v39 = vcombine.low %v2407_v32, %v2414_v33  ;;  %v2500_v40 = vshrl.u32 %v7242_v28, 16  ;;  %v7250_v42 = vcombine.low %v2716_v29, %v2716_v29  ;;  %v2508_v44 = vshrl.u32 %v7243_v35, 16  ;;  %v2946_v32 = vld [vmem:[#allocation8 + $0x28] sm:$0x88] }
  0xba   : > { %v2322_v43 = vcombine.low %v2314_v30, %v2321_v34  ;;  %v2516_v45 = vshrl.u32 %v7244_v36, 16  ;;  %v2524_v46 = vshrl.u32 %v7245_v37, 16  ;;  %v2427_v47 = vrot.slane %v2419_v38, %v8196_v10  ;;  %v288_v37 = vld [vmem:[%s8171_s17] sm:$0xff] }
  0xbb   : > { %v2434_v48 = vrot.slane %v2420_v39, %v8196_v10  ;;  %v2501_v49 = vpack.i.b16 %v2500_v40, %v2500_v40  ;;  %v7251_v50 = vcombine.high %v2716_v29, %v2716_v29  ;;  %v2509_v51 = vpack.i.b16 %v2508_v44, %v2508_v44 }
  0xbc   : > { %2323 = vrot.lane.b32.xlu0 %v2322_v43, %s10020_s7  ;;  %v2517_v52 = vpack.i.b16 %v2516_v45, %v2516_v45  ;;  %v2525_v53 = vpack.i.b16 %v2524_v46, %v2524_v46  ;;  %v7252_v54 = vcombine.low %v2717_v41, %v2717_v41  ;;  %v7253_v58 = vcombine.high %v2717_v41, %v2717_v41  ;;  %v289_v46 = vld [vmem:[%s8171_s17 + $0x8] sm:$0xff]  ;;  %s10070_s7 = smov 120  }
  0xbd   : > { %v2435_v56 = vcombine.low %v2427_v47, %v2434_v48  ;;  %v2506_v57 = vrot.slane %v2501_v49, %v8190_v7  ;;  %v2729_v59 = vshrl.u32 %v7250_v42, 16  ;;  %v2514_v60 = vrot.slane %v2509_v51, %v8190_v7 }
  0xbe   : > { %v2522_v61 = vrot.slane %v2517_v52, %v8190_v7  ;;  %v2530_v62 = vrot.slane %v2525_v53, %v8190_v7  ;;  %v2737_v63 = vshrl.u32 %v7251_v50, 16  ;;  %v2745_v2 = vshrl.u32 %v7252_v54, 16 }
  0xbf   : > { %2436 = vrot.lane.b32.xlu1 %v2435_v56, %s10026_s29  ;;  %v2730_v1 = vpack.i.b16 %v2729_v59, %v2729_v59  ;;  %v2753_v3 = vshrl.u32 %v7253_v58, 16  ;;  %v7246_v5 = vcombine.low %v2604_v55, %v2604_v55  ;;  %v2535_v11 = vcombine.low %v2506_v57, %v2514_v60  ;;  %v3174_v59 = vld [vmem:[#allocation8 + $0x30] sm:$0x11] }
  0xc0   : > { %v2536_v12 = vcombine.low %v2522_v61, %v2530_v62  ;;  %v2738_v13 = vpack.i.b16 %v2737_v63, %v2737_v63  ;;  %v7247_v14 = vcombine.high %v2604_v55, %v2604_v55  ;;  %v2746_v16 = vpack.i.b16 %v2745_v2, %v2745_v2  ;;  %v3175_v63 = vld [vmem:[#allocation8 + $0x38] sm:$0x11] }
  0xc1   : > { %v2735_v15 = vrot.slane %v2730_v1, %v8192_v8  ;;  %v2754_v17 = vpack.i.b16 %v2753_v3, %v2753_v3  ;;  %v7248_v18 = vcombine.low %v2605_v0, %v2605_v0  ;;  %v2543_v19 = vrot.slane %v2535_v11, %v8196_v10 }
  0xc2   : > { %v2550_v20 = vrot.slane %v2536_v12, %v8196_v10  ;;  %v2743_v21 = vrot.slane %v2738_v13, %v8192_v8  ;;  %v7249_v22 = vcombine.high %v2605_v0, %v2605_v0  ;;  %v2751_v24 = vrot.slane %v2746_v16, %v8192_v8 }
  0xc3   : > { %v2759_v25 = vrot.slane %v2754_v17, %v8192_v8  ;;  %v2617_v26 = vpack.i.b16 %v7246_v5, %v7246_v5  ;;  %v2624_v27 = vpack.i.b16 %v7247_v14, %v7247_v14  ;;  %v2631_v30 = vpack.i.b16 %v7248_v18, %v7248_v18 }
  0xc4   : > { %v2551_v28 = vcombine.low %v2543_v19, %v2550_v20  ;;  %v2764_v29 = vcombine.low %v2735_v15, %v2743_v21  ;;  %v2638_v31 = vpack.i.b16 %v7249_v22, %v7249_v22  ;;  %v7258_v36 = vcombine.low %v2945_v23, %v2945_v23 }
  0xc5   : > { %v2765_v33 = vcombine.low %v2751_v24, %v2759_v25  ;;  %v2622_v34 = vrot.slane %v2617_v26, %v8192_v8  ;;  %v2629_v35 = vrot.slane %v2624_v27, %v8192_v8  ;;  %v2636_v39 = vrot.slane %v2631_v30, %v8192_v8  ;;  %v2833_v25 = vld [vmem:[#allocation8 + $0x20] sm:$0x88] }
  0xc6   : > { %2552 = vrot.lane.b32.xlu0 %v2551_v28, %s10048_s16  ;;  %v2772_v38 = vrot.slane %v2764_v29, %v8196_v10  ;;  %v2643_v40 = vrot.slane %v2638_v31, %v8192_v8  ;;  %v7259_v41 = vcombine.high %v2945_v23, %v2945_v23  ;;  %v7260_v44 = vcombine.low %v2946_v32, %v2946_v32  ;;  %v2834_v29 = vld [vmem:[#allocation8 + $0x28] sm:$0x88] }
  0xc7   : > { %v2779_v42 = vrot.slane %v2765_v33, %v8196_v10  ;;  %v2648_v43 = vcombine.low %v2622_v34, %v2629_v35  ;;  %v7261_v45 = vcombine.high %v2946_v32, %v2946_v32  ;;  %v2958_v48 = vshrl.u32 %v7258_v36, 16 }
  0xc8   : > { %v2649_v47 = vcombine.low %v2636_v39, %v2643_v40  ;;  %v2966_v49 = vshrl.u32 %v7259_v41, 16  ;;  %v292_v50 = vcombine.high %v288_v37, %v288_v37  ;;  %v2974_v53 = vshrl.u32 %v7260_v44, 16 }
  0xc9   : > { %v2780_v51 = vcombine.low %v2772_v38, %v2779_v42  ;;  %v2656_v52 = vrot.slane %v2648_v43, %v8196_v10  ;;  %v2982_v54 = vshrl.u32 %v7261_v45, 16  ;;  %v2959_v56 = vpack.i.b16 %v2958_v48, %v2958_v48 }
  0xca   : > { %v2663_v55 = vrot.slane %v2649_v47, %v8196_v10  ;;  %v2967_v57 = vpack.i.b16 %v2966_v49, %v2966_v49  ;;  %v293_v58 = vcombine.high %v289_v46, %v289_v46  ;;  %v2975_v60 = vpack.i.b16 %v2974_v53, %v2974_v53 }
  0xcb   : > { %2781 = vrot.lane.b32.xlu0 %v2780_v51, %s10044_s19  ;;  %v2983_v61 = vpack.i.b16 %v2982_v54, %v2982_v54  ;;  %v7162_v62 = vpack.c.bf16 %v292_v50, %v288_v37  ;;  %v2964_v1 = vrot.slane %v2959_v56, %v8194_v9  ;;  %v7266_v13 = vcombine.low %v3174_v59, %v3174_v59  ;;  %v3063_v50 = vld [vmem:[#allocation8 + $0x38] sm:$0x11]  ;;  %v3291_v54 = vld [vmem:[#allocation8 + $0x30] sm:$0x22] }
  0xcc   : > { %v2664_v0 = vcombine.low %v2656_v52, %v2663_v55  ;;  %v2972_v2 = vrot.slane %v2967_v57, %v8194_v9  ;;  %v7163_v3 = vpack.c.bf16 %v293_v58, %v289_v46  ;;  %v2980_v5 = vrot.slane %v2975_v60, %v8194_v9  ;;  %v3062_v46 = vld [vmem:[#allocation8 + $0x30] sm:$0x11] }
  0xcd   : > { %v2988_v11 = vrot.slane %v2983_v61, %v8194_v9  ;;  %v312_v12 = vrot.slane %v7162_v62, %v8196_v10  ;;  %v7267_v16 = vcombine.high %v3174_v59, %v3174_v59  ;;  %v7268_v17 = vcombine.low %v3175_v63, %v3175_v63 }
  0xce   : > { %2665 = vrot.lane.b32.xlu1 %v2664_v0, %s10046_s27  ;;  %v2993_v14 = vcombine.low %v2964_v1, %v2972_v2  ;;  %v319_v15 = vrot.slane %v7163_v3, %v8196_v10  ;;  %v7269_v19 = vcombine.high %v3175_v63, %v3175_v63  ;;  %v3187_v20 = vshrl.u32 %v7266_v13, 16 }
  0xcf   : > { %v2994_v18 = vcombine.low %v2980_v5, %v2988_v11  ;;  %v3195_v23 = vshrl.u32 %v7267_v16, 16  ;;  %v3203_v24 = vshrl.u32 %v7268_v17, 16  ;;  %v7254_v35 = vcombine.low %v2833_v25, %v2833_v25 }
  0xd0   : > { %v3001_v21 = vrot.slane %v2993_v14, %v8196_v10  ;;  %v8354_v22 = vcombine.low %v312_v12, %v319_v15  ;;  %v3188_v27 = vpack.i.b16 %v3187_v20, %v3187_v20  ;;  %v3211_v28 = vshrl.u32 %v7269_v19, 16  ;;  %v3292_v12 = vld [vmem:[#allocation8 + $0x38] sm:$0x22] }
  0xd1   : > { %v3008_v26 = vrot.slane %v2994_v18, %v8196_v10  ;;  %v3196_v30 = vpack.i.b16 %v3195_v23, %v3195_v23  ;;  %v3204_v31 = vpack.i.b16 %v3203_v24, %v3203_v24  ;;  %v7255_v38 = vcombine.high %v2833_v25, %v2833_v25 }
  0xd2   : > { %322 = vst [vmem:[#allocation2 + $0x2] sm:$0xff] %v8354_v22  ;;  %v3193_v33 = vrot.slane %v3188_v27, %v8188_v6  ;;  %v3212_v34 = vpack.i.b16 %v3211_v28, %v3211_v28  ;;  %v7256_v39 = vcombine.low %v2834_v29, %v2834_v29  ;;  %v7257_v41 = vcombine.high %v2834_v29, %v2834_v29 }
  0xd3   : > { %v3009_v32 = vcombine.low %v3001_v21, %v3008_v26  ;;  %v3201_v36 = vrot.slane %v3196_v30, %v8188_v6  ;;  %v3209_v37 = vrot.slane %v3204_v31, %v8188_v6  ;;  %v2846_v42 = vpack.i.b16 %v7254_v35, %v7254_v35 }
  0xd4   : > { %v3217_v40 = vrot.slane %v3212_v34, %v8188_v6  ;;  %v2853_v44 = vpack.i.b16 %v7255_v38, %v7255_v38  ;;  %v2860_v45 = vpack.i.b16 %v7256_v39, %v7256_v39  ;;  %v2867_v49 = vpack.i.b16 %v7257_v41, %v7257_v41 }
  0xd5   : > { %3010 = vrot.lane.b32.xlu0 %v3009_v32, %s10040_s11  ;;  %v3222_v43 = vcombine.low %v3193_v33, %v3201_v36  ;;  %v2851_v48 = vrot.slane %v2846_v42, %v8194_v9  ;;  %v7262_v57 = vcombine.low %v3062_v46, %v3062_v46  ;;  %v7263_v59 = vcombine.high %v3062_v46, %v3062_v46 }
  0xd6   : > { %v3223_v47 = vcombine.low %v3209_v37, %v3217_v40  ;;  %v2858_v52 = vrot.slane %v2853_v44, %v8194_v9  ;;  %v2865_v53 = vrot.slane %v2860_v45, %v8194_v9  ;;  %v2872_v56 = vrot.slane %v2867_v49, %v8194_v9 }
  0xd7   : > { %v3230_v51 = vrot.slane %v3222_v43, %v8196_v10  ;;  %v7264_v60 = vcombine.low %v3063_v50, %v3063_v50  ;;  %v7265_v61 = vcombine.high %v3063_v50, %v3063_v50  ;;  %v3075_v0 = vpack.i.b16 %v7262_v57, %v7262_v57 }
  0xd8   : > { %v3237_v55 = vrot.slane %v3223_v47, %v8196_v10  ;;  %v2877_v58 = vcombine.low %v2851_v48, %v2858_v52  ;;  %v2878_v63 = vcombine.low %v2865_v53, %v2872_v56  ;;  %v7270_v1 = vcombine.low %v3291_v54, %v3291_v54 }
  0xd9   : > { %v3082_v3 = vpack.i.b16 %v7263_v59, %v7263_v59  ;;  %v3089_v5 = vpack.i.b16 %v7264_v60, %v7264_v60  ;;  %v3096_v11 = vpack.i.b16 %v7265_v61, %v7265_v61  ;;  %v3080_v14 = vrot.slane %v3075_v0, %v8188_v6  ;;  %v324_v37 = vld [vmem:[#allocation2 + $0x8] sm:$0x3] }
  0xda   : > { %v3238_v62 = vcombine.low %v3230_v51, %v3237_v55  ;;  %v2885_v2 = vrot.slane %v2877_v58, %v8196_v10  ;;  %v2892_v13 = vrot.slane %v2878_v63, %v8196_v10  ;;  %v7271_v19 = vcombine.high %v3291_v54, %v3291_v54  ;;  %v558_v43 = vld [vmem:[#allocation2 + $0x8] sm:$0x3] }
  0xdb   : > { %v3087_v15 = vrot.slane %v3082_v3, %v8188_v6  ;;  %v3094_v16 = vrot.slane %v3089_v5, %v8188_v6  ;;  %v3101_v17 = vrot.slane %v3096_v11, %v8188_v6  ;;  %v7272_v20 = vcombine.low %v3292_v12, %v3292_v12  ;;  %v791_v52 = vld [vmem:[#allocation2 + $0x8] sm:$0x3] }
  0xdc   : > { %3239 = vrot.lane.b32.xlu0 %v3238_v62, %s10034_s8  ;;  %v2893_v18 = vcombine.low %v2885_v2, %v2892_v13  ;;  %v7273_v21 = vcombine.high %v3292_v12, %v3292_v12  ;;  %v3304_v25 = vpack.i.b16 %v7270_v1, %v7270_v1  ;;  %v3311_v26 = vpack.i.b16 %v7271_v19, %v7271_v19  ;;  %v1021_v57 = vld [vmem:[#allocation2 + $0x8] sm:$0x3] }
  0xdd   : > { %v3106_v23 = vcombine.low %v3080_v14, %v3087_v15  ;;  %v3107_v24 = vcombine.low %v3094_v16, %v3101_v17  ;;  %v3318_v27 = vpack.i.b16 %v7272_v20, %v7272_v20  ;;  %v1250_v0 = vld [vmem:[#allocation2 + $0x8] sm:$0x3]  ;;  %v1916_v20 = vld [vmem:[#allocation2 + $0xa] sm:$0x3]  ;;  %vm389_vm0 = vcmask 449536  }
  0xde   : > { %2894 = vrot.lane.b32.xlu1 %v2893_v18, %s10042_s10  ;;  %v3325_v28 = vpack.i.b16 %v7273_v21, %v7273_v21  ;;  %v3309_v31 = vrot.slane %v3304_v25, %v8190_v7  ;;  %v3316_v33 = vrot.slane %v3311_v26, %v8190_v7  ;;  %v1481_v12 = vld [vmem:[#allocation2 + $0x8] sm:$0x3]  ;;  %vm623_vm1 = vcmask 465920  }
  0xdf   : > { %v3114_v29 = vrot.slane %v3106_v23, %v8196_v10  ;;  %v3121_v30 = vrot.slane %v3107_v24, %v8196_v10  ;;  %v3323_v34 = vrot.slane %v3318_v27, %v8190_v7  ;;  %v1714_v25 = vld [vmem:[#allocation2 + $0x8] sm:$0x3]  ;;  %vm10052_vm2 = vcmask 7168  }
  0xe0   : > { %v3330_v35 = vrot.slane %v3325_v28, %v8190_v7  ;;  %v3335_v41 = vcombine.low %v3309_v31, %v3316_v33  ;;  %v2145_v33 = vld [vmem:[#allocation2 + $0xa] sm:$0x3]  ;;  %vm856_vm3 = vcmask 523264   ;;  %vm1586_vm4 = vcmask 64512  }
  0xe1   : > { %v3122_v38 = vcombine.low %v3114_v29, %v3121_v30  ;;  %v8435_v30 = vld [vmem:[#allocation2] sm:$0xff]  ;;  %vm663_vm5 = vcmask 580608   ;;  %vm430_vm6 = vcmask 596992   ;;  %vm1546_vm7 = vcmask 982016  }
  0xe2   : > { %v3336_v42 = vcombine.low %v3323_v34, %v3330_v35  ;;  %v3343_v45 = vrot.slane %v3335_v41, %v8196_v10  ;;  %vm10038_vm8 = vcmask 1039360   ;;  %vm508_vm9 = vcmask 457728  }
  0xe3   : > { %v8380_v32 = vpop.permute.xlu1 %620  ;;  %3123 = vrot.lane.b32.xlu1 %v3122_v38, %s10036_s20  ;;  %vm741_vm10 = vcmask 515072   ;;  %vm782_vm11 = vcmask 531456   ;;  %vm549_vm12 = vcmask 588800   ;;  %vm10033_vm13 = vcmask 56320  }
  0xe4   : > { %v622_v39 = vrot.slane %v8380_v32, 6  ;;  %v3350_v46 = vrot.slane %v3336_v42, %v8196_v10  ;;  %vm10028_vm14 = vcmask 973824   ;;  %vm10039_vm15 = vcmask 990208  }
  0xe5   : > { %v387_v36 = vpop.permute.xlu0 %386 }
  0xe6   : > { %v388_v40 = vrot.slane %v387_v36, 6  ;;  %v628_v47 = vmul.bf16 %v622_v39, %v558_v43  ;;  %v3351_v49 = vcombine.low %v3343_v45, %v3350_v46 }
  0xe8   : > { %v394_v44 = vmul.bf16 %v388_v40, %v324_v37  ;;  %3352 = vrot.lane.b32.xlu1 %v3351_v49, %s10031_s15  ;;  %v652_v50 = vrot.slane %v628_v47, %v8196_v10  ;;  %v390_v28 = vsel %vm389_vm0, %v388_v40, %v387_v36  ;;  %v624_v36 = vsel %vm623_vm1, %v622_v39, %v8380_v32 }
  0xe9   : > { %v393_v34 = vmul.bf16 %v8435_v30, %v390_v28  ;;  %v627_v41 = vmul.bf16 %v624_v36, %v8435_v30 }
  0xea   : > { %v418_v48 = vrot.slane %v394_v44, %v8196_v10 }
  0xeb   : > { %v404_v44 = vrot.slane %v393_v34, %v8196_v10 }
  0xec   : > { %423 = vrot.lane.b32.xlu0 %v418_v48, %s10031_s15  ;;  %v8401_v60 = vpop.permute.xlu1 %738  ;;  %v638_v48 = vrot.slane %v627_v41, %v8196_v10 }
  0xef   : > { %v854_v51 = vpop.permute.xlu0 %853 }
  0xf0   : > { %657 = vrot.lane.b32.xlu0 %v652_v50, %s10036_s20  ;;  %v855_v53 = vrot.slane %v854_v51, 6 }
  0xf2   : > { %v861_v54 = vmul.bf16 %v855_v53, %v791_v52  ;;  %v857_v45 = vsel %vm856_vm3, %v855_v53, %v854_v51  ;;  %v397_v53 = vcombine.high %v393_v34, %v393_v34 }
  0xf3   : > { %v860_v39 = vmul.bf16 %v857_v45, %v8435_v30 }
  0xf4   : > { %v885_v55 = vrot.slane %v861_v54, %v8196_v10 }
  0xf5   : > { %v8405_v62 = vpop.permute.xlu1 %970  ;;  %v871_v52 = vrot.slane %v860_v39, %v8196_v10 }
  0xf6   : > { %890 = vrot.lane.b32.xlu0 %v885_v55, %s10042_s10  ;;  %v1828_v55 = vld [vmem:[#allocation8 + $0x10] sm:$0x44] }
  0xf8   : > { %v8398_v56 = vpop.permute.xlu0 %1083 }
  0xf9   : > { %v1085_v58 = vrot.slane %v8398_v56, 6 }
  0xfb   : > { %v1090_v59 = vmul.bf16 %v1085_v58, %v1021_v57  ;;  %v1086_v49 = vsel %vm663_vm5, %v1085_v58, %v8398_v56  ;;  %v1829_v56 = vld [vmem:[#allocation8 + $0x18] sm:$0x44]  ;;  %v631_v57 = vcombine.high %v627_v41, %v627_v41  ;;  %v7216_v58 = vcombine.low %v1828_v55, %v1828_v55 }
  0xfc   : > { %v1089_v50 = vmul.bf16 %v1086_v49, %v8435_v30 }
  0xfd   : > { %v1114_v61 = vrot.slane %v1090_v59, %v8196_v10  ;;  %v7217_v59 = vcombine.high %v1828_v55, %v1828_v55 }
  0xff   : > { %1119 = vrot.lane.b32.xlu0 %v1114_v61, %s10046_s27  ;;  %v8411_v5 = vpop.permute.xlu1 %1199  ;;  %v7218_v61 = vcombine.low %v1829_v56, %v1829_v56 }
 0x102   : > { %v8407_v63 = vpop.permute.xlu0 %1312 }
 0x103   : > { %v1314_v1 = vrot.slane %v8407_v63, 6 }
 0x105   : > { %v1319_v2 = vmul.bf16 %v1314_v1, %v1250_v0  ;;  %v1315_v54 = vsel %vm430_vm6, %v1314_v1, %v8407_v63  ;;  %v7219_v1 = vcombine.high %v1829_v56, %v1829_v56 }
 0x106   : > { %v1318_v0 = vmul.bf16 %v1315_v54, %v8435_v30 }
 0x107   : > { %v1343_v3 = vrot.slane %v1319_v2, %v8196_v10  ;;  %v1100_v2 = vrot.slane %v1089_v50, %v8196_v10 }
 0x108   : > { %v8417_v14 = vpop.permute.xlu1 %1428 }
 0x109   : > { %1348 = vrot.lane.b32.xlu0 %v1343_v3, %s10026_s29  ;;  %v411_v3 = vrot.slane %v397_v53, %v8196_v10 }
 0x10b   : > { %v8414_v11 = vpop.permute.xlu0 %1543 }
 0x10c   : > { %v1545_v13 = vrot.slane %v8414_v11, 6 }
 0x10e   : > { %v1551_v15 = vmul.bf16 %v1545_v13, %v1481_v12  ;;  %v1547_v63 = vsel %vm1546_vm7, %v1545_v13, %v8414_v11  ;;  %v1841_v12 = vshrl.u32 %v7216_v58, 16 }
 0x110   : > { %v1575_v16 = vrot.slane %v1551_v15, %v8196_v10  ;;  %v1849_v15 = vshrl.u32 %v7217_v59, 16 }
 0x112   : > { %1580 = vrot.lane.b32.xlu0 %v1575_v16, %s10022_s30  ;;  %v8423_v17 = vpop.permute.xlu1 %1661  ;;  %v1857_v16 = vshrl.u32 %v7218_v61, 16  ;;  %v1850_v28 = vpack.i.b16 %v1849_v15, %v1849_v15  ;;  %v1201_v61 = vrot.slane %v8411_v5, 6  ;;  %v1430_v15 = vrot.slane %v8417_v14, 6 }
 0x114   : > { %v1858_v11 = vpack.i.b16 %v1857_v16, %v1857_v16  ;;  %v1855_v34 = vrot.slane %v1850_v28, %v8192_v8  ;;  %v439_v16 = vld [vmem:[#allocation2 + $0x8] sm:$0x3]  ;;  %v1432_v28 = vsel %vm10028_vm14, %v1430_v15, %v8417_v14  ;;  %vm1472_vm14 = vcmask 72704  }
 0x117   : > { %v8425_v18 = vpop.permute.xlu0 %505 }
 0x118   : > { %v507_v13 = vrot.slane %v8425_v18, 6 }
 0x11a   : > { %v1979_v19 = vpop.permute.xlu1 %1978 }
 0x11b   : > { %v1980_v21 = vrot.slane %v1979_v19, 6 }
 0x11d   : > { %v1985_v23 = vmul.bf16 %v1980_v21, %v1916_v20  ;;  %v1981_v38 = vsel %vm10052_vm2, %v1980_v21, %v1979_v19  ;;  %v645_v19 = vrot.slane %v631_v57, %v8196_v10  ;;  %v864_v20 = vcombine.high %v860_v39, %v860_v39 }
 0x11e   : > { %v8447_v42 = vmul.bf16 %v1981_v38, %v8354_v22  ;;  %v1842_v21 = vpack.i.b16 %v1841_v12, %v1841_v12  ;;  %v972_v39 = vrot.slane %v8405_v62, 6  ;;  %v1202_v12 = vsel %vm549_vm12, %v1201_v61, %v8411_v5 }
 0x11f   : > { %v8427_v24 = vpop.permute.xlu0 %1776  ;;  %v2009_v26 = vrot.slane %v1985_v23, %v8196_v10  ;;  %v1865_v23 = vshrl.u32 %v7219_v1, 16  ;;  %v878_v36 = vrot.slane %v864_v20, %v8196_v10  ;;  %v513_v5 = vmul.bf16 %v507_v13, %v439_v16 }
 0x120   : > { %v1778_v27 = vrot.slane %v8427_v24, 6  ;;  %v1995_v47 = vrot.slane %v8447_v42, %v8196_v10  ;;  %v973_v55 = vsel %vm782_vm11, %v972_v39, %v8405_v62 }
 0x121   : > { %2014 = vrot.lane.b32.xlu1 %v2009_v26, %s10029_s18  ;;  %v1329_v26 = vrot.slane %v1318_v0, %v8196_v10  ;;  %v8534_v62 = vmul.bf16 %v973_v55, %v8435_v30 }
 0x122   : > { %v1784_v29 = vmul.bf16 %v1778_v27, %v1714_v25  ;;  %v1550_v25 = vmul.bf16 %v1547_v63, %v8435_v30 }
 0x123   : > { %v2208_v31 = vpop.permute.xlu1 %2207  ;;  %v994_v20 = vrot.slane %v8534_v62, %v8196_v10 }
 0x124   : > { %v2209_v35 = vrot.slane %v2208_v31, 6  ;;  %v1808_v37 = vrot.slane %v1784_v29, %v8196_v10  ;;  %v1780_v29 = vsel %vm10038_vm8, %v1778_v27, %v8427_v24  ;;  %v1561_v27 = vrot.slane %v1550_v25, %v8196_v10 }
 0x125   : > { %v1783_v24 = vmul.bf16 %v1780_v29, %v8435_v30  ;;  %v1554_v58 = vcombine.high %v1550_v25, %v1550_v25 }
 0x126   : > { %v2214_v40 = vmul.bf16 %v2209_v35, %v2145_v33  ;;  %1813 = vrot.lane.b32.xlu0 %v1808_v37, %s10024_s12  ;;  %v2210_v32 = vsel %vm1586_vm4, %v2209_v35, %v2208_v31  ;;  %v1847_v31 = vrot.slane %v1842_v21, %v8192_v8  ;;  %v1866_v33 = vpack.i.b16 %v1865_v23, %v1865_v23  ;;  %v672_v21 = vld [vmem:[#allocation2 + $0x8] sm:$0x3] }
 0x127   : > { %v8457_v46 = vmul.bf16 %v2210_v32, %v8354_v22  ;;  %v1863_v35 = vrot.slane %v1858_v11, %v8192_v8  ;;  %v740_v37 = vrot.slane %v8401_v60, 6  ;;  %v1794_v49 = vrot.slane %v1783_v24, %v8196_v10 }
 0x128   : > { %v2238_v43 = vrot.slane %v2214_v40, %v8196_v10  ;;  %v1871_v38 = vrot.slane %v1866_v33, %v8192_v8  ;;  %v1093_v40 = vcombine.high %v1089_v50, %v1089_v50  ;;  %v1876_v41 = vcombine.low %v1847_v31, %v1855_v34  ;;  %v904_v31 = vld [vmem:[#allocation2 + $0x8] sm:$0x3] }
 0x129   : > { %v2224_v51 = vrot.slane %v8457_v46, %v8196_v10  ;;  %v742_v32 = vsel %vm741_vm10, %v740_v37, %v8401_v60  ;;  %v8519_v60 = vpop.permute.xlu0 %2094  ;;  %v1568_v63 = vrot.slane %v1554_v58, %v8196_v10  ;;  %v1787_v1 = vcombine.high %v1783_v24, %v1783_v24 }
 0x12a   : > { %2243 = vrot.lane.b32.xlu1 %v2238_v43, %s10070_s7  ;;  %419 = vrot.lane.b32.xlu0 %v404_v44, %s10031_s15  ;;  %v509_v43 = vsel %vm508_vm9, %v507_v13, %v8425_v18  ;;  %v1877_v44 = vcombine.low %v1863_v35, %v1871_v38  ;;  %v1884_v45 = vrot.slane %v1876_v41, %v8196_v10  ;;  %v1663_v11 = vrot.slane %v8423_v17, 6 }
 0x12b   : > { %v1107_v50 = vrot.slane %v1093_v40, %v8196_v10  ;;  %v8522_v54 = vmul.bf16 %v742_v32, %v8435_v30  ;;  %v8549_v23 = vmul.bf16 %v1202_v12, %v8435_v30  ;;  %v746_v29 = vmul.bf16 %v740_v37, %v672_v21  ;;  %v1133_v37 = vld [vmem:[#allocation2 + $0x8] sm:$0x3]  ;;  %v2028_v32 = vld [vmem:[#allocation2 + $0xa] sm:$0x3] }
 0x12c   : > { %v8563_v18 = vmul.bf16 %v1432_v28, %v8435_v30  ;;  %v531_v34 = vcombine.low %v513_v5, %v513_v5  ;;  %v1665_v14 = vsel %vm10039_vm15, %v1663_v11, %v8423_v17  ;;  %v977_v35 = vmul.bf16 %v972_v39, %v904_v31 }
 0x12d   : > { %v1223_v13 = vrot.slane %v8549_v23, %v8196_v10  ;;  %v1206_v17 = vmul.bf16 %v1201_v61, %v1133_v37 }
 0x12e   : > { %2010 = vrot.lane.b32.xlu1 %v1995_v47, %s10029_s18  ;;  %653 = vrot.lane.b32.xlu0 %v638_v48, %s10036_s20  ;;  %v1891_v47 = vrot.slane %v1877_v44, %v8196_v10  ;;  %v8513_v48 = vmul.bf16 %v8435_v30, %v509_v43  ;;  %v1453_v38 = vrot.slane %v8563_v18, %v8196_v10  ;;  %v2324_v44 = vpop.permute.xlu0 %2323 }
 0x12f   : > { %v538_v24 = vrot.slane %v531_v34, %v8196_v10  ;;  %v995_v40 = vcombine.low %v977_v35, %v977_v35 }
 0x130   : > { %v1892_v53 = vcombine.low %v1884_v45, %v1891_v47  ;;  %v530_v56 = vrot.slane %v8513_v48, %v8196_v10  ;;  %v1362_v45 = vld [vmem:[#allocation2 + $0x8] sm:$0x3]  ;;  %v1224_v47 = vcombine.low %v1206_v17, %v1206_v17 }
 0x131   : > { %v1002_v39 = vrot.slane %v995_v40, %v8196_v10  ;;  %v980_v40 = vcombine.low %v8534_v62, %v8534_v62  ;;  %v1209_v62 = vcombine.low %v8549_v23, %v8549_v23  ;;  %v1439_v23 = vcombine.low %v8563_v18, %v8563_v18 }
 0x132   : > { %2239 = vrot.lane.b32.xlu1 %v2224_v51, %s10070_s7  ;;  %886 = vrot.lane.b32.xlu0 %v871_v52, %s10042_s10  ;;  %v1322_v51 = vcombine.high %v1318_v0, %v1318_v0  ;;  %v1827_v52 = vld [vmem:[#allocation2 + $0x2] sm:$0xff]  ;;  %v2096_v0 = vrot.slane %v8519_v60, 6  ;;  %v1231_v55 = vrot.slane %v1224_v47, %v8196_v10 }
 0x133   : > { %v1894_v59 = vmul.bf16 %v1892_v53, %v1827_v52  ;;  %v2217_v53 = vcombine.high %v8457_v46, %v8457_v46  ;;  %v1446_v18 = vrot.slane %v1439_v23, %v8196_v10 }
 0x134   : > { %v1336_v57 = vrot.slane %v1322_v51, %v8196_v10  ;;  %v2101_v51 = vmul.bf16 %v2096_v0, %v2028_v32  ;;  %v987_v32 = vrot.slane %v980_v40, %v8196_v10 }
 0x135   : > { %7221 = vst.sshfl [vmem:[#allocation4 + $0x68] sm:$0xf0 pattern:$0x76325410] %v1894_v59  ;;  %v2231_v58 = vrot.slane %v2217_v53, %v8196_v10 }
 0x136   : > { %1115 = vrot.lane.b32.xlu0 %v1100_v2, %s10046_s27  ;;  %421 = vrot.lane.b32.xlu1 %v411_v3, %s10031_s15  ;;  %v1896_v2 = vcombine.low %v1894_v59, %v1894_v59  ;;  %v763_v3 = vrot.slane %v8522_v54, %v8196_v10  ;;  %v2119_v59 = vcombine.low %v2101_v51, %v2101_v51 }
 0x138   : > { %7220 = vst.sshfl [vmem:[#allocation4 + $0x60] sm:$0xf0 pattern:$0x76325410] %v1896_v2 }
 0x13a   : > { %1344 = vrot.lane.b32.xlu0 %v1329_v26, %s10026_s29  ;;  %655 = vrot.lane.b32.xlu1 %v645_v19, %s10036_s20  ;;  %v2097_v19 = vsel %vm10033_vm13, %v2096_v0, %v8519_v60  ;;  %v1801_v26 = vrot.slane %v1787_v1, %v8196_v10  ;;  %v1595_v60 = vld [vmem:[#allocation2 + $0x8] sm:$0x3]  ;;  %v8597_v0 = vpop.permute.xlu1 %2436  ;;  %v2126_v1 = vrot.slane %v2119_v59, %v8196_v10  ;;  %vm428_vm13 = vcmask 1043456  }
 0x13b   : > { %v8554_v25 = vmul.bf16 %v2097_v19, %v8354_v22 }
 0x13d   : > { %v2118_v33 = vrot.slane %v8554_v25, %v8196_v10 }
 0x13e   : > { %1576 = vrot.lane.b32.xlu0 %v1561_v27, %s10022_s30  ;;  %888 = vrot.lane.b32.xlu1 %v878_v36, %s10042_s10  ;;  %v8574_v36 = vmul.bf16 %v1665_v14, %v8435_v30  ;;  %v764_v27 = vcombine.low %v746_v29, %v746_v29  ;;  %v1988_v30 = vcombine.high %v8447_v42, %v8447_v42  ;;  %v2553_v42 = vpop.permute.xlu0 %2552 }
 0x13f   : > { %v2554_v5 = vrot.slane %v2553_v42, 6  ;;  %v749_v14 = vcombine.low %v8522_v54, %v8522_v54 }
 0x140   : > { %v1686_v41 = vrot.slane %v8574_v36, %v8196_v10  ;;  %v771_v43 = vrot.slane %v764_v27, %v8196_v10  ;;  %v2002_v52 = vrot.slane %v1988_v30, %v8196_v10  ;;  %v2486_v27 = vld [vmem:[#allocation2 + $0xa] sm:$0x3]  ;;  %v1672_v59 = vcombine.low %v8574_v36, %v8574_v36 }
 0x141   : > { %v756_v54 = vrot.slane %v749_v14, %v8196_v10 }
 0x142   : > { %1809 = vrot.lane.b32.xlu0 %v1794_v49, %s10024_s12  ;;  %1117 = vrot.lane.b32.xlu1 %v1107_v50, %s10046_s27  ;;  %v2325_v49 = vrot.slane %v2324_v44, 6  ;;  %v1436_v50 = vmul.bf16 %v1430_v15, %v1362_v45  ;;  %v8604_v2 = vpop.permute.xlu0 %2781  ;;  %v2104_v15 = vcombine.low %v8554_v25, %v8554_v25  ;;  %v516_v25 = vcombine.low %v8513_v48, %v8513_v48  ;;  %v8635_v48 = vpop.permute.xlu1 %2665 }
 0x143   : > { %v2667_v17 = vrot.slane %v8635_v48, 6 }
 0x144   : > { %v1454_v61 = vcombine.low %v1436_v50, %v1436_v50  ;;  %v523_v34 = vrot.slane %v516_v25, %v8196_v10 }
 0x145   : > { %v2668_v45 = vsel %vm623_vm1, %v2667_v17, %v8635_v48 }
 0x146   : > { %541 = vrot.lane.b32.xlu0 %v530_v56, %s10034_s8  ;;  %1346 = vrot.lane.b32.xlu1 %v1336_v57, %s10026_s29  ;;  %s10073_s29 = smov 7   ;;  %v2326_v56 = vsel %vm1472_vm14, %v2325_v49, %v2324_v44  ;;  %v1669_v57 = vmul.bf16 %v1663_v11, %v1595_v60  ;;  %v1461_v12 = vrot.slane %v1454_v61, %v8196_v10  ;;  %v2783_v44 = vrot.slane %v8604_v2, 6 }
 0x147   : > { %v8602_v46 = vmul.bf16 %v2326_v56, %v8354_v22  ;;  %v8623_v11 = vpop.permute.xlu0 %3010  ;;  %v8669_v47 = vmul.bf16 %v2668_v45, %v8354_v22 }
 0x148   : > { %v1687_v16 = vcombine.low %v1669_v57, %v1669_v57  ;;  %v2784_v51 = vsel %vm741_vm10, %v2783_v44, %v8604_v2  ;;  %v2715_v57 = vld [vmem:[#allocation2 + $0xa] sm:$0x3] }
 0x149   : > { %v2788_v61 = vmul.bf16 %v2783_v44, %v2715_v57  ;;  %v2603_v44 = vld [vmem:[#allocation2 + $0xa] sm:$0x3] }
 0x14a   : > { %774 = vrot.lane.b32.xlu0 %v763_v3, %s10040_s11  ;;  %1578 = vrot.lane.b32.xlu1 %v1568_v63, %s10022_s30  ;;  %s10071_s30 = smov 121   ;;  %v2257_v3 = vld [vmem:[#allocation2 + $0xa] sm:$0x3]  ;;  %v2438_v63 = vrot.slane %v8597_v0, 6  ;;  %v1694_v28 = vrot.slane %v1687_v16, %v8196_v10 }
 0x14b   : > { %v2330_v19 = vmul.bf16 %v2325_v49, %v2257_v3 }
 0x14c   : > { %v2439_v21 = vsel %vm389_vm0, %v2438_v63, %v8597_v0 }
 0x14d   : > { %v8628_v29 = vmul.bf16 %v2439_v21, %v8354_v22 }
 0x14e   : > { %1005 = vrot.lane.b32.xlu0 %v994_v20, %s10044_s19  ;;  %1811 = vrot.lane.b32.xlu1 %v1801_v26, %s10024_s12  ;;  %s10072_s12 = smov 9   ;;  %v2333_v20 = vcombine.low %v8602_v46, %v8602_v46  ;;  %v2111_v26 = vrot.slane %v2104_v15, %v8196_v10  ;;  %v1679_v15 = vrot.slane %v1672_v59, %v8196_v10 }
 0x150   : > { %v2340_v31 = vrot.slane %v2333_v20, %v8196_v10  ;;  %v8677_v53 = vpop.permute.xlu1 %2894  ;;  %v2806_v20 = vcombine.low %v2788_v61, %v2788_v61 }
 0x152   : > { %1234 = vrot.lane.b32.xlu0 %v1223_v13, %s10048_s16  ;;  %2129 = vrot.lane.b32.xlu1 %v2118_v33, %s10071_s30  ;;  %v2348_v13 = vcombine.low %v2330_v19, %v2330_v19  ;;  %v2555_v33 = vsel %vm508_vm9, %v2554_v5, %v2553_v42  ;;  %v8680_v42 = vmul.bf16 %v2784_v51, %v8354_v22 }
 0x153   : > { %v8640_v35 = vmul.bf16 %v2555_v33, %v8354_v22  ;;  %v2813_v25 = vrot.slane %v2806_v20, %v8196_v10  ;;  %v2944_v33 = vld [vmem:[#allocation2 + $0xa] sm:$0x3] }
 0x154   : > { %v2355_v37 = vrot.slane %v2348_v13, %v8196_v10  ;;  %v2791_v3 = vcombine.low %v8680_v42, %v8680_v42 }
 0x155   : > { %v2562_v30 = vcombine.low %v8640_v35, %v8640_v35  ;;  %v8724_v13 = vpop.permute.xlu1 %3123 }
 0x156   : > { %1464 = vrot.lane.b32.xlu0 %v1453_v38, %s10072_s12  ;;  %543 = vrot.lane.b32.xlu1 %v538_v24, %s10034_s8  ;;  %v2446_v38 = vcombine.high %v8628_v29, %v8628_v29  ;;  %v8645_v24 = vpop.permute.xlu0 %3239  ;;  %v2798_v19 = vrot.slane %v2791_v3, %v8196_v10  ;;  %v3125_v14 = vrot.slane %v8724_v13, 6 }
 0x157   : > { %v2569_v49 = vrot.slane %v2562_v30, %v8196_v10  ;;  %v3241_v0 = vrot.slane %v8645_v24, 6  ;;  %v2576_v30 = vrot.slane %v8640_v35, %v8196_v10  ;;  %v2682_v35 = vrot.slane %v8669_v47, %v8196_v10 }
 0x159   : > { %v3242_v45 = vsel %vm549_vm12, %v3241_v0, %v8645_v24 }
 0x15a   : > { %1697 = vrot.lane.b32.xlu0 %v1686_v41, %s10073_s29  ;;  %776 = vrot.lane.b32.xlu1 %v771_v43, %s10040_s11  ;;  %v2559_v41 = vmul.bf16 %v2554_v5, %v2486_v27  ;;  %v2460_v43 = vrot.slane %v2446_v38, %v8196_v10  ;;  %v2347_v5 = vrot.slane %v8602_v46, %v8196_v10 }
 0x15b   : > { %v8766_v51 = vmul.bf16 %v3242_v45, %v8354_v22 }
 0x15c   : > { %v2577_v50 = vcombine.low %v2559_v41, %v2559_v41 }
 0x15e   : > { %2012 = vrot.lane.b32.xlu0 %v2002_v52, %s10029_s18  ;;  %1007 = vrot.lane.b32.xlu1 %v1002_v39, %s10044_s19  ;;  %s10074_s18 = smov 119   ;;  %v8664_v39 = vpop.permute.xlu0 %423  ;;  %v1216_v52 = vrot.slane %v1209_v62, %v8196_v10  ;;  %v2584_v60 = vrot.slane %v2577_v50, %v8196_v10  ;;  %v2672_v50 = vmul.bf16 %v2667_v17, %v2603_v44 }
 0x15f   : > { %v3249_v17 = vcombine.low %v8766_v51, %v8766_v51 }
 0x160   : > { %v2696_v57 = vrot.slane %v2672_v50, %v8196_v10 }
 0x162   : > { %2241 = vrot.lane.b32.xlu0 %v2231_v58, %s10070_s7  ;;  %1236 = vrot.lane.b32.xlu1 %v1231_v55, %s10048_s16  ;;  %v2675_v55 = vcombine.high %v8669_v47, %v8669_v47  ;;  %v8687_v56 = vpop.permute.xlu0 %657  ;;  %v2896_v58 = vrot.slane %v8677_v53, 6 }
 0x164   : > { %v2689_v2 = vrot.slane %v2675_v55, %v8196_v10 }
 0x166   : > { %2131 = vrot.lane.b32.xlu0 %v2126_v1, %s10071_s30  ;;  %1466 = vrot.lane.b32.xlu1 %v1461_v12, %s10072_s12  ;;  %v3012_v1 = vrot.slane %v8623_v11, 6  ;;  %v2897_v12 = vsel %vm856_vm3, %v2896_v58, %v8677_v53 }
 0x167   : > { %v8709_v16 = vmul.bf16 %v2897_v12, %v8354_v22  ;;  %v2805_v12 = vrot.slane %v8680_v42, %v8196_v10 }
 0x168   : > { %v8704_v36 = vpop.permute.xlu0 %890  ;;  %v3013_v21 = vsel %vm782_vm11, %v3012_v1, %v8623_v11 }
 0x169   : > { %v2904_v11 = vcombine.high %v8709_v16, %v8709_v16 }
 0x16a   : > { %2127 = vrot.lane.b32.xlu0 %v2111_v26, %s10071_s30  ;;  %1699 = vrot.lane.b32.xlu1 %v1694_v28, %s10073_s29  ;;  %v2374_v26 = vld [vmem:[#allocation2 + $0xa] sm:$0x3]  ;;  %v8717_v28 = vmul.bf16 %v3013_v21, %v8354_v22 }
 0x16b   : > { %v2443_v46 = vmul.bf16 %v2438_v63, %v2374_v26  ;;  %v2918_v38 = vrot.slane %v2904_v11, %v8196_v10  ;;  %v3126_v63 = vsel %vm663_vm5, %v3125_v14, %v8724_v13  ;;  %v2911_v26 = vrot.slane %v8709_v16, %v8196_v10 }
 0x16c   : > { %v3020_v27 = vcombine.low %v8717_v28, %v8717_v28  ;;  %v3034_v16 = vrot.slane %v8717_v28, %v8196_v10 }
 0x16e   : > { %2356 = vrot.lane.b32.xlu0 %v2340_v31, %s10074_s18  ;;  %539 = vrot.lane.b32.xlu1 %v523_v34, %s10034_s8  ;;  %v2453_v34 = vrot.slane %v8628_v29, %v8196_v10  ;;  %v3027_v29 = vrot.slane %v3020_v27, %v8196_v10 }
 0x171   : > { %v8722_v31 = vpop.permute.xlu0 %1119 }
 0x172   : > { %2360 = vrot.lane.b32.xlu0 %v2355_v37, %s10074_s18  ;;  %772 = vrot.lane.b32.xlu1 %v756_v54, %s10040_s11  ;;  %v3017_v37 = vmul.bf16 %v3012_v1, %v2944_v33  ;;  %v2467_v54 = vrot.slane %v2443_v46, %v8196_v10  ;;  %v3256_v1 = vrot.slane %v3249_v17, %v8196_v10  ;;  %v427_v46 = vrot.slane %v8664_v39, 4 }
 0x174   : > { %v3035_v41 = vcombine.low %v3017_v37, %v3017_v37 }
 0x176   : > { %2470 = vrot.lane.b32.xlu0 %v2460_v43, %s10031_s15  ;;  %1003 = vrot.lane.b32.xlu1 %v987_v32, %s10044_s19  ;;  %v8750_v43 = vmul.bf16 %v3126_v63, %v8354_v22  ;;  %v8756_v32 = vpop.permute.xlu1 %3352 }
 0x177   : > { %v3354_v23 = vrot.slane %v8756_v32, 6 }
 0x178   : > { %v3133_v24 = vcombine.high %v8750_v43, %v8750_v43  ;;  %v3140_v39 = vrot.slane %v8750_v43, %v8196_v10 }
 0x17a   : > { %2585 = vrot.lane.b32.xlu0 %v2569_v49, %s10034_s8  ;;  %1232 = vrot.lane.b32.xlu1 %v1216_v52, %s10048_s16  ;;  %v3042_v49 = vrot.slane %v3035_v41, %v8196_v10  ;;  %v3173_v52 = vld [vmem:[#allocation2 + $0xa] sm:$0x3]  ;;  %v3147_v47 = vrot.slane %v3133_v24, %v8196_v10 }
 0x17b   : > { %v8739_v40 = vpop.permute.xlu0 %1348  ;;  %v3246_v48 = vmul.bf16 %v3241_v0, %v3173_v52 }
 0x17d   : > { %v3264_v59 = vcombine.low %v3246_v48, %v3246_v48 }
 0x17e   : > { %2589 = vrot.lane.b32.xlu0 %v2584_v60, %s10034_s8  ;;  %1462 = vrot.lane.b32.xlu1 %v1446_v18, %s10072_s12  ;;  %v3355_v18 = vsel %vm430_vm6, %v3354_v23, %v8756_v32 }
 0x17f   : > { %v8790_v61 = vmul.bf16 %v3355_v18, %v8354_v22 }
 0x181   : > { %v3362_v22 = vcombine.high %v8790_v61, %v8790_v61 }
 0x182   : > { %2699 = vrot.lane.b32.xlu0 %v2689_v2, %s10036_s20  ;;  %1695 = vrot.lane.b32.xlu1 %v1679_v15, %s10073_s29  ;;  %v2832_v15 = vld [vmem:[#allocation2 + $0xa] sm:$0x3] }
 0x183   : > { %v3376_v53 = vrot.slane %v3362_v22, %v8196_v10 }
 0x184   : > { %v8760_v62 = vpop.permute.xlu0 %1580 }
 0x186   : > { %2814 = vrot.lane.b32.xlu0 %v2798_v19, %s10040_s11  ;;  %2358 = vrot.lane.b32.xlu1 %v2347_v5, %s10074_s18  ;;  %v2901_v19 = vmul.bf16 %v2896_v58, %v2832_v15  ;;  %v3271_v5 = vrot.slane %v3264_v59, %v8196_v10 }
 0x188   : > { %v2925_v58 = vrot.slane %v2901_v19, %v8196_v10 }
 0x18a   : > { %2818 = vrot.lane.b32.xlu0 %v2813_v25, %s10040_s11  ;;  %2468 = vrot.lane.b32.xlu1 %v2453_v34, %s10031_s15  ;;  %v3061_v34 = vld [vmem:[#allocation2 + $0xa] sm:$0x3] }
 0x18b   : > { %v3130_v0 = vmul.bf16 %v3125_v14, %v3061_v34 }
 0x18d   : > { %v3154_v43 = vrot.slane %v3130_v0, %v8196_v10 }
 0x18e   : > { %2928 = vrot.lane.b32.xlu0 %v2918_v38, %s10042_s10  ;;  %2472 = vrot.lane.b32.xlu1 %v2467_v54, %s10031_s15  ;;  %s10075_s15 = smov 55  }
 0x192   : > { %3043 = vrot.lane.b32.xlu0 %v3027_v29, %s10044_s19  ;;  %2587 = vrot.lane.b32.xlu1 %v2576_v30, %s10034_s8  ;;  %v661_v30 = vrot.slane %v8687_v56, 4  ;;  %v894_v56 = vrot.slane %v8704_v36, 4  ;;  %v1123_v36 = vrot.slane %v8722_v31, 4  ;;  %s10081_s8 = smov 72  }
 0x193   : > { %v8775_v60 = vpop.permute.xlu1 %2014 }
 0x196   : > { %3047 = vrot.lane.b32.xlu0 %v3042_v49, %s10044_s19  ;;  %2697 = vrot.lane.b32.xlu1 %v2682_v35, %s10036_s20 }
 0x198   : > { %v8779_v55 = vpop.permute.xlu0 %1813 }
 0x19a   : > { %3157 = vrot.lane.b32.xlu0 %v3147_v47, %s10046_s27  ;;  %2701 = vrot.lane.b32.xlu1 %v2696_v57, %s10036_s20  ;;  %v3263_v57 = vrot.slane %v8766_v51, %v8196_v10  ;;  %s10078_s20 = smov 71  }
 0x19c   : > { %v8792_v2 = vpop.permute.xlu1 %2243  ;;  %v420_v3 = vpop.permute.xlu0 %419 }
 0x19d   : > { %v425_v37 = vrot.slane %v420_v3, 4 }
 0x19e   : > { %3272 = vrot.lane.b32.xlu0 %v3256_v1, %s10048_s16  ;;  %2816 = vrot.lane.b32.xlu1 %v2805_v12, %s10040_s11  ;;  %v3290_v12 = vld [vmem:[#allocation2 + $0xa] sm:$0x3] }
 0x19f   : > { %v3359_v51 = vmul.bf16 %v3354_v23, %v3290_v12 }
 0x1a0   : > { %v8803_v20 = vpop.permute.xlu1 %2010  ;;  %v654_v21 = vpop.permute.xlu0 %653 }
 0x1a1   : > { %v659_v44 = vrot.slane %v654_v21, 4 }
 0x1a2   : > { %3276 = vrot.lane.b32.xlu0 %v3271_v5, %s10048_s16  ;;  %2926 = vrot.lane.b32.xlu1 %v2911_v26, %s10042_s10  ;;  %v3369_v5 = vrot.slane %v8790_v61, %v8196_v10 }
 0x1a4   : > { %v8810_v42 = vpop.permute.xlu1 %2239  ;;  %v887_v25 = vpop.permute.xlu0 %886 }
 0x1a5   : > { %v892_v52 = vrot.slane %v887_v25, 4 }
 0x1a6   : > { %3386 = vrot.lane.b32.xlu0 %v3376_v53, %s10075_s15  ;;  %2930 = vrot.lane.b32.xlu1 %v2925_v58, %s10042_s10  ;;  %v1352_v58 = vrot.slane %v8739_v40, 4  ;;  %v1584_v40 = vrot.slane %v8760_v62, 4 }
 0x1a8   : > { %v1116_v11 = vpop.permute.xlu0 %1115  ;;  %v422_v33 = vpop.permute.xlu1 %421 }
 0x1a9   : > { %v426_v38 = vrot.slane %v422_v33, 4  ;;  %v1121_v15 = vrot.slane %v1116_v11, 4 }
 0x1aa   : > { %3045 = vrot.lane.b32.xlu1 %v3034_v16, %s10044_s19 }
 0x1ab   : > { %v429_v27 = vsel %vm428_vm13, %v425_v37, %v426_v38  ;;  %v432_v54 = vsel %vm428_vm13, %v426_v38, %v427_v46  ;;  %v3383_v37 = vrot.slane %v3359_v51, %v8196_v10 }
 0x1ac   : > { %v431_v63 = vsel %vm430_vm6, %v420_v3, %v429_v27  ;;  %v433_v29 = vsel %vm430_vm6, %v422_v33, %v432_v54  ;;  %v1345_v41 = vpop.permute.xlu0 %1344  ;;  %v656_v28 = vpop.permute.xlu1 %655 }
 0x1ad   : > { %436 = vst [vmem:[#allocation4] sm:$0x33] %v431_v63  ;;  %437 = vst [vmem:[#allocation4 + $0x8] sm:$0x33] %v433_v29  ;;  %v660_v45 = vrot.slane %v656_v28, 4  ;;  %v1350_v33 = vrot.slane %v1345_v41, 4 }
 0x1ae   : > { %3155 = vrot.lane.b32.xlu1 %v3140_v39, %s10046_s27  ;;  %v1817_v63 = vrot.slane %v8779_v55, 4  ;;  %v2018_v29 = vrot.slane %v8775_v60, 4 }
 0x1af   : > { %v662_v13 = vsel %vm428_vm13, %v659_v44, %v660_v45  ;;  %v665_v14 = vsel %vm428_vm13, %v660_v45, %v661_v30  ;;  %v2247_v30 = vrot.slane %v8792_v2, 4  ;;  %v2016_v44 = vrot.slane %v8803_v20, 4 }
 0x1b0   : > { %v664_v49 = vsel %vm663_vm5, %v654_v21, %v662_v13  ;;  %v666_v50 = vsel %vm663_vm5, %v656_v28, %v665_v14  ;;  %v1577_v35 = vpop.permute.xlu0 %1576  ;;  %v889_v24 = vpop.permute.xlu1 %888  ;;  %v2245_v14 = vrot.slane %v8810_v42, 4 }
 0x1b1   : > { %669 = vst [vmem:[#allocation4 + $0x10] sm:$0x33] %v664_v49  ;;  %670 = vst [vmem:[#allocation4 + $0x18] sm:$0x33] %v666_v50  ;;  %v893_v48 = vrot.slane %v889_v24, 4  ;;  %v1582_v38 = vrot.slane %v1577_v35, 4 }
 0x1b2   : > { %3159 = vrot.lane.b32.xlu1 %v3154_v43, %s10046_s27  ;;  %v3430_v43 = vld [vmem:[%s10076_s2] sm:$0xf]  ;;  %s10090_s2 = smov 64  }
 0x1b3   : > { %v895_v17 = vsel %vm428_vm13, %v892_v52, %v893_v48  ;;  %v897_v47 = vsel %vm428_vm13, %v893_v48, %v894_v56  ;;  %v3704_v56 = vld [vmem:[#allocation8] sm:$0x11]  ;;  %v3705_v52 = vld [vmem:[#allocation8 + $0x8] sm:$0x11]  ;;  %3433 = vperm.xlu0 %7535, %v3430_v43  }
 0x1b4   : > { %v896_v18 = vsel %vm856_vm3, %v887_v25, %v895_v17  ;;  %v898_v59 = vsel %vm856_vm3, %v889_v24, %v897_v47  ;;  %v1810_v3 = vpop.permute.xlu0 %1809  ;;  %v1118_v1 = vpop.permute.xlu1 %1117 }
 0x1b5   : > { %901 = vst [vmem:[#allocation4 + $0x20] sm:$0x33] %v896_v18  ;;  %902 = vst [vmem:[#allocation4 + $0x28] sm:$0x33] %v898_v59  ;;  %v1122_v19 = vrot.slane %v1118_v1, 4  ;;  %v1815_v45 = vrot.slane %v1810_v3, 4  ;;  %v7308_v18 = vcombine.low %v3704_v56, %v3704_v56  ;;  %v7309_v59 = vcombine.high %v3704_v56, %v3704_v56 }
 0x1b6   : > { %3274 = vrot.lane.b32.xlu1 %v3263_v57, %s10048_s16 }
 0x1b7   : > { %v1124_v22 = vsel %vm428_vm13, %v1121_v15, %v1122_v19  ;;  %v1126_v21 = vsel %vm428_vm13, %v1122_v19, %v1123_v36  ;;  %v3817_v36 = vld [vmem:[#allocation8 + $0x8] sm:$0x11]  ;;  %v7310_v19 = vcombine.low %v3705_v52, %v3705_v52 }
 0x1b8   : > { %v1125_v26 = vsel %vm623_vm1, %v1116_v11, %v1124_v22  ;;  %v1127_v31 = vsel %vm623_vm1, %v1118_v1, %v1126_v21  ;;  %v8853_v25 = vpop.permute.xlu0 %541  ;;  %v1347_v53 = vpop.permute.xlu1 %1346  ;;  %v3816_v1 = vld [vmem:[#allocation8] sm:$0x11]  ;;  %v7311_v22 = vcombine.high %v3705_v52, %v3705_v52  ;;  %v3724_v21 = vpack.i.b16 %v7309_v59, %v7309_v59 }
 0x1b9   : > { %1130 = vst [vmem:[#allocation4 + $0x30] sm:$0x33] %v1125_v26  ;;  %1131 = vst [vmem:[#allocation4 + $0x38] sm:$0x33] %v1127_v31  ;;  %v1351_v16 = vrot.slane %v1347_v53, 4  ;;  %v546_v55 = vrot.slane %v8853_v25, 4  ;;  %v7312_v51 = vcombine.low %v3816_v1, %v3816_v1  ;;  %v3731_v26 = vpack.i.b16 %v7310_v19, %v7310_v19 }
 0x1ba   : > { %3384 = vrot.lane.b32.xlu1 %v3369_v5, %s10075_s15  ;;  %v7313_v5 = vcombine.high %v3816_v1, %v3816_v1  ;;  %v3738_v31 = vpack.i.b16 %v7311_v22, %v7311_v22 }
 0x1bb   : > { %v1353_v32 = vsel %vm428_vm13, %v1350_v33, %v1351_v16  ;;  %v1355_v23 = vsel %vm428_vm13, %v1351_v16, %v1352_v58  ;;  %v7315_v58 = vcombine.high %v3817_v36, %v3817_v36 }
 0x1bc   : > { %v1354_v61 = vsel %vm389_vm0, %v1345_v41, %v1353_v32  ;;  %v1356_v11 = vsel %vm389_vm0, %v1347_v53, %v1355_v23  ;;  %v8861_v46 = vpop.permute.xlu0 %774  ;;  %v1579_v34 = vpop.permute.xlu1 %1578  ;;  %v7314_v53 = vcombine.low %v3817_v36, %v3817_v36  ;;  %v3729_v23 = vrot.slane %v3724_v21, %v8188_v6 }
 0x1bd   : > { %1359 = vst [vmem:[#allocation4 + $0x40] sm:$0x33] %v1354_v61  ;;  %1360 = vst [vmem:[#allocation4 + $0x48] sm:$0x33] %v1356_v11  ;;  %v1583_v27 = vrot.slane %v1579_v34, 4  ;;  %v779_v49 = vrot.slane %v8861_v46, 4 }
 0x1be   : > { %3388 = vrot.lane.b32.xlu1 %v3383_v37, %s10075_s15  ;;  %v3829_v61 = vshrl.u32 %v7312_v51, 16  ;;  %v3837_v11 = vshrl.u32 %v7313_v5, 16 }
 0x1bf   : > { %v1585_v54 = vsel %vm428_vm13, %v1582_v38, %v1583_v27  ;;  %v1588_v0 = vsel %vm428_vm13, %v1583_v27, %v1584_v40  ;;  %v3736_v38 = vrot.slane %v3731_v26, %v8188_v6  ;;  %v3743_v27 = vrot.slane %v3738_v31, %v8188_v6 }
 0x1c0   : > { %v1587_v41 = vsel %vm1586_vm4, %v1577_v35, %v1585_v54  ;;  %v1589_v28 = vsel %vm1586_vm4, %v1579_v34, %v1588_v0  ;;  %v8872_v39 = vpop.permute.xlu0 %1005  ;;  %v1812_v62 = vpop.permute.xlu1 %1811  ;;  %v3933_v34 = vld [vmem:[#allocation8] sm:$0x22]  ;;  %v3830_v0 = vpack.i.b16 %v3829_v61, %v3829_v61 }
 0x1c1   : > { %1592 = vst [vmem:[#allocation4 + $0x50] sm:$0x33] %v1587_v41  ;;  %1593 = vst [vmem:[#allocation4 + $0x58] sm:$0x33] %v1589_v28  ;;  %v1816_v13 = vrot.slane %v1812_v62, 4  ;;  %v1010_v50 = vrot.slane %v8872_v39, 4 }
 0x1c2   : > { %v3845_v41 = vshrl.u32 %v7314_v53, 16  ;;  %v4045_v53 = vld [vmem:[#allocation8] sm:$0x22] }
 0x1c3   : > { %v1818_v35 = vsel %vm428_vm13, %v1815_v45, %v1816_v13  ;;  %v1821_v24 = vsel %vm428_vm13, %v1816_v13, %v1817_v63  ;;  %v3838_v63 = vpack.i.b16 %v3837_v11, %v3837_v11  ;;  %v3853_v45 = vshrl.u32 %v7315_v58, 16  ;;  %v3934_v13 = vld [vmem:[#allocation8 + $0x8] sm:$0x22] }
 0x1c4   : > { %v1820_v48 = vsel %vm10052_vm2, %v1810_v3, %v1818_v35  ;;  %v1822_v17 = vsel %vm10052_vm2, %v1812_v62, %v1821_v24  ;;  %v8887_v47 = vpop.permute.xlu0 %1234  ;;  %v8889_v57 = vpop.permute.xlu1 %2129  ;;  %v3717_v3 = vpack.i.b16 %v7308_v18, %v7308_v18  ;;  %v3749_v62 = vcombine.low %v3736_v38, %v3743_v27 }
 0x1c5   : > { %1825 = vst [vmem:[#allocation4 + $0x60] sm:$0x33] %v1820_v48  ;;  %1826 = vst [vmem:[#allocation4 + $0x68] sm:$0x33] %v1822_v17  ;;  %v1239_v12 = vrot.slane %v8887_v47, 4  ;;  %v2134_v15 = vrot.slane %v8889_v57, 4  ;;  %v7316_v35 = vcombine.low %v3933_v34, %v3933_v34  ;;  %v3835_v48 = vrot.slane %v3830_v0, %v8188_v6 }
 0x1c6   : > { %v3722_v32 = vrot.slane %v3717_v3, %v8188_v6  ;;  %v3843_v17 = vrot.slane %v3838_v63, %v8188_v6  ;;  %v3763_v1 = vrot.slane %v3749_v62, %v8196_v10  ;;  %v3846_v36 = vpack.i.b16 %v3845_v41, %v3845_v41 }
 0x1c7   : > { %v3854_v19 = vpack.i.b16 %v3853_v45, %v3853_v45  ;;  %v7317_v3 = vcombine.high %v3933_v34, %v3933_v34  ;;  %v7318_v21 = vcombine.low %v3934_v13, %v3934_v13  ;;  %v7319_v31 = vcombine.high %v3934_v13, %v3934_v13 }
 0x1c8   : > { %v8893_v33 = vpop.permute.xlu0 %1464  ;;  %v544_v16 = vpop.permute.xlu1 %543  ;;  %v3748_v54 = vcombine.low %v3722_v32, %v3729_v23  ;;  %v3864_v22 = vcombine.low %v3835_v48, %v3843_v17  ;;  %v3851_v26 = vrot.slane %v3846_v36, %v8188_v6  ;;  %v3946_v11 = vpack.i.b16 %v7316_v35, %v7316_v35  ;;  %v4046_v35 = vld [vmem:[#allocation8 + $0x8] sm:$0x22] }
 0x1c9   : > { %v1469_v37 = vrot.slane %v8893_v33, 4  ;;  %v547_v40 = vrot.slane %v544_v16, 4  ;;  %v3859_v23 = vrot.slane %v3854_v19, %v8188_v6  ;;  %v3953_v38 = vpack.i.b16 %v7317_v3, %v7317_v3 }
 0x1ca   : > { %v3756_v52 = vrot.slane %v3748_v54, %v8196_v10  ;;  %v3872_v61 = vrot.slane %v3864_v22, %v8196_v10  ;;  %v3960_v27 = vpack.i.b16 %v7318_v21, %v7318_v21  ;;  %v3951_v0 = vrot.slane %v3946_v11, %v8190_v7 }
 0x1cb   : > { %v551_v28 = vsel %vm428_vm13, %v546_v55, %v547_v40  ;;  %v3865_v54 = vcombine.low %v3851_v26, %v3859_v23  ;;  %v3967_v63 = vpack.i.b16 %v7319_v31, %v7319_v31  ;;  %v7320_v41 = vcombine.low %v4045_v53, %v4045_v53  ;;  %v4162_v26 = vld [vmem:[#allocation8] sm:$0x44] }
 0x1cc   : > { %v552_v24 = vsel %vm549_vm12, %v8853_v25, %v551_v28  ;;  %v8905_v43 = vpop.permute.xlu0 %1697  ;;  %v777_v56 = vpop.permute.xlu1 %776  ;;  %v3764_v5 = vcombine.low %v3756_v52, %v3763_v1  ;;  %v3958_v13 = vrot.slane %v3953_v38, %v8190_v7  ;;  %v7321_v19 = vcombine.high %v4045_v53, %v4045_v53 }
 0x1cd   : > { %556 = vst [vmem:[#allocation4 + $0x8] sm:$0xcc] %v552_v24  ;;  %v1702_v18 = vrot.slane %v8905_v43, 4  ;;  %v780_v59 = vrot.slane %v777_v56, 4  ;;  %v3879_v60 = vrot.slane %v3865_v54, %v8196_v10  ;;  %v3972_v1 = vrot.slane %v3967_v63, %v8190_v7 }
 0x1ce   : > { %3765 = vrot.lane.b32.xlu1 %v3764_v5, %s10075_s15  ;;  %v7322_v22 = vcombine.low %v4046_v35, %v4046_v35  ;;  %v7323_v11 = vcombine.high %v4046_v35, %v4046_v35 }
 0x1cf   : > { %v784_v51 = vsel %vm428_vm13, %v779_v49, %v780_v59  ;;  %v3965_v59 = vrot.slane %v3960_v27, %v8190_v7  ;;  %v3880_v36 = vcombine.low %v3872_v61, %v3879_v60  ;;  %v7324_v27 = vcombine.low %v4162_v26, %v4162_v26 }
 0x1d0   : > { %v785_v58 = vsel %vm782_vm11, %v8861_v46, %v784_v51  ;;  %v2013_v16 = vpop.permute.xlu0 %2012  ;;  %v1008_v32 = vpop.permute.xlu1 %1007  ;;  %v4074_v38 = vshrl.u32 %v7322_v22, 16 }
 0x1d1   : > { %789 = vst [vmem:[#allocation4 + $0x18] sm:$0xcc] %v785_v58  ;;  %v2017_v34 = vrot.slane %v2013_v16, 4  ;;  %v1011_v40 = vrot.slane %v1008_v32, 4  ;;  %v3978_v5 = vcombine.low %v3965_v59, %v3972_v1  ;;  %v7325_v59 = vcombine.high %v4162_v26, %v4162_v26 }
 0x1d2   : > { %3881 = vrot.lane.b32.xlu1 %v3880_v36, %s10048_s16  ;;  %s10088_s16 = smov 57  }
 0x1d3   : > { %v2019_v28 = vsel %vm428_vm13, %v2016_v44, %v2017_v34  ;;  %v2021_v62 = vsel %vm428_vm13, %v2017_v34, %v2018_v29  ;;  %v1014_v45 = vsel %vm428_vm13, %v1010_v50, %v1011_v40  ;;  %v4058_v34 = vshrl.u32 %v7320_v41, 16 }
 0x1d4   : > { %v2020_v24 = vsel %vm10038_vm8, %v8803_v20, %v2019_v28  ;;  %v2022_v56 = vsel %vm10038_vm8, %v2013_v16, %v2021_v62  ;;  %v1015_v52 = vsel %vm741_vm10, %v8872_v39, %v1014_v45  ;;  %v2242_v44 = vpop.permute.xlu0 %2241  ;;  %v1237_v48 = vpop.permute.xlu1 %1236  ;;  %v3977_v20 = vcombine.low %v3951_v0, %v3958_v13  ;;  %v4163_v62 = vld [vmem:[#allocation8 + $0x8] sm:$0x44]  ;;  %v4503_v39 = vld [vmem:[#allocation8] sm:$0x88] }
 0x1d5   : > { %2025 = vst [vmem:[#allocation4 + $0x70] sm:$0x33] %v2020_v24  ;;  %2026 = vst [vmem:[#allocation4 + $0x78] sm:$0x33] %v2022_v56  ;;  %v2246_v29 = vrot.slane %v2242_v44, 4  ;;  %v1240_v17 = vrot.slane %v1237_v48, 4  ;;  %v4059_v24 = vpack.i.b16 %v4058_v34, %v4058_v34  ;;  %v4075_v48 = vpack.i.b16 %v4074_v38, %v4074_v38 }
 0x1d6   : > { %1019 = vst [vmem:[#allocation4 + $0x28] sm:$0xcc] %v1015_v52  ;;  %v4066_v40 = vshrl.u32 %v7321_v19, 16  ;;  %v4082_v28 = vshrl.u32 %v7323_v11, 16  ;;  %v7326_v1 = vcombine.low %v4163_v62, %v4163_v62  ;;  %vm10077_vm8 = vcmask 56320  }
 0x1d7   : > { %v2248_v3 = vsel %vm428_vm13, %v2245_v14, %v2246_v29  ;;  %v2250_v21 = vsel %vm428_vm13, %v2246_v29, %v2247_v30  ;;  %v1243_v51 = vsel %vm428_vm13, %v1239_v12, %v1240_v17  ;;  %v3985_v30 = vrot.slane %v3977_v20, %v8196_v10  ;;  %v4275_v34 = vld [vmem:[#allocation8 + $0x8] sm:$0x44] }
 0x1d8   : > { %v2249_v31 = vsel %vm1546_vm7, %v8810_v42, %v2248_v3  ;;  %v2251_v53 = vsel %vm1546_vm7, %v2242_v44, %v2250_v21  ;;  %v1244_v58 = vsel %vm508_vm9, %v8887_v47, %v1243_v51  ;;  %v2132_v16 = vpop.permute.xlu0 %2131  ;;  %v1467_v14 = vpop.permute.xlu1 %1466  ;;  %v7642_v32 = vld [vmem:[#allocation4 + $0xc] ss:$16 sps:$4 sm:$0xff]   ;;  %v7644_v2 = vld [vmem:[#allocation4 + $0x8] ss:$16 sps:$4 sm:$0xff]   ;;  %v3992_v42 = vrot.slane %v3978_v5, %v8196_v10  ;;  %v4274_v3 = vld [vmem:[#allocation8] sm:$0x44] }
 0x1d9   : > { %2254 = vst [vmem:[#allocation4 + $0x80] sm:$0x33] %v2249_v31  ;;  %2255 = vst [vmem:[#allocation4 + $0x88] sm:$0x33] %v2251_v53  ;;  %v2135_v23 = vrot.slane %v2132_v16, 4  ;;  %v1470_v61 = vrot.slane %v1467_v14, 4  ;;  %3630 = vmatprep.subr.bf16.mxu1 %v7642_v32  ;;  %v4067_v56 = vpack.i.b16 %v4066_v40, %v4066_v40  ;;  %v4083_v60 = vpack.i.b16 %v4082_v28, %v4082_v28 }
 0x1da   : > { %1248 = vst [vmem:[#allocation4 + $0x38] sm:$0xcc] %v1244_v58  ;;  %3631 = vmatpush1.bf16.msra.mxu1 %v7644_v2  ;;  %v3993_v63 = vcombine.low %v3985_v30, %v3992_v42  ;;  %v4064_v29 = vrot.slane %v4059_v24, %v8190_v7  ;;  %v4080_v19 = vrot.slane %v4075_v48, %v8190_v7  ;;  %v4391_v24 = vld [vmem:[#allocation8] sm:$0x88]  ;;  %v4392_v48 = vld [vmem:[#allocation8 + $0x8] sm:$0x88] }
 0x1db   : > { %v2138_v54 = vsel %vm428_vm13, %v2134_v15, %v2135_v23  ;;  %v1474_v0 = vsel %vm428_vm13, %v1469_v37, %v1470_v61  ;;  %v4072_v17 = vrot.slane %v4067_v56, %v8190_v7  ;;  %v4088_v22 = vrot.slane %v4083_v60, %v8190_v7 }
 0x1dc   : > { %v2139_v45 = vsel %vm10039_vm15, %v8889_v57, %v2138_v54  ;;  %v1475_v41 = vsel %vm1472_vm14, %v8893_v33, %v1474_v0  ;;  %v2128_v13 = vpop.permute.xlu0 %2127  ;;  %v1700_v35 = vpop.permute.xlu1 %1699  ;;  %3994 = vrot.lane.b32.xlu0 %v3993_v63, %s10046_s27  ;;  %v7327_v53 = vcombine.high %v4163_v62, %v4163_v62  ;;  %v4175_v14 = vpack.i.b16 %v7324_v27, %v7324_v27  ;;  %s10085_s27 = smov 8  }
 0x1dd   : > { %2143 = vst [vmem:[#allocation4 + $0x78] sm:$0xcc] %v2139_v45  ;;  %1479 = vst [vmem:[#allocation4 + $0x48] sm:$0xcc] %v1475_v41  ;;  %v2133_v52 = vrot.slane %v2128_v13, 4  ;;  %v1703_v44 = vrot.slane %v1700_v35, 4  ;;  %v4094_v16 = vcombine.low %v4080_v19, %v4088_v22  ;;  %v4182_v2 = vpack.i.b16 %v7325_v59, %v7325_v59 }
 0x1de   : > { %v4189_v30 = vpack.i.b16 %v7326_v1, %v7326_v1  ;;  %v4196_v23 = vpack.i.b16 %v7327_v53, %v7327_v53  ;;  %v4180_v11 = vrot.slane %v4175_v14, %v8192_v8  ;;  %v7328_v40 = vcombine.low %v4274_v3, %v4274_v3 }
 0x1df   : > { %v2136_v36 = vsel %vm428_vm13, %v2133_v52, %v2134_v15  ;;  %v1707_v20 = vsel %vm428_vm13, %v1702_v18, %v1703_v44  ;;  %v4093_v15 = vcombine.low %v4064_v29, %v4072_v17  ;;  %v4108_v42 = vrot.slane %v4094_v16, %v8196_v10 }
 0x1e0   : > { %v2137_v21 = vsel %vm10039_vm15, %v2128_v13, %v2136_v36  ;;  %v1708_v51 = vsel %vm10077_vm8, %v8905_v43, %v1707_v20  ;;  %v8981_v5 = vpop.permute.xlu0 %2356  ;;  %v540_v26 = vpop.permute.xlu1 %539  ;;  %v4187_v0 = vrot.slane %v4182_v2, %v8192_v8  ;;  %v4194_v63 = vrot.slane %v4189_v30, %v8192_v8 }
 0x1e1   : > { %v7645_v57 = vld [vmem:[#allocation4 + $0x2c] ss:$16 sps:$4 sm:$0xff]   ;;  %v7647_v31 = vld [vmem:[#allocation4 + $0x28] ss:$16 sps:$4 sm:$0xff]   ;;  %2142 = vst [vmem:[#allocation4 + $0x70] sm:$0xcc] %v2137_v21  ;;  %v4101_v32 = vrot.slane %v4093_v15, %v8196_v10  ;;  %v4201_v25 = vrot.slane %v4196_v23, %v8192_v8  ;;  %v7329_v62 = vcombine.high %v4274_v3, %v4274_v3  ;;  %v7330_v13 = vcombine.low %v4275_v34, %v4275_v34 }
 0x1e2   : > { %1712 = vst [vmem:[#allocation4 + $0x58] sm:$0xcc] %v1708_v51  ;;  %v545_v58 = vrot.slane %v540_v26, 4  ;;  %3632 = vmatprep.subr.bf16.mxu1 %v7645_v57  ;;  %v4206_v45 = vcombine.low %v4180_v11, %v4187_v0  ;;  %v7331_v35 = vcombine.high %v4275_v34, %v4275_v34  ;;  %v4287_v52 = vshrl.u32 %v7328_v40, 16 }
 0x1e3   : > { %3633 = vmatpush1.bf16.msra.mxu1 %v7647_v31  ;;  %v4109_v28 = vcombine.low %v4101_v32, %v4108_v42  ;;  %v4207_v41 = vcombine.low %v4194_v63, %v4201_v25  ;;  %v4295_v44 = vshrl.u32 %v7329_v62, 16  ;;  %v4303_v19 = vshrl.u32 %v7330_v13, 16 }
 0x1e4   : > { %v548_v61 = vsel %vm428_vm13, %v545_v58, %v546_v55  ;;  %v8990_v27 = vpop.permute.xlu0 %2360  ;;  %v773_v54 = vpop.permute.xlu1 %772  ;;  %v4214_v36 = vrot.slane %v4206_v45, %v8196_v10  ;;  %v7332_v3 = vcombine.low %v4391_v24, %v4391_v24  ;;  %v7655_v21 = vld [vmem:[#allocation4 + $0x6c] ss:$16 sps:$4 sm:$0xff]   ;;  %v4311_v57 = vshrl.u32 %v7331_v35, 16  ;;  %v7661_v42 = vld [vmem:[#allocation4 + $0x68] ss:$16 sps:$4 sm:$0xff]  }
 0x1e5   : > { %v550_v38 = vsel %vm549_vm12, %v540_v26, %v548_v61  ;;  %v778_v55 = vrot.slane %v773_v54, 4  ;;  %4110 = vrot.lane.b32.xlu1 %v4109_v28, %s10044_s19  ;;  %v4221_v20 = vrot.slane %v4207_v41, %v8196_v10  ;;  %v4296_v22 = vpack.i.b16 %v4295_v44, %v4295_v44  ;;  %v4504_v28 = vld [vmem:[#allocation8 + $0x8] sm:$0x88]  ;;  %s10084_s19 = smov 1  }
 0x1e6   : > { %555 = vst [vmem:[#allocation4] sm:$0xcc] %v550_v38  ;;  %v4304_v26 = vpack.i.b16 %v4303_v19, %v4303_v19  ;;  %v7333_v31 = vcombine.high %v4391_v24, %v4391_v24  ;;  %v7334_v16 = vcombine.low %v4392_v48, %v4392_v48  ;;  %v4312_v23 = vpack.i.b16 %v4311_v57, %v4311_v57 }
 0x1e7   : > { %v781_v56 = vsel %vm428_vm13, %v778_v55, %v779_v49  ;;  %v4288_v49 = vpack.i.b16 %v4287_v52, %v4287_v52  ;;  %v4222_v51 = vcombine.low %v4214_v36, %v4221_v20  ;;  %v4301_v58 = vrot.slane %v4296_v22, %v8192_v8 }
 0x1e8   : > { %v783_v60 = vsel %vm782_vm11, %v773_v54, %v781_v56  ;;  %v9000_v29 = vpop.permute.xlu0 %2470  ;;  %v1004_v17 = vpop.permute.xlu1 %1003  ;;  %v4309_v30 = vrot.slane %v4304_v26, %v8192_v8  ;;  %v7335_v34 = vcombine.high %v4392_v48, %v4392_v48  ;;  %v4317_v40 = vrot.slane %v4312_v23, %v8192_v8 }
 0x1e9   : > { %v7648_v59 = vld [vmem:[#allocation4 + $0x4c] ss:$16 sps:$4 sm:$0xff]   ;;  %v7650_v1 = vld [vmem:[#allocation4 + $0x48] ss:$16 sps:$4 sm:$0xff]   ;;  %788 = vst [vmem:[#allocation4 + $0x10] sm:$0xcc] %v783_v60  ;;  %v4293_v53 = vrot.slane %v4288_v49, %v8192_v8  ;;  %4223 = vrot.lane.b32.xlu0 %v4222_v51, %s10042_s10  ;;  %v4404_v38 = vpack.i.b16 %v7332_v3, %v7332_v3  ;;  %v4411_v54 = vpack.i.b16 %v7333_v31, %v7333_v31 }
 0x1ea   : > { %v1009_v46 = vrot.slane %v1004_v17, 4  ;;  %3634 = vmatprep.subr.bf16.mxu1 %v7648_v59  ;;  %v4418_v0 = vpack.i.b16 %v7334_v16, %v7334_v16  ;;  %v4425_v55 = vpack.i.b16 %v7335_v34, %v7335_v34  ;;  %v7336_v62 = vcombine.low %v4503_v39, %v4503_v39  ;;  %v4620_v49 = vld [vmem:[#allocation8 + $0x10] sm:$0x11]  ;;  %s10083_s10 = smov 127  }
 0x1eb   : > { %3635 = vmatpush1.bf16.msra.mxu1 %v7650_v1  ;;  %v4322_v11 = vcombine.low %v4293_v53, %v4301_v58  ;;  %v4323_v56 = vcombine.low %v4309_v30, %v4317_v40  ;;  %v4409_v52 = vrot.slane %v4404_v38, %v8194_v9  ;;  %v4416_v47 = vrot.slane %v4411_v54, %v8194_v9 }
 0x1ec   : > { %v1012_v15 = vsel %vm428_vm13, %v1009_v46, %v1010_v50  ;;  %v9010_v32 = vpop.permute.xlu0 %2585  ;;  %v1233_v2 = vpop.permute.xlu1 %1232  ;;  %3636 = vmatprep.subr.bf16.mxu1 %v7655_v21  ;;  %v2362_v50 = vrot.slane %v8981_v5, 4  ;;  %v4423_v48 = vrot.slane %v4418_v0, %v8194_v9  ;;  %v4430_v60 = vrot.slane %v4425_v55, %v8194_v9 }
 0x1ed   : > { %v1013_v14 = vsel %vm741_vm10, %v1004_v17, %v1012_v15  ;;  %v1238_v61 = vrot.slane %v1233_v2, 4  ;;  %v4330_v25 = vrot.slane %v4322_v11, %v8196_v10  ;;  %v4337_v17 = vrot.slane %v4323_v56, %v8196_v10 }
 0x1ee   : > { %1018 = vst [vmem:[#allocation4 + $0x20] sm:$0xcc] %v1013_v14  ;;  %v4435_v59 = vcombine.low %v4409_v52, %v4416_v47  ;;  %v7337_v1 = vcombine.high %v4503_v39, %v4503_v39  ;;  %v7338_v36 = vcombine.low %v4504_v28, %v4504_v28  ;;  %v4436_v19 = vcombine.low %v4423_v48, %v4430_v60  ;;  %v4621_v14 = vld [vmem:[#allocation8 + $0x18] sm:$0x11]  ;;  %v4732_v47 = vld [vmem:[#allocation8 + $0x10] sm:$0x11] }
 0x1ef   : > { %v1241_v63 = vsel %vm428_vm13, %v1238_v61, %v1239_v12  ;;  %3637 = vmatpush1.bf16.msra.mxu1 %v7661_v42  ;;  %v2364_v12 = vrot.slane %v8990_v27, 4  ;;  %v7339_v46 = vcombine.high %v4504_v28, %v4504_v28  ;;  %v4516_v27 = vshrl.u32 %v7336_v62, 16 }
 0x1f0   : > { %v1242_v45 = vsel %vm508_vm9, %v1233_v2, %v1241_v63  ;;  %v9021_v41 = vpop.permute.xlu0 %2589  ;;  %v1463_v13 = vpop.permute.xlu1 %1462  ;;  %v7662_v35 = vld [vmem:[#allocation4 + $0x4] ss:$16 sps:$4 sm:$0xff]   ;;  %v7664_v24 = vld [vmem:[#allocation4] ss:$16 sps:$4 sm:$0xff]   ;;  %v4338_v51 = vcombine.low %v4330_v25, %v4337_v17  ;;  %v4443_v26 = vrot.slane %v4435_v59, %v8196_v10  ;;  %v4524_v57 = vshrl.u32 %v7337_v1, 16 }
 0x1f1   : > { %1247 = vst [vmem:[#allocation4 + $0x30] sm:$0xcc] %v1242_v45  ;;  %v1468_v44 = vrot.slane %v1463_v13, 4  ;;  %3589 = vmatprep.subr.bf16.mxu0 %v7662_v35  ;;  %v2475_v31 = vrot.slane %v9000_v29, 4  ;;  %v4517_v15 = vpack.i.b16 %v4516_v27, %v4516_v27  ;;  %v4532_v58 = vshrl.u32 %v7338_v36, 16 }
 0x1f2   : > { %3590 = vmatpush1.bf16.msra.mxu0 %v7664_v24  ;;  %4339 = vrot.lane.b32.xlu1 %v4338_v51, %s10040_s11  ;;  %v4525_v53 = vpack.i.b16 %v4524_v57, %v4524_v57  ;;  %v4540_v16 = vshrl.u32 %v7339_v46, 16  ;;  %v7340_v2 = vcombine.low %v4620_v49, %v4620_v49  ;;  %v7341_v61 = vcombine.high %v4620_v49, %v4620_v49  ;;  %v4733_v36 = vld [vmem:[#allocation8 + $0x18] sm:$0x11]  ;;  %s10082_s11 = smov 73  }
 0x1f3   : > { %v1471_v20 = vsel %vm428_vm13, %v1468_v44, %v1469_v37  ;;  %v4450_v37 = vrot.slane %v4436_v19, %v8196_v10  ;;  %v4522_v39 = vrot.slane %v4517_v15, %v8194_v9  ;;  %v4533_v0 = vpack.i.b16 %v4532_v58, %v4532_v58 }
 0x1f4   : > { %v1473_v22 = vsel %vm1472_vm14, %v1463_v13, %v1471_v20  ;;  %v9033_v3 = vpop.permute.xlu0 %2699  ;;  %v1696_v21 = vpop.permute.xlu1 %1695  ;;  %v4530_v54 = vrot.slane %v4525_v53, %v8194_v9  ;;  %v4541_v63 = vpack.i.b16 %v4540_v16, %v4540_v16  ;;  %v2591_v25 = vrot.slane %v9010_v32, 4 }
 0x1f5   : > { %1478 = vst [vmem:[#allocation4 + $0x40] sm:$0xcc] %v1473_v22  ;;  %v1701_v33 = vrot.slane %v1696_v21, 4  ;;  %v4451_v23 = vcombine.low %v4443_v26, %v4450_v37  ;;  %v7343_v55 = vcombine.high %v4621_v14, %v4621_v14  ;;  %v4538_v28 = vrot.slane %v4533_v0, %v8194_v9  ;;  %v4849_v26 = vld [vmem:[#allocation8 + $0x10] sm:$0x22] }
 0x1f6   : > { %v4546_v62 = vrot.slane %v4541_v63, %v8194_v9  ;;  %v4551_v45 = vcombine.low %v4522_v39, %v4530_v54  ;;  %v4633_v13 = vpack.i.b16 %v7340_v2, %v7340_v2  ;;  %v4640_v56 = vpack.i.b16 %v7341_v61, %v7341_v61  ;;  %v7671_v61 = vld [vmem:[#allocation4 + $0x64] ss:$16 sps:$4 sm:$0xff]  }
 0x1f7   : > { %v1704_v30 = vsel %vm428_vm13, %v1701_v33, %v1702_v18  ;;  %4452 = vrot.lane.b32.xlu0 %v4451_v23, %s10078_s20  ;;  %v7342_v18 = vcombine.low %v4621_v14, %v4621_v14  ;;  %v4654_v27 = vpack.i.b16 %v7343_v55, %v7343_v55  ;;  %v7344_v49 = vcombine.low %v4732_v47, %v4732_v47 }
 0x1f8   : > { %v1706_v42 = vsel %vm10077_vm8, %v1696_v21, %v1704_v30  ;;  %v9044_v11 = vpop.permute.xlu0 %2814  ;;  %v2359_v34 = vpop.permute.xlu1 %2358  ;;  %v7665_v40 = vld [vmem:[#allocation4 + $0x24] ss:$16 sps:$4 sm:$0xff]   ;;  %v7667_v38 = vld [vmem:[#allocation4 + $0x20] ss:$16 sps:$4 sm:$0xff]   ;;  %vm10079_vm8 = vcmask 973824   ;;  %v4552_v59 = vcombine.low %v4538_v28, %v4546_v62  ;;  %v4559_v1 = vrot.slane %v4551_v45, %v8196_v10 }
 0x1f9   : > { %1711 = vst [vmem:[#allocation4 + $0x50] sm:$0xcc] %v1706_v42  ;;  %v2363_v43 = vrot.slane %v2359_v34, 4  ;;  %3591 = vmatprep.subr.bf16.mxu0 %v7665_v40  ;;  %v4647_v52 = vpack.i.b16 %v7342_v18, %v7342_v18  ;;  %vm10080_vm15 = vmmov %vm10079_vm8  ;;  %v4638_v20 = vrot.slane %v4633_v13, %v8188_v6  ;;  %v4645_v19 = vrot.slane %v4640_v56, %v8188_v6  ;;  %v7673_v56 = vld [vmem:[#allocation4 + $0x60] ss:$16 sps:$4 sm:$0xff]  }
 0x1fa   : > { %3592 = vmatpush1.bf16.msra.mxu0 %v7667_v38  ;;  %v7345_v51 = vcombine.high %v4732_v47, %v4732_v47  ;;  %v4659_v16 = vrot.slane %v4654_v27, %v8188_v6  ;;  %v7347_v14 = vcombine.high %v4733_v36, %v4733_v36  ;;  %v2704_v2 = vrot.slane %v9033_v3, 4 }
 0x1fb   : > { %v2365_v35 = vsel %vm428_vm13, %v2362_v50, %v2363_v43  ;;  %v2367_v24 = vsel %vm428_vm13, %v2363_v43, %v2364_v12  ;;  %v2593_v50 = vrot.slane %v9021_v41, 4  ;;  %v4652_v46 = vrot.slane %v4647_v52, %v8188_v6  ;;  %v4850_v43 = vld [vmem:[#allocation8 + $0x18] sm:$0x22] }
 0x1fc   : > { %v2366_v44 = vsel %vm10079_vm8, %v8981_v5, %v2365_v35  ;;  %v2368_v48 = vsel %vm10080_vm15, %v2359_v34, %v2367_v24  ;;  %v9058_v60 = vpop.permute.xlu0 %2818  ;;  %v2469_v17 = vpop.permute.xlu1 %2468  ;;  %v4566_v5 = vrot.slane %v4552_v59, %v8196_v10  ;;  %v4664_v21 = vcombine.low %v4638_v20, %v4645_v19 }
 0x1fd   : > { %2371 = vst [vmem:[#allocation4 + $0x80] sm:$0xcc] %v2366_v44  ;;  %2372 = vst [vmem:[#allocation4 + $0x88] sm:$0xcc] %v2368_v48  ;;  %v2474_v12 = vrot.slane %v2469_v17, 4  ;;  %v7346_v41 = vcombine.low %v4733_v36, %v4733_v36  ;;  %v4745_v39 = vshrl.u32 %v7344_v49, 16  ;;  %v4665_v42 = vcombine.low %v4652_v46, %v4659_v16 }
 0x1fe   : > { %v4567_v58 = vcombine.low %v4559_v1, %v4566_v5  ;;  %v4672_v23 = vrot.slane %v4664_v21, %v8196_v10  ;;  %v4753_v34 = vshrl.u32 %v7345_v51, 16  ;;  %v4769_v38 = vshrl.u32 %v7347_v14, 16 }
 0x1ff   : > { %v2477_v22 = vsel %vm428_vm13, %v2474_v12, %v2475_v31  ;;  %v4761_v40 = vshrl.u32 %v7346_v41, 16  ;;  %v2820_v54 = vrot.slane %v9044_v11, 4  ;;  %v4746_v63 = vpack.i.b16 %v4745_v39, %v4745_v39 }
 0x200   : > { %v2478_v57 = vsel %vm430_vm6, %v2469_v17, %v2477_v22  ;;  %v9070_v33 = vpop.permute.xlu0 %2928  ;;  %v2473_v37 = vpop.permute.xlu1 %2472  ;;  %v7668_v15 = vld [vmem:[#allocation4 + $0x44] ss:$16 sps:$4 sm:$0xff]   ;;  %v7670_v53 = vld [vmem:[#allocation4 + $0x40] ss:$16 sps:$4 sm:$0xff]   ;;  %4568 = vrot.lane.b32.xlu1 %v4567_v58, %s10081_s8  ;;  %v7348_v18 = vcombine.low %v4849_v26, %v4849_v26  ;;  %v4679_v45 = vrot.slane %v4665_v42, %v8196_v10  ;;  %v4754_v13 = vpack.i.b16 %v4753_v34, %v4753_v34 }
 0x201   : > { %2483 = vst [vmem:[#allocation4 + $0x90] sm:$0x33] %v2478_v57  ;;  %v2476_v30 = vrot.slane %v2473_v37, 4  ;;  %3593 = vmatprep.subr.bf16.mxu0 %v7668_v15  ;;  %v4762_v35 = vpack.i.b16 %v4761_v40, %v4761_v40  ;;  %v4770_v52 = vpack.i.b16 %v4769_v38, %v4769_v38  ;;  %v7349_v47 = vcombine.high %v4849_v26, %v4849_v26  ;;  %v4961_v22 = vld [vmem:[#allocation8 + $0x10] sm:$0x22] }
 0x202   : > { %3594 = vmatpush1.bf16.msra.mxu0 %v7670_v53  ;;  %v4680_v44 = vcombine.low %v4672_v23, %v4679_v45  ;;  %v4759_v48 = vrot.slane %v4754_v13, %v8188_v6  ;;  %v7350_v17 = vcombine.low %v4850_v43, %v4850_v43  ;;  %v7351_v12 = vcombine.high %v4850_v43, %v4850_v43 }
 0x203   : > { %v2479_v0 = vsel %vm428_vm13, %v2475_v31, %v2476_v30  ;;  %3595 = vmatprep.subr.bf16.mxu0 %v7671_v61  ;;  %v4751_v31 = vrot.slane %v4746_v63, %v8188_v6  ;;  %v4775_v36 = vrot.slane %v4770_v52, %v8188_v6  ;;  %v4862_v49 = vpack.i.b16 %v7348_v18, %v7348_v18 }
 0x204   : > { %v2480_v55 = vsel %vm430_vm6, %v9000_v29, %v2479_v0  ;;  %v9082_v28 = vpop.permute.xlu0 %3043  ;;  %v2588_v62 = vpop.permute.xlu1 %2587  ;;  %v4767_v29 = vrot.slane %v4762_v35, %v8188_v6  ;;  %4681 = vrot.lane.b32.xlu0 %v4680_v44, %s10082_s11  ;;  %v4869_v51 = vpack.i.b16 %v7349_v47, %v7349_v47  ;;  %v4876_v26 = vpack.i.b16 %v7350_v17, %v7350_v17 }
 0x205   : > { %2484 = vst [vmem:[#allocation4 + $0x98] sm:$0x33] %v2480_v55  ;;  %v2592_v24 = vrot.slane %v2588_v62, 4  ;;  %v4780_v27 = vcombine.low %v4751_v31, %v4759_v48  ;;  %v4883_v57 = vpack.i.b16 %v7351_v12, %v7351_v12  ;;  %v7352_v58 = vcombine.low %v4961_v22, %v4961_v22  ;;  %v5078_v55 = vld [vmem:[#allocation8 + $0x10] sm:$0x44] }
 0x206   : > { %3596 = vmatpush1.bf16.msra.mxu0 %v7673_v56  ;;  %v4781_v21 = vcombine.low %v4767_v29, %v4775_v36  ;;  %v4874_v53 = vrot.slane %v4869_v51, %v8190_v7  ;;  %v4881_v23 = vrot.slane %v4876_v26, %v8190_v7  ;;  %v7353_v61 = vcombine.high %v4961_v22, %v4961_v22 }
 0x207   : > { %v2594_v59 = vsel %vm428_vm13, %v2591_v25, %v2592_v24  ;;  %v2596_v1 = vsel %vm428_vm13, %v2592_v24, %v2593_v50  ;;  %v2822_v25 = vrot.slane %v9058_v60, 4  ;;  %v4788_v41 = vrot.slane %v4780_v27, %v8196_v10  ;;  %v4962_v60 = vld [vmem:[#allocation8 + $0x18] sm:$0x22] }
 0x208   : > { %v2595_v20 = vsel %vm549_vm12, %v9010_v32, %v2594_v59  ;;  %v2597_v19 = vsel %vm549_vm12, %v2588_v62, %v2596_v1  ;;  %v9096_v5 = vpop.permute.xlu0 %3047  ;;  %v2698_v46 = vpop.permute.xlu1 %2697  ;;  %v4867_v32 = vrot.slane %v4862_v49, %v8190_v7  ;;  %v4795_v15 = vrot.slane %v4781_v21, %v8196_v10  ;;  %v5079_v21 = vld [vmem:[#allocation8 + $0x18] sm:$0x44] }
 0x209   : > { %2600 = vst [vmem:[#allocation4 + $0x90] sm:$0xcc] %v2595_v20  ;;  %2601 = vst [vmem:[#allocation4 + $0x98] sm:$0xcc] %v2597_v19  ;;  %v2703_v50 = vrot.slane %v2698_v46, 4  ;;  %v4888_v39 = vrot.slane %v4883_v57, %v8190_v7  ;;  %v2933_v42 = vrot.slane %v9070_v33, 4  ;;  %v7354_v63 = vcombine.low %v4962_v60, %v4962_v60 }
 0x20a   : > { %v4796_v40 = vcombine.low %v4788_v41, %v4795_v15  ;;  %v4893_v38 = vcombine.low %v4867_v32, %v4874_v53  ;;  %v7355_v43 = vcombine.high %v4962_v60, %v4962_v60  ;;  %v4974_v18 = vshrl.u32 %v7352_v58, 16 }
 0x20b   : > { %v2706_v37 = vsel %vm428_vm13, %v2703_v50, %v2704_v2  ;;  %v4894_v0 = vcombine.low %v4881_v23, %v4888_v39  ;;  %v3049_v62 = vrot.slane %v9082_v28, 4  ;;  %v4982_v35 = vshrl.u32 %v7353_v61, 16 }
 0x20c   : > { %v2707_v16 = vsel %vm663_vm5, %v2698_v46, %v2706_v37  ;;  %v9108_v14 = vpop.permute.xlu0 %3157  ;;  %v2702_v30 = vpop.permute.xlu1 %2701  ;;  %4797 = vrot.lane.b32.xlu1 %v4796_v40, %s10074_s18  ;;  %v4901_v13 = vrot.slane %v4893_v38, %v8196_v10  ;;  %v4975_v44 = vpack.i.b16 %v4974_v18, %v4974_v18  ;;  %v4990_v48 = vshrl.u32 %v7354_v63, 16 }
 0x20d   : > { %2712 = vst [vmem:[#allocation4 + $0xa0] sm:$0x33] %v2707_v16  ;;  %v2705_v34 = vrot.slane %v2702_v30, 4  ;;  %v4908_v47 = vrot.slane %v4894_v0, %v8196_v10  ;;  %v4983_v59 = vpack.i.b16 %v4982_v35, %v4982_v35  ;;  %v7356_v1 = vcombine.low %v5078_v55, %v5078_v55 }
 0x20e   : > { %v7357_v36 = vcombine.high %v5078_v55, %v5078_v55  ;;  %v4991_v19 = vpack.i.b16 %v4990_v48, %v4990_v48  ;;  %v4998_v46 = vshrl.u32 %v7355_v43, 16  ;;  %v3051_v27 = vrot.slane %v9096_v5, 4 }
 0x20f   : > { %v2708_v45 = vsel %vm428_vm13, %v2704_v2, %v2705_v34  ;;  %v4909_v20 = vcombine.low %v4901_v13, %v4908_v47  ;;  %v4988_v50 = vrot.slane %v4983_v59, %v8190_v7  ;;  %v3162_v51 = vrot.slane %v9108_v14, 4  ;;  %v5279_v34 = vld [vmem:[#allocation8 + $0x18] sm:$0x88] }
 0x210   : > { %v2709_v24 = vsel %vm663_vm5, %v9033_v3, %v2708_v45  ;;  %v9121_v56 = vpop.permute.xlu0 %3272  ;;  %v2817_v31 = vpop.permute.xlu1 %2816  ;;  %v7674_v52 = vld [vmem:[#allocation4 + $0x84] ss:$16 sps:$4 sm:$0xff]   ;;  %v7676_v17 = vld [vmem:[#allocation4 + $0x8c] ss:$16 sps:$4 sm:$0xff]   ;;  %v7678_v2 = vld [vmem:[#allocation4 + $0x80] ss:$16 sps:$4 sm:$0xff]   ;;  %v4980_v3 = vrot.slane %v4975_v44, %v8190_v7  ;;  %v4996_v15 = vrot.slane %v4991_v19, %v8190_v7  ;;  %v4999_v53 = vpack.i.b16 %v4998_v46, %v4998_v46 }
 0x211   : > { %2713 = vst [vmem:[#allocation4 + $0xa8] sm:$0x33] %v2709_v24  ;;  %v2821_v29 = vrot.slane %v2817_v31, 4  ;;  %3597 = vmatprep.subr.bf16.mxu0 %v7674_v52  ;;  %v7679_v12 = vld [vmem:[#allocation4 + $0x88] ss:$16 sps:$4 sm:$0xff]   ;;  %3638 = vmatprep.subr.bf16.mxu1 %v7676_v17  ;;  %v3278_v41 = vrot.slane %v9121_v56, 4  ;;  %v7358_v58 = vcombine.low %v5079_v21, %v5079_v21  ;;  %v7359_v16 = vcombine.high %v5079_v21, %v5079_v21 }
 0x212   : > { %3598 = vmatpush1.bf16.msra.mxu0 %v7678_v2  ;;  %3639 = vmatpush1.bf16.msra.mxu1 %v7679_v12  ;;  %v5009_v60 = vcombine.low %v4980_v3, %v4988_v50  ;;  %v5091_v30 = vpack.i.b16 %v7356_v1, %v7356_v1  ;;  %v5004_v61 = vrot.slane %v4999_v53, %v8190_v7  ;;  %v5390_v2 = vld [vmem:[#allocation8 + $0x10] sm:$0x88]  ;;  %v5391_v21 = vld [vmem:[#allocation8 + $0x18] sm:$0x88]  ;;  %vm10051_vm15 = vcmask 1045504  }
 0x213   : > { %v2823_v49 = vsel %vm428_vm13, %v2820_v54, %v2821_v29  ;;  %v2825_v22 = vsel %vm428_vm13, %v2821_v29, %v2822_v25  ;;  %4910 = vrot.lane.b32.xlu0 %v4909_v20, %s10070_s7  ;;  %v5278_v25 = vld [vmem:[#allocation8 + $0x10] sm:$0x88]  ;;  %v5105_v18 = vpack.i.b16 %v7358_v58, %v7358_v58  ;;  %v5112_v35 = vpack.i.b16 %v7359_v16, %v7359_v16 }
 0x214   : > { %v2824_v32 = vsel %vm782_vm11, %v9044_v11, %v2823_v49  ;;  %v2826_v26 = vsel %vm782_vm11, %v2817_v31, %v2825_v22  ;;  %v9136_v57 = vpop.permute.xlu0 %3276  ;;  %v2927_v54 = vpop.permute.xlu1 %2926  ;;  %v5098_v11 = vpack.i.b16 %v7357_v36, %v7357_v36  ;;  %v7366_v40 = vcombine.low %v5278_v25, %v5278_v25 }
 0x215   : > { %2829 = vst [vmem:[#allocation4 + $0xa0] sm:$0xcc] %v2824_v32  ;;  %2830 = vst [vmem:[#allocation4 + $0xa8] sm:$0xcc] %v2826_v26  ;;  %v2932_v37 = vrot.slane %v2927_v54, 4  ;;  %v3280_v23 = vrot.slane %v9136_v57, 4  ;;  %v5096_v63 = vrot.slane %v5091_v30, %v8192_v8  ;;  %v5010_v45 = vcombine.low %v4996_v15, %v5004_v61 }
 0x216   : > { %v5103_v43 = vrot.slane %v5098_v11, %v8192_v8  ;;  %v5017_v13 = vrot.slane %v5009_v60, %v8196_v10  ;;  %v5110_v24 = vrot.slane %v5105_v18, %v8192_v8  ;;  %v7367_v52 = vcombine.high %v5278_v25, %v5278_v25 }
 0x217   : > { %v2935_v39 = vsel %vm428_vm13, %v2932_v37, %v2933_v42  ;;  %v7368_v47 = vcombine.low %v5279_v34, %v5279_v34  ;;  %v5024_v48 = vrot.slane %v5010_v45, %v8196_v10  ;;  %v5117_v29 = vrot.slane %v5112_v35, %v8192_v8 }
 0x218   : > { %v2936_v38 = vsel %vm856_vm3, %v2927_v54, %v2935_v39  ;;  %v2931_v0 = vpop.permute.xlu1 %2930  ;;  %v5122_v31 = vcombine.low %v5096_v63, %v5103_v43  ;;  %v7369_v17 = vcombine.high %v5279_v34, %v5279_v34  ;;  %v5291_v12 = vpack.i.b16 %v7366_v40, %v7366_v40 }
 0x219   : > { %2941 = vst [vmem:[#allocation4 + $0xb0] sm:$0x33] %v2936_v38  ;;  %v2934_v55 = vrot.slane %v2931_v0, 4  ;;  %v5298_v20 = vpack.i.b16 %v7367_v52, %v7367_v52  ;;  %v5025_v19 = vcombine.low %v5017_v13, %v5024_v48  ;;  %v5123_v46 = vcombine.low %v5110_v24, %v5117_v29  ;;  %v5508_v0 = vld [vmem:[#allocation8 + $0x28] sm:$0x11] }
 0x21a   : > { %v5130_v36 = vrot.slane %v5122_v31, %v8196_v10  ;;  %v5305_v49 = vpack.i.b16 %v7368_v47, %v7368_v47  ;;  %v5312_v50 = vpack.i.b16 %v7369_v17, %v7369_v17  ;;  %v7370_v32 = vcombine.low %v5390_v2, %v5390_v2 }
 0x21b   : > { %v2937_v44 = vsel %vm428_vm13, %v2933_v42, %v2934_v55  ;;  %v5296_v42 = vrot.slane %v5291_v12, %v8194_v9  ;;  %v5303_v22 = vrot.slane %v5298_v20, %v8194_v9  ;;  %5026 = vrot.lane.b32.xlu1 %v5025_v19, %s10071_s30  ;;  %v5137_v54 = vrot.slane %v5123_v46, %v8196_v10  ;;  %v9186_v12 = vpop.permute.xlu0 %3386 }
 0x21c   : > { %v2938_v59 = vsel %vm856_vm3, %v9070_v33, %v2937_v44  ;;  %v3046_v1 = vpop.permute.xlu1 %3045  ;;  %v5310_v25 = vrot.slane %v5305_v49, %v8194_v9  ;;  %v5317_v60 = vrot.slane %v5312_v50, %v8194_v9  ;;  %v7371_v16 = vcombine.high %v5390_v2, %v5390_v2 }
 0x21d   : > { %2942 = vst [vmem:[#allocation4 + $0xb8] sm:$0x33] %v2938_v59  ;;  %v3050_v3 = vrot.slane %v3046_v1, 4  ;;  %v5322_v58 = vcombine.low %v5296_v42, %v5303_v22  ;;  %v7372_v30 = vcombine.low %v5391_v21, %v5391_v21  ;;  %v7373_v61 = vcombine.high %v5391_v21, %v5391_v21 }
 0x21e   : > { %v5323_v11 = vcombine.low %v5310_v25, %v5317_v60  ;;  %v5403_v34 = vshrl.u32 %v7370_v32, 16  ;;  %v5411_v40 = vshrl.u32 %v7371_v16, 16  ;;  %v7376_v29 = vcombine.low %v5508_v0, %v5508_v0 }
 0x21f   : > { %v3052_v33 = vsel %vm428_vm13, %v3049_v62, %v3050_v3  ;;  %v3054_v26 = vsel %vm428_vm13, %v3050_v3, %v3051_v27  ;;  %v5507_v62 = vld [vmem:[#allocation8 + $0x20] sm:$0x11]  ;;  %v5138_v27 = vcombine.low %v5130_v36, %v5137_v54  ;;  %v5330_v39 = vrot.slane %v5322_v58, %v8196_v10 }
 0x220   : > { %v3053_v37 = vsel %vm741_vm10, %v9082_v28, %v3052_v33  ;;  %v3055_v15 = vsel %vm741_vm10, %v3046_v1, %v3054_v26  ;;  %v3156_v53 = vpop.permute.xlu1 %3155  ;;  %v5419_v38 = vshrl.u32 %v7372_v30, 16  ;;  %v7374_v63 = vcombine.low %v5507_v62, %v5507_v62  ;;  %v5619_v36 = vld [vmem:[#allocation8 + $0x20] sm:$0x11] }
 0x221   : > { %3058 = vst [vmem:[#allocation4 + $0xb0] sm:$0xcc] %v3053_v37  ;;  %3059 = vst [vmem:[#allocation4 + $0xb8] sm:$0xcc] %v3055_v15  ;;  %v3161_v5 = vrot.slane %v3156_v53, 4  ;;  %5139 = vrot.lane.b32.xlu0 %v5138_v27, %s10083_s10  ;;  %v5337_v55 = vrot.slane %v5323_v11, %v8196_v10  ;;  %v5404_v45 = vpack.i.b16 %v5403_v34, %v5403_v34  ;;  %v5427_v13 = vshrl.u32 %v7373_v61, 16 }
 0x222   : > { %v5412_v24 = vpack.i.b16 %v5411_v40, %v5411_v40  ;;  %v5420_v31 = vpack.i.b16 %v5419_v38, %v5419_v38  ;;  %v7375_v52 = vcombine.high %v5507_v62, %v5507_v62  ;;  %v7377_v1 = vcombine.high %v5508_v0, %v5508_v0  ;;  %v5620_v62 = vld [vmem:[#allocation8 + $0x28] sm:$0x11] }
 0x223   : > { %v3164_v28 = vsel %vm428_vm13, %v3161_v5, %v3162_v51  ;;  %v5338_v47 = vcombine.low %v5330_v39, %v5337_v55  ;;  %v5409_v44 = vrot.slane %v5404_v45, %v8194_v9  ;;  %v5428_v48 = vpack.i.b16 %v5427_v13, %v5427_v13 }
 0x224   : > { %v3165_v43 = vsel %vm623_vm1, %v3156_v53, %v3164_v28  ;;  %v3160_v18 = vpop.permute.xlu1 %3159  ;;  %v5417_v2 = vrot.slane %v5412_v24, %v8194_v9  ;;  %v5425_v59 = vrot.slane %v5420_v31, %v8194_v9  ;;  %v5520_v49 = vpack.i.b16 %v7374_v63, %v7374_v63  ;;  %v5737_v24 = vld [vmem:[#allocation8 + $0x28] sm:$0x22] }
 0x225   : > { %3170 = vst [vmem:[#allocation4 + $0xc0] sm:$0x33] %v3165_v43  ;;  %v3163_v35 = vrot.slane %v3160_v18, 4  ;;  %5339 = vrot.lane.b32.xlu1 %v5338_v47, %s10084_s19  ;;  %v5433_v46 = vrot.slane %v5428_v48, %v8194_v9  ;;  %v5527_v42 = vpack.i.b16 %v7375_v52, %v7375_v52  ;;  %v5534_v32 = vpack.i.b16 %v7376_v29, %v7376_v29 }
 0x226   : > { %v5438_v21 = vcombine.low %v5409_v44, %v5417_v2  ;;  %v5541_v33 = vpack.i.b16 %v7377_v1, %v7377_v1  ;;  %v7378_v37 = vcombine.low %v5619_v36, %v5619_v36  ;;  %v3391_v15 = vrot.slane %v9186_v12, 4 }
 0x227   : > { %v3166_v17 = vsel %vm428_vm13, %v3162_v51, %v3163_v35  ;;  %v5439_v54 = vcombine.low %v5425_v59, %v5433_v46  ;;  %v5532_v25 = vrot.slane %v5527_v42, %v8188_v6  ;;  %v7379_v39 = vcombine.high %v5619_v36, %v5619_v36 }
 0x228   : > { %v3167_v20 = vsel %vm623_vm1, %v9108_v14, %v3166_v17  ;;  %v3275_v3 = vpop.permute.xlu1 %3274  ;;  %v7680_v19 = vld [vmem:[#allocation4 + $0xa4] ss:$16 sps:$4 sm:$0xff]   ;;  %v7682_v22 = vld [vmem:[#allocation4 + $0xac] ss:$16 sps:$4 sm:$0xff]   ;;  %v7684_v50 = vld [vmem:[#allocation4 + $0xa0] ss:$16 sps:$4 sm:$0xff]   ;;  %v5525_v14 = vrot.slane %v5520_v49, %v8188_v6  ;;  %v5446_v58 = vrot.slane %v5438_v21, %v8196_v10  ;;  %v7380_v34 = vcombine.low %v5620_v62, %v5620_v62 }
 0x229   : > { %3171 = vst [vmem:[#allocation4 + $0xc8] sm:$0x33] %v3167_v20  ;;  %v3279_v51 = vrot.slane %v3275_v3, 4  ;;  %3599 = vmatprep.subr.bf16.mxu0 %v7680_v19  ;;  %v7685_v26 = vld [vmem:[#allocation4 + $0xa8] ss:$16 sps:$4 sm:$0xff]   ;;  %3640 = vmatprep.subr.bf16.mxu1 %v7682_v22  ;;  %v5453_v30 = vrot.slane %v5439_v54, %v8196_v10  ;;  %v7381_v28 = vcombine.high %v5620_v62, %v5620_v62  ;;  %v5632_v40 = vshrl.u32 %v7378_v37, 16 }
 0x22a   : > { %3600 = vmatpush1.bf16.msra.mxu0 %v7684_v50  ;;  %3641 = vmatpush1.bf16.msra.mxu1 %v7685_v26  ;;  %v5551_v11 = vcombine.low %v5525_v14, %v5532_v25  ;;  %v5640_v43 = vshrl.u32 %v7379_v39, 16  ;;  %v5648_v13 = vshrl.u32 %v7380_v34, 16  ;;  %v7384_v20 = vcombine.low %v5737_v24, %v5737_v24  ;;  %v5965_v25 = vld [vmem:[#allocation8 + $0x20] sm:$0x44] }
 0x22b   : > { %v3281_v53 = vsel %vm428_vm13, %v3278_v41, %v3279_v51  ;;  %v3283_v60 = vsel %vm428_vm13, %v3279_v51, %v3280_v23  ;;  %v5539_v41 = vrot.slane %v5534_v32, %v8188_v6  ;;  %v5546_v23 = vrot.slane %v5541_v33, %v8188_v6  ;;  %v5849_v32 = vld [vmem:[#allocation8 + $0x28] sm:$0x22] }
 0x22c   : > { %v3282_v5 = vsel %vm508_vm9, %v9121_v56, %v3281_v53  ;;  %v3284_v27 = vsel %vm508_vm9, %v3275_v3, %v3283_v60  ;;  %v3385_v16 = vpop.permute.xlu1 %3384  ;;  %v5454_v61 = vcombine.low %v5446_v58, %v5453_v30  ;;  %v5736_v56 = vld [vmem:[#allocation8 + $0x20] sm:$0x22]  ;;  %v5559_v63 = vrot.slane %v5551_v11, %v8196_v10 }
 0x22d   : > { %3287 = vst [vmem:[#allocation4 + $0xc0] sm:$0xcc] %v3282_v5  ;;  %3288 = vst [vmem:[#allocation4 + $0xc8] sm:$0xcc] %v3284_v27  ;;  %v3390_v57 = vrot.slane %v3385_v16, 4  ;;  %v5552_v0 = vcombine.low %v5539_v41, %v5546_v23  ;;  %v5633_v45 = vpack.i.b16 %v5632_v40, %v5632_v40  ;;  %v5656_v35 = vshrl.u32 %v7381_v28, 16 }
 0x22e   : > { %5455 = vrot.lane.b32.xlu0 %v5454_v61, %s10073_s29  ;;  %v5641_v47 = vpack.i.b16 %v5640_v43, %v5640_v43  ;;  %v7382_v44 = vcombine.low %v5736_v56, %v5736_v56  ;;  %v5649_v29 = vpack.i.b16 %v5648_v13, %v5648_v13  ;;  %v7383_v2 = vcombine.high %v5736_v56, %v5736_v56  ;;  %v5848_v3 = vld [vmem:[#allocation8 + $0x20] sm:$0x22]  ;;  %v5966_v28 = vld [vmem:[#allocation8 + $0x28] sm:$0x44]  ;;  %v3401_v56 = vld [vmem:[%s10086_s1] sm:$0x3] }
 0x22f   : > { %v3393_v38 = vsel %vm428_vm13, %v3390_v57, %v3391_v15  ;;  %v5566_v52 = vrot.slane %v5552_v0, %v8196_v10  ;;  %v5638_v48 = vrot.slane %v5633_v45, %v8188_v6  ;;  %v5657_v17 = vpack.i.b16 %v5656_v35, %v5656_v35  ;;  %s10089_s1 = smov 63  }
 0x230   : > { %v3394_v18 = vsel %vm389_vm0, %v3385_v16, %v3393_v38  ;;  %v3389_v55 = vpop.permute.xlu1 %3388  ;;  %v5646_v36 = vrot.slane %v5641_v47, %v8188_v6  ;;  %v5654_v46 = vrot.slane %v5649_v29, %v8188_v6  ;;  %v7385_v42 = vcombine.high %v5737_v24, %v5737_v24 }
 0x231   : > { %3399 = vst [vmem:[#allocation4 + $0xd0] sm:$0x33] %v3394_v18  ;;  %v3392_v31 = vrot.slane %v3389_v55, 4  ;;  %v5567_v1 = vcombine.low %v5559_v63, %v5566_v52  ;;  %v5662_v49 = vrot.slane %v5657_v17, %v8188_v6  ;;  %v5749_v22 = vpack.i.b16 %v7382_v44, %v7382_v44  ;;  %v6077_v17 = vld [vmem:[#allocation8 + $0x20] sm:$0x44] }
 0x232   : > { %v5667_v51 = vcombine.low %v5638_v48, %v5646_v36  ;;  %v5756_v50 = vpack.i.b16 %v7383_v2, %v7383_v2  ;;  %v5763_v21 = vpack.i.b16 %v7384_v20, %v7384_v20  ;;  %v5770_v26 = vpack.i.b16 %v7385_v42, %v7385_v42 }
 0x233   : > { %v3395_v59 = vsel %vm428_vm13, %v3391_v15, %v3392_v31  ;;  %5568 = vrot.lane.b32.xlu1 %v5567_v1, %s10085_s27  ;;  %v5668_v33 = vcombine.low %v5654_v46, %v5662_v49  ;;  %v7386_v54 = vcombine.low %v5848_v3, %v5848_v3  ;;  %v7387_v14 = vcombine.high %v5848_v3, %v5848_v3  ;;  %v6078_v46 = vld [vmem:[#allocation8 + $0x28] sm:$0x44] }
 0x234   : > { %v3396_v19 = vsel %vm389_vm0, %v9186_v12, %v3395_v59  ;;  %v5675_v12 = vrot.slane %v5667_v51, %v8196_v10  ;;  %v5754_v37 = vrot.slane %v5749_v22, %v8190_v7  ;;  %v5761_v15 = vrot.slane %v5756_v50, %v8190_v7  ;;  %v6194_v50 = vld [vmem:[#allocation8 + $0x20] sm:$0x88] }
 0x235   : > { %3400 = vst [vmem:[#allocation4 + $0xd8] sm:$0x33] %v3396_v19  ;;  %v5768_v53 = vrot.slane %v5763_v21, %v8190_v7  ;;  %v5682_v58 = vrot.slane %v5668_v33, %v8196_v10  ;;  %v5775_v62 = vrot.slane %v5770_v26, %v8190_v7  ;;  %v7388_v5 = vcombine.low %v5849_v32, %v5849_v32 }
 0x236   : > { %v7389_v27 = vcombine.high %v5849_v32, %v5849_v32  ;;  %v5780_v30 = vcombine.low %v5754_v37, %v5761_v15  ;;  %v5861_v41 = vshrl.u32 %v7386_v54, 16  ;;  %v5869_v57 = vshrl.u32 %v7387_v14, 16  ;;  %v6195_v37 = vld [vmem:[#allocation8 + $0x28] sm:$0x88] }
 0x237   : > { %v7390_v23 = vcombine.low %v5965_v25, %v5965_v25  ;;  %v5683_v11 = vcombine.low %v5675_v12, %v5682_v58  ;;  %v5781_v39 = vcombine.low %v5768_v53, %v5775_v62  ;;  %v5877_v61 = vshrl.u32 %v7388_v5, 16 }
 0x238   : > { %v7686_v60 = vld [vmem:[#allocation4 + $0xc4] ss:$16 sps:$4 sm:$0x3f]   ;;  %v7688_v16 = vld [vmem:[#allocation4 + $0xc0] ss:$16 sps:$4 sm:$0x3f]   ;;  %v5788_v38 = vrot.slane %v5780_v30, %v8196_v10  ;;  %v5862_v0 = vpack.i.b16 %v5861_v41, %v5861_v41  ;;  %v5870_v63 = vpack.i.b16 %v5869_v57, %v5869_v57  ;;  %v7391_v31 = vcombine.high %v5965_v25, %v5965_v25 }
 0x239   : > { %7302 = vmatprep.subr.msk.bf16.mxu0 %vm10051_vm15, %v7686_v60  ;;  %v5885_v34 = vshrl.u32 %v7389_v27, 16  ;;  %v3578_v40 = vsel %vm10051_vm15, %v7688_v16, 0  ;;  %vm10050_vm8 = vcmask 883712   ;;  %5684 = vrot.lane.b32.xlu0 %v5683_v11, %s10072_s12  ;;  %v5795_v18 = vrot.slane %v5781_v39, %v8196_v10 }
 0x23a   : > { %3602 = vmatpush1.bf16.msra.mxu0 %v3578_v40  ;;  %v5878_v55 = vpack.i.b16 %v5877_v61, %v5877_v61  ;;  %v5867_v35 = vrot.slane %v5862_v0, %v8190_v7  ;;  %v5875_v24 = vrot.slane %v5870_v63, %v8190_v7  ;;  %v7392_v52 = vcombine.low %v5966_v28, %v5966_v28 }
 0x23b   : > { %v5886_v45 = vpack.i.b16 %v5885_v34, %v5885_v34  ;;  %v5796_v47 = vcombine.low %v5788_v38, %v5795_v18  ;;  %v7393_v29 = vcombine.high %v5966_v28, %v5966_v28  ;;  %v5978_v1 = vpack.i.b16 %v7390_v23, %v7390_v23  ;;  %v6306_v28 = vld [vmem:[#allocation8 + $0x20] sm:$0x88] }
 0x23c   : > { %v7689_v43 = vld [vmem:[#allocation4 + $0xcc] ss:$16 sps:$4 sm:$0x3f]   ;;  %v7691_v13 = vld [vmem:[#allocation4 + $0xc8] ss:$16 sps:$4 sm:$0x3f]   ;;  %v5883_v44 = vrot.slane %v5878_v55, %v8190_v7  ;;  %v5896_v59 = vcombine.low %v5867_v35, %v5875_v24  ;;  %v5985_v36 = vpack.i.b16 %v7391_v31, %v7391_v31  ;;  %v5992_v3 = vpack.i.b16 %v7392_v52, %v7392_v52 }
 0x23d   : > { %7304 = vmatprep.subr.msk.bf16.mxu1 %vm10051_vm15, %v7689_v43  ;;  %v5891_v48 = vrot.slane %v5886_v45, %v8190_v7  ;;  %7303 = vmatmul.mubr.msk.bf16.vlgmr.msra.gmra.mrb[0].mxu0 %vm10050_vm8, %v3401_v56  ;;  %v3584_v2 = vsel %vm10051_vm15, %v7691_v13, 0  ;;  %v5999_v19 = vpack.i.b16 %v7393_v29, %v7393_v29  ;;  %v5983_v42 = vrot.slane %v5978_v1, %v8192_v8  ;;  %v6307_v55 = vld [vmem:[#allocation8 + $0x28] sm:$0x88] }
 0x23e   : > { %3643 = vmatpush1.bf16.msra.mxu1 %v3584_v2  ;;  %5797 = vrot.lane.b32.xlu1 %v5796_v47, %s10075_s15  ;;  %v5904_v49 = vrot.slane %v5896_v59, %v8196_v10  ;;  %v5990_v51 = vrot.slane %v5985_v36, %v8192_v8  ;;  %v7394_v22 = vcombine.low %v6077_v17, %v6077_v17  ;;  %vm10094_vm15 = vcmask 990208  }
 0x23f   : > { %v5897_v20 = vcombine.low %v5883_v44, %v5891_v48  ;;  %6980 = vmatprep.mubr.bf16.mxu0 %v7975_v4  ;;  %v5997_v32 = vrot.slane %v5992_v3, %v8192_v8  ;;  %v6004_v33 = vrot.slane %v5999_v19, %v8192_v8  ;;  %v7395_v26 = vcombine.high %v6077_v17, %v6077_v17  ;;  %v6423_v48 = vld [vmem:[#allocation8 + $0x30] sm:$0x11]  ;;  %v6424_v19 = vld [vmem:[#allocation8 + $0x38] sm:$0x11] }
 0x240   : > { %v6009_v54 = vcombine.low %v5983_v42, %v5990_v51  ;;  %v7396_v14 = vcombine.low %v6078_v46, %v6078_v46  ;;  %v7397_v25 = vcombine.high %v6078_v46, %v6078_v46  ;;  %v6090_v12 = vshrl.u32 %v7394_v22, 16 }
 0x241   : > { %v5911_v21 = vrot.slane %v5897_v20, %v8196_v10  ;;  %7305 = vmatmul.mubr.msk.bf16.vlgmr.msra.gmra.mrb[0].mxu1 %vm10050_vm8, %v3401_v56  ;;  %v6010_v53 = vcombine.low %v5997_v32, %v6004_v33  ;;  %v6098_v60 = vshrl.u32 %v7395_v26, 16  ;;  %v7398_v58 = vcombine.low %v6194_v50, %v6194_v50 }
 0x242   : > { %7021 = vmatprep.mubr.bf16.mxu1 %v7975_v4  ;;  %v6017_v62 = vrot.slane %v6009_v54, %v8196_v10  ;;  %v6091_v5 = vpack.i.b16 %v6090_v12, %v6090_v12  ;;  %v6106_v27 = vshrl.u32 %v7396_v14, 16  ;;  %v6114_v16 = vshrl.u32 %v7397_v25, 16  ;;  %v6535_v25 = vld [vmem:[#allocation8 + $0x30] sm:$0x11] }
 0x243   : > { %v5912_v15 = vcombine.low %v5904_v49, %v5911_v21  ;;  %v6024_v30 = vrot.slane %v6010_v53, %v8196_v10  ;;  %v6099_v41 = vpack.i.b16 %v6098_v60, %v6098_v60  ;;  %v7399_v57 = vcombine.high %v6194_v50, %v6194_v50 }
 0x244   : > { %v7400_v23 = vcombine.low %v6195_v37, %v6195_v37  ;;  %v6096_v11 = vrot.slane %v6091_v5, %v8192_v8  ;;  %v6107_v39 = vpack.i.b16 %v6106_v27, %v6106_v27  ;;  %v6115_v61 = vpack.i.b16 %v6114_v16, %v6114_v16  ;;  %v6536_v27 = vld [vmem:[#allocation8 + $0x38] sm:$0x11] }
 0x245   : > { %5913 = vrot.lane.b32.xlu0 %v5912_v15, %s10087_s0  ;;  %v7401_v34 = vcombine.high %v6195_v37, %v6195_v37  ;;  %v6025_v40 = vcombine.low %v6017_v62, %v6024_v30  ;;  %v6104_v4 = vrot.slane %v6099_v41, %v8192_v8  ;;  %v6207_v56 = vpack.i.b16 %v7398_v58, %v7398_v58 }
 0x246   : > { %v6214_v38 = vpack.i.b16 %v7399_v57, %v7399_v57  ;;  %v6112_v0 = vrot.slane %v6107_v39, %v8192_v8  ;;  %v6120_v63 = vrot.slane %v6115_v61, %v8192_v8  ;;  %v6221_v43 = vpack.i.b16 %v7400_v23, %v7400_v23 }
 0x247   : > { %v6228_v18 = vpack.i.b16 %v7401_v34, %v7401_v34  ;;  %6026 = vrot.lane.b32.xlu1 %v6025_v40, %s10088_s16  ;;  %v6125_v45 = vcombine.low %v6096_v11, %v6104_v4  ;;  %v6212_v13 = vrot.slane %v6207_v56, %v8194_v9  ;;  %v7402_v24 = vcombine.low %v6306_v28, %v6306_v28  ;;  %v6652_v34 = vld [vmem:[#allocation8 + $0x30] sm:$0x22] }
 0x248   : > { %v6219_v35 = vrot.slane %v6214_v38, %v8194_v9  ;;  %v6126_v31 = vcombine.low %v6112_v0, %v6120_v63  ;;  %v6226_v52 = vrot.slane %v6221_v43, %v8194_v9  ;;  %v7403_v44 = vcombine.high %v6306_v28, %v6306_v28 }
 0x249   : > { %v6233_v47 = vrot.slane %v6228_v18, %v8194_v9  ;;  %v6133_v29 = vrot.slane %v6125_v45, %v8196_v10  ;;  %v7404_v2 = vcombine.low %v6307_v55, %v6307_v55  ;;  %v7405_v59 = vcombine.high %v6307_v55, %v6307_v55  ;;  %v6653_v45 = vld [vmem:[#allocation8 + $0x38] sm:$0x22] }
 0x24a   : > { %v6238_v17 = vcombine.low %v6212_v13, %v6219_v35  ;;  %v6140_v1 = vrot.slane %v6126_v31, %v8196_v10  ;;  %v6319_v20 = vshrl.u32 %v7402_v24, 16  ;;  %v6327_v3 = vshrl.u32 %v7403_v44, 16 }
 0x24b   : > { %v6239_v36 = vcombine.low %v6226_v52, %v6233_v47  ;;  %v6335_v49 = vshrl.u32 %v7404_v2, 16  ;;  %v6343_v42 = vshrl.u32 %v7405_v59, 16  ;;  %v7406_v51 = vcombine.low %v6423_v48, %v6423_v48 }
 0x24c   : > { %v6246_v46 = vrot.slane %v6238_v17, %v8196_v10  ;;  %v6141_v22 = vcombine.low %v6133_v29, %v6140_v1  ;;  %v6320_v21 = vpack.i.b16 %v6319_v20, %v6319_v20  ;;  %v6328_v32 = vpack.i.b16 %v6327_v3, %v6327_v3 }
 0x24d   : > { %v6253_v50 = vrot.slane %v6239_v36, %v8196_v10  ;;  %v6336_v33 = vpack.i.b16 %v6335_v49, %v6335_v49  ;;  %v6344_v26 = vpack.i.b16 %v6343_v42, %v6343_v42  ;;  %v7407_v54 = vcombine.high %v6423_v48, %v6423_v48 }
 0x24e   : > { %v7408_v14 = vcombine.low %v6424_v19, %v6424_v19  ;;  %6142 = vrot.lane.b32.xlu0 %v6141_v22, %s10089_s1  ;;  %v6325_v37 = vrot.slane %v6320_v21, %v8194_v9  ;;  %v6333_v15 = vrot.slane %v6328_v32, %v8194_v9  ;;  %v7409_v53 = vcombine.high %v6424_v19, %v6424_v19 }
 0x24f   : > { %v6254_v12 = vcombine.low %v6246_v46, %v6253_v50  ;;  %v6341_v60 = vrot.slane %v6336_v33, %v8194_v9  ;;  %v6349_v58 = vrot.slane %v6344_v26, %v8194_v9  ;;  %v6436_v62 = vpack.i.b16 %v7406_v51, %v7406_v51 }
 0x250   : > { %v6443_v5 = vpack.i.b16 %v7407_v54, %v7407_v54  ;;  %v6354_v16 = vcombine.low %v6325_v37, %v6333_v15  ;;  %v6450_v30 = vpack.i.b16 %v7408_v14, %v7408_v14  ;;  %v6457_v41 = vpack.i.b16 %v7409_v53, %v7409_v53 }
 0x251   : > { %6255 = vrot.lane.b32.xlu1 %v6254_v12, %s10090_s2  ;;  %v7410_v57 = vcombine.low %v6535_v25, %v6535_v25  ;;  %v6355_v23 = vcombine.low %v6341_v60, %v6349_v58  ;;  %v6441_v11 = vrot.slane %v6436_v62, %v8188_v6  ;;  %v7411_v61 = vcombine.high %v6535_v25, %v6535_v25  ;;  %v9298_v60 = vpop.permute.xlu1 %3765 }
 0x252   : > { %v6448_v39 = vrot.slane %v6443_v5, %v8188_v6  ;;  %v6362_v28 = vrot.slane %v6354_v16, %v8196_v10  ;;  %v6455_v9 = vrot.slane %v6450_v30, %v8188_v6  ;;  %v6462_v40 = vrot.slane %v6457_v41, %v8188_v6 }
 0x253   : > { %v7412_v4 = vcombine.low %v6536_v27, %v6536_v27  ;;  %v6369_v56 = vrot.slane %v6355_v23, %v8196_v10  ;;  %v7413_v0 = vcombine.high %v6536_v27, %v6536_v27  ;;  %v6548_v63 = vshrl.u32 %v7410_v57, 16 }
 0x254   : > { %v6467_v38 = vcombine.low %v6441_v11, %v6448_v39  ;;  %v6468_v43 = vcombine.low %v6455_v9, %v6462_v40  ;;  %v6556_v18 = vshrl.u32 %v7411_v61, 16  ;;  %v7414_v13 = vcombine.low %v6652_v34, %v6652_v34  ;;  %v5277_v61 = vld [vmem:[#allocation3 + $0xa] sm:$0x3] }
 0x255   : > { %v6564_v55 = vshrl.u32 %v7412_v4, 16  ;;  %v6370_v35 = vcombine.low %v6362_v28, %v6369_v56  ;;  %v6549_v31 = vpack.i.b16 %v6548_v63, %v6548_v63  ;;  %v6572_v52 = vshrl.u32 %v7413_v0, 16  ;;  %v9300_v58 = vpop.permute.xlu1 %3881 }
 0x256   : > { %v6475_v24 = vrot.slane %v6467_v38, %v8196_v10  ;;  %v6482_v47 = vrot.slane %v6468_v43, %v8196_v10  ;;  %v6557_v44 = vpack.i.b16 %v6556_v18, %v6556_v18  ;;  %v7415_v29 = vcombine.high %v6652_v34, %v6652_v34  ;;  %v5389_v38 = vld [vmem:[#allocation3 + $0xa] sm:$0x3] }
 0x257   : > { %v6565_v48 = vpack.i.b16 %v6564_v55, %v6564_v55  ;;  %6371 = vrot.lane.b32.xlu0 %v6370_v35, %s10091_s5  ;;  %v6554_v17 = vrot.slane %v6549_v31, %v8188_v6  ;;  %v6573_v2 = vpack.i.b16 %v6572_v52, %v6572_v52  ;;  %v7416_v59 = vcombine.low %v6653_v45, %v6653_v45 }
 0x258   : > { %v7417_v1 = vcombine.high %v6653_v45, %v6653_v45  ;;  %v6483_v36 = vcombine.low %v6475_v24, %v6482_v47  ;;  %v6562_v20 = vrot.slane %v6557_v44, %v8188_v6  ;;  %v6665_v19 = vpack.i.b16 %v7414_v13, %v7414_v13  ;;  %v5506_v45 = vld [vmem:[#allocation3 + $0xa] sm:$0x3] }
 0x259   : > { %v6570_v3 = vrot.slane %v6565_v48, %v8188_v6  ;;  %v6578_v46 = vrot.slane %v6573_v2, %v8188_v6  ;;  %v6672_v49 = vpack.i.b16 %v7415_v29, %v7415_v29  ;;  %v6679_v42 = vpack.i.b16 %v7416_v59, %v7416_v59  ;;  %v9304_v62 = vpop.permute.xlu1 %4110  ;;  %v5618_v44 = vld [vmem:[#allocation3 + $0xa] sm:$0x3] }
 0x25a   : > { %v6686_v51 = vpack.i.b16 %v7417_v1, %v7417_v1  ;;  %6484 = vrot.lane.b32.xlu1 %v6483_v36, %s10078_s20  ;;  %v6583_v22 = vcombine.low %v6554_v17, %v6562_v20  ;;  %v6670_v50 = vrot.slane %v6665_v19, %v8190_v7  ;;  %vm10092_vm8 = vcmask 56320   ;;  %v5735_v59 = vld [vmem:[#allocation3 + $0xa] sm:$0x3] }
 0x25b   : > { %v6584_v21 = vcombine.low %v6570_v3, %v6578_v46  ;;  %v6677_v32 = vrot.slane %v6672_v49, %v8190_v7  ;;  %v6684_v33 = vrot.slane %v6679_v42, %v8190_v7  ;;  %v5847_v42 = vld [vmem:[#allocation3 + $0xa] sm:$0x3] }
 0x25c   : > { %v6691_v26 = vrot.slane %v6686_v51, %v8190_v7  ;;  %v6591_v54 = vrot.slane %v6583_v22, %v8196_v10  ;;  %v9302_v7 = vpop.permute.xlu0 %3433 }
 0x25d   : > { %v6598_v14 = vrot.slane %v6584_v21, %v8196_v10  ;;  %v6696_v6 = vcombine.low %v6670_v50, %v6677_v32  ;;  %v5964_v32 = vld [vmem:[#allocation3 + $0xa] sm:$0x3] }
 0x25e   : > { %v6697_v25 = vcombine.low %v6684_v33, %v6691_v26 }
 0x25f   : > { %v6599_v12 = vcombine.low %v6591_v54, %v6598_v14  ;;  %v6704_v37 = vrot.slane %v6696_v6, %v8196_v10 }
 0x260   : > { %v6711_v15 = vrot.slane %v6697_v25, %v8196_v10  ;;  %v9306_v5 = vpop.permute.xlu0 %3994 }
 0x261   : > { %6600 = vrot.lane.b32.xlu0 %v6599_v12, %s10081_s8 }
 0x262   : > { %v6712_v53 = vcombine.low %v6704_v37, %v6711_v15  ;;  %v6076_v37 = vld [vmem:[#allocation3 + $0xa] sm:$0x3] }
 0x264   : > { %6713 = vrot.lane.b32.xlu1 %v6712_v53, %s10082_s11  ;;  %v9308_v27 = vpop.permute.xlu1 %4339  ;;  %v9310_v16 = vpop.permute.xlu0 %4223 }
 0x269   : > { %v9314_v41 = vpop.permute.xlu0 %4452 }
 0x272   : > { %v9312_v30 = vpop.permute.xlu1 %4568 }
 0x276   : > { %v9318_v23 = vpop.permute.xlu0 %4681 }
 0x27e   : > { %v9316_v57 = vpop.permute.xlu1 %4797 }
 0x285   : > { %v9322_v39 = vpop.permute.xlu0 %4910 }
 0x28d   : > { %v9320_v11 = vpop.permute.xlu1 %5026 }
 0x293   : > { %v9324_v9 = vpop.permute.xlu0 %5139 }
 0x297   : > { %v5340_v34 = vpop.permute.xlu1 %5339 }
 0x298   : > { %v5341_v28 = vrot.slane %v5340_v34, 6 }
 0x29a   : > { %v9327_v40 = vsel %vm10052_vm2, %v5341_v28, %v5340_v34  ;;  %v5346_v4 = vmul.bf16 %v5341_v28, %v5277_v61  ;;  %v6193_v61 = vld [vmem:[#allocation3 + $0xa] sm:$0x3]  ;;  %vm10095_vm2 = vcmask 1039360  }
 0x29c   : > { %v5370_v56 = vrot.slane %v5346_v4, %v8196_v10 }
 0x29e   : > { %5375 = vrot.lane.b32.xlu1 %v5370_v56, %s10083_s10 }
 0x2a0   : > { %v5456_v0 = vpop.permute.xlu0 %5455 }
 0x2a1   : > { %v5457_v63 = vrot.slane %v5456_v0, 6 }
 0x2a3   : > { %v9332_v43 = vsel %vm10092_vm8, %v5457_v63, %v5456_v0  ;;  %v5462_v18 = vmul.bf16 %v5457_v63, %v5389_v38  ;;  %vm10093_vm8 = vcmask 973824  }
 0x2a5   : > { %v5480_v55 = vcombine.low %v5462_v18, %v5462_v18  ;;  %v5569_v13 = vpop.permute.xlu1 %5568 }
 0x2a6   : > { %v5570_v35 = vrot.slane %v5569_v13, 6 }
 0x2a7   : > { %v5487_v24 = vrot.slane %v5480_v55, %v8196_v10 }
 0x2a8   : > { %v9336_v31 = vsel %vm1586_vm4, %v5570_v35, %v5569_v13  ;;  %v5575_v52 = vmul.bf16 %v5570_v35, %v5506_v45  ;;  %v6305_v45 = vld [vmem:[#allocation3 + $0xa] sm:$0x3] }
 0x2a9   : > { %5492 = vrot.lane.b32.xlu0 %v5487_v24, %s10071_s30 }
 0x2aa   : > { %v5599_v47 = vrot.slane %v5575_v52, %v8196_v10 }
 0x2ab   : > { %v5685_v48 = vpop.permute.xlu0 %5684 }
 0x2ac   : > { %5604 = vrot.lane.b32.xlu1 %v5599_v47, %s10070_s7  ;;  %v5686_v29 = vrot.slane %v5685_v48, 6  ;;  %v6422_v47 = vld [vmem:[#allocation3 + $0xa] sm:$0x3] }
 0x2ae   : > { %v9342_v17 = vsel %vm1472_vm14, %v5686_v29, %v5685_v48  ;;  %v5691_v2 = vmul.bf16 %v5686_v29, %v5618_v44 }
 0x2b0   : > { %v5798_v1 = vpop.permute.xlu1 %5797  ;;  %v5709_v36 = vcombine.low %v5691_v2, %v5691_v2 }
 0x2b1   : > { %v5799_v20 = vrot.slane %v5798_v1, 6 }
 0x2b2   : > { %v5716_v3 = vrot.slane %v5709_v36, %v8196_v10 }
 0x2b3   : > { %v9346_v19 = vsel %vm389_vm0, %v5799_v20, %v5798_v1  ;;  %v5804_v46 = vmul.bf16 %v5799_v20, %v5735_v59  ;;  %v5189_v20 = vld [vmem:[#allocation8 + $0x10] sm:$0x44] }
 0x2b4   : > { %5721 = vrot.lane.b32.xlu0 %v5716_v3, %s10074_s18  ;;  %v5190_v3 = vld [vmem:[#allocation8 + $0x18] sm:$0x44] }
 0x2b5   : > { %v5828_v49 = vrot.slane %v5804_v46, %v8196_v10  ;;  %v7360_v46 = vcombine.low %v5189_v20, %v5189_v20 }
 0x2b7   : > { %v5914_v51 = vpop.permute.xlu0 %5913  ;;  %5833 = vrot.lane.b32.xlu1 %v5828_v49, %s10082_s11  ;;  %v7361_v49 = vcombine.high %v5189_v20, %v5189_v20 }
 0x2b8   : > { %v5915_v22 = vrot.slane %v5914_v51, 6 }
 0x2b9   : > { %v6027_v33 = vpop.permute.xlu1 %6026 }
 0x2ba   : > { %v9352_v50 = vsel %vm508_vm9, %v5915_v22, %v5914_v51  ;;  %v5920_v21 = vmul.bf16 %v5915_v22, %v5847_v42  ;;  %v6028_v54 = vrot.slane %v6027_v33, 6  ;;  %v7362_v42 = vcombine.low %v5190_v3, %v5190_v3 }
 0x2bb   : > { %v7363_v51 = vcombine.high %v5190_v3, %v5190_v3  ;;  %v5202_v22 = vshrl.u32 %v7360_v46, 16 }
 0x2bc   : > { %v5938_v26 = vcombine.low %v5920_v21, %v5920_v21  ;;  %v9356_v6 = vsel %vm623_vm1, %v6028_v54, %v6027_v33  ;;  %v6033_v25 = vmul.bf16 %v6028_v54, %v5964_v32  ;;  %v5210_v21 = vshrl.u32 %v7361_v49, 16 }
 0x2bd   : > { %v5218_v32 = vshrl.u32 %v7362_v42, 16  ;;  %v5226_v33 = vshrl.u32 %v7363_v51, 16 }
 0x2be   : > { %v5945_v14 = vrot.slane %v5938_v26, %v8196_v10  ;;  %v6057_v12 = vrot.slane %v6033_v25, %v8196_v10  ;;  %v5203_v26 = vpack.i.b16 %v5202_v22, %v5202_v22  ;;  %v5211_v54 = vpack.i.b16 %v5210_v21, %v5210_v21 }
 0x2bf   : > { %v5227_v25 = vpack.i.b16 %v5226_v33, %v5226_v33 }
 0x2c0   : > { %5950 = vrot.lane.b32.xlu0 %v5945_v14, %s10081_s8  ;;  %v6143_v15 = vpop.permute.xlu0 %6142  ;;  %6062 = vrot.lane.b32.xlu1 %v6057_v12, %s10078_s20  ;;  %v5219_v14 = vpack.i.b16 %v5218_v32, %v5218_v32  ;;  %v5208_v12 = vrot.slane %v5203_v26, %v8192_v8 }
 0x2c1   : > { %v6144_v53 = vrot.slane %v6143_v15, 6 }
 0x2c3   : > { %v6256_v34 = vpop.permute.xlu1 %6255  ;;  %v9362_v28 = vsel %vm741_vm10, %v6144_v53, %v6143_v15  ;;  %v6149_v4 = vmul.bf16 %v6144_v53, %v6076_v37  ;;  %v5216_v37 = vrot.slane %v5211_v54, %v8192_v8  ;;  %v5224_v15 = vrot.slane %v5219_v14, %v8192_v8 }
 0x2c4   : > { %v6257_v56 = vrot.slane %v6256_v34, 6  ;;  %v5232_v53 = vrot.slane %v5227_v25, %v8192_v8 }
 0x2c5   : > { %v6167_v38 = vcombine.low %v6149_v4, %v6149_v4 }
 0x2c6   : > { %v9365_v0 = vsel %vm856_vm3, %v6257_v56, %v6256_v34  ;;  %v6262_v63 = vmul.bf16 %v6257_v56, %v6193_v61 }
 0x2c7   : > { %v6174_v18 = vrot.slane %v6167_v38, %v8196_v10 }
 0x2c8   : > { %v6286_v55 = vrot.slane %v6262_v63, %v8196_v10 }
 0x2c9   : > { %v6372_v13 = vpop.permute.xlu0 %6371  ;;  %6179 = vrot.lane.b32.xlu0 %v6174_v18, %s10091_s5 }
 0x2ca   : > { %6291 = vrot.lane.b32.xlu1 %v6286_v55, %s10090_s2  ;;  %v6373_v35 = vrot.slane %v6372_v13, 6  ;;  %v5237_v55 = vcombine.low %v5208_v12, %v5216_v37  ;;  %v4912_v37 = vrot.slane %v9322_v39, 6 }
 0x2cc   : > { %v9372_v24 = vsel %vm782_vm11, %v6373_v35, %v6372_v13  ;;  %v6378_v52 = vmul.bf16 %v6373_v35, %v6305_v45  ;;  %v6485_v44 = vpop.permute.xlu1 %6484  ;;  %v5238_v45 = vcombine.low %v5224_v15, %v5232_v53  ;;  %v5028_v15 = vrot.slane %v9320_v11, 6 }
 0x2cd   : > { %v6486_v48 = vrot.slane %v6485_v44, 6 }
 0x2ce   : > { %v6396_v29 = vcombine.low %v6378_v52, %v6378_v52 }
 0x2cf   : > { %v9375_v2 = vsel %vm663_vm5, %v6486_v48, %v6485_v44  ;;  %v6491_v59 = vmul.bf16 %v6486_v48, %v6422_v47 }
 0x2d0   : > { %v6403_v1 = vrot.slane %v6396_v29, %v8196_v10 }
 0x2d1   : > { %v6515_v36 = vrot.slane %v6491_v59, %v8196_v10 }
 0x2d2   : > { %6408 = vrot.lane.b32.xlu0 %v6403_v1, %s10089_s1  ;;  %v5245_v1 = vrot.slane %v5237_v55, %v8196_v10 }
 0x2d3   : > { %6520 = vrot.lane.b32.xlu1 %v6515_v36, %s10088_s16  ;;  %v5252_v36 = vrot.slane %v5238_v45, %v8196_v10 }
 0x2d5   : > { %v5253_v46 = vcombine.low %v5245_v1, %v5252_v36 }
 0x310   : > { %v3623_v61 = vpop.f32.mrb[0].mxu0 }
 0x311   : > { %v3624_v34 = vadd.f32 %v3623_v61, %v9302_v7  ;;  %v3625_v4 = vpop.f32.mrb[1].mxu0 }
 0x312   : > { %v3626_v56 = vadd.f32 %v3625_v4, %v9302_v7  ;;  %v3627_v38 = vpop.f32.mrb[2].mxu0 }
 0x313   : > { %v3671_v63 = vmax.f32 %v3624_v34, 0.0  ;;  %v3628_v18 = vpop.f32.mrb[3].mxu0  ;;  %v4913_v34 = vsel %vm1546_vm7, %v4912_v37, %v9322_v39 }
 0x314   : > { %v3672_v13 = vmax.f32 %v3626_v56, 0.0  ;;  %v3664_v35 = vpop.f32.mrb[0].mxu1 }
 0x315   : > { %v3665_v52 = vadd.f32 %v3664_v35, %v9302_v7  ;;  %v3666_v47 = vpop.f32.mrb[1].mxu1 }
 0x316   : > { %v7306_v44 = vpack.c.bf16 %v3672_v13, %v3671_v63  ;;  %v3667_v48 = vadd.f32 %v3666_v47, %v9302_v7  ;;  %v3668_v8 = vpop.f32.mrb[2].mxu1 }
 0x317   : > { %v3673_v29 = vmax.f32 %v3665_v52, 0.0  ;;  %v3669_v59 = vpop.f32.mrb[3].mxu1  ;;  %v3883_v52 = vrot.slane %v9300_v58, 6  ;;  %v3996_v8 = vrot.slane %v9306_v5, 6 }
 0x318   : > { %v3674_v20 = vmax.f32 %v3667_v48, 0.0  ;;  %v3691_v49 = vrot.slane %v7306_v44, %v8196_v10 }
 0x319   : > { %v3884_v48 = vsel %vm508_vm9, %v3883_v52, %v9300_v58  ;;  %v3997_v58 = vsel %vm623_vm1, %v3996_v8, %v9306_v5 }
 0x31a   : > { %v7307_v3 = vpack.c.bf16 %v3674_v20, %v3673_v29 }
 0x31c   : > { %v3698_v42 = vrot.slane %v7307_v3, %v8196_v10 }
 0x31e   : > { %v9393_v51 = vcombine.low %v3691_v49, %v3698_v42  ;;  %v4112_v49 = vrot.slane %v9304_v62, 6 }
 0x320   : > { %3701 = vst [vmem:[#allocation3 + $0x2] sm:$0xff] %v9393_v51  ;;  %v5255_v7 = vmul.bf16 %v5253_v46, %v9393_v51  ;;  %v9399_v22 = vmul.bf16 %v9327_v40, %v9393_v51  ;;  %v9403_v21 = vmul.bf16 %v9332_v43, %v9393_v51  ;;  %v9407_v32 = vmul.bf16 %v9336_v31, %v9393_v51 }
 0x321   : > { %v9411_v33 = vmul.bf16 %v9342_v17, %v9393_v51  ;;  %v9415_v26 = vmul.bf16 %v9346_v19, %v9393_v51  ;;  %v9419_v40 = vmul.bf16 %v9352_v50, %v9393_v51  ;;  %v9423_v43 = vmul.bf16 %v9356_v6, %v9393_v51 }
 0x322   : > { %v5257_v54 = vcombine.low %v5255_v7, %v5255_v7  ;;  %7365 = vst.sshfl [vmem:[#allocation4 + $0x68] sm:$0xf0 pattern:$0x76325410] %v5255_v7  ;;  %v5356_v31 = vrot.slane %v9399_v22, %v8196_v10  ;;  %v3767_v17 = vrot.slane %v9298_v60, 6  ;;  %v5479_v19 = vrot.slane %v9403_v21, %v8196_v10 }
 0x323   : > { %v4799_v50 = vrot.slane %v9316_v57, 6  ;;  %v9436_v6 = vmul.bf16 %v9362_v28, %v9393_v51  ;;  %v9440_v25 = vmul.bf16 %v9365_v0, %v9393_v51  ;;  %v9444_v12 = vmul.bf16 %v9372_v24, %v9393_v51 }
 0x324   : > { %7364 = vst.sshfl [vmem:[#allocation4 + $0x60] sm:$0xf0 pattern:$0x76325410] %v5257_v54  ;;  %5371 = vrot.lane.b32.xlu1 %v5356_v31, %s10083_s10  ;;  %v3768_v53 = vsel %vm389_vm0, %v3767_v17, %v9298_v60  ;;  %v5141_v28 = vrot.slane %v9324_v9, 6  ;;  %v5585_v0 = vrot.slane %v9407_v32, %v8196_v10  ;;  %v5029_v60 = vsel %vm10094_vm15, %v5028_v15, %v9320_v11 }
 0x325   : > { %v4800_v24 = vsel %vm10093_vm8, %v4799_v50, %v9316_v57  ;;  %v5708_v45 = vrot.slane %v9411_v33, %v8196_v10  ;;  %v5814_v13 = vrot.slane %v9415_v26, %v8196_v10  ;;  %v5937_v47 = vrot.slane %v9419_v40, %v8196_v10 }
 0x326   : > { %v5142_v56 = vsel %vm10095_vm2, %v5141_v28, %v9324_v9  ;;  %v6043_v29 = vrot.slane %v9423_v43, %v8196_v10  ;;  %v9506_v59 = vmul.bf16 %v9375_v2, %v9393_v51  ;;  %v6166_v20 = vrot.slane %v9436_v6, %v8196_v10  ;;  %vm10096_vm2 = vmmov %vm10094_vm15 }
 0x327   : > { %v9432_v14 = vld [vmem:[#allocation3] sm:$0xff]  ;;  %v3703_v35 = vld [vmem:[#allocation3 + $0x8] sm:$0x3]  ;;  %v6272_v42 = vrot.slane %v9440_v25, %v8196_v10  ;;  %v4113_v54 = vsel %vm741_vm10, %v4112_v49, %v9304_v62  ;;  %v4225_v31 = vrot.slane %v9310_v16, 6  ;;  %v5578_v11 = vcombine.high %v9407_v32, %v9407_v32  ;;  %vm10097_vm15 = vmmov %vm10093_vm8 }
 0x328   : > { %5490 = vrot.lane.b32.xlu1 %v5479_v19, %s10071_s30  ;;  %v9453_v61 = vmul.bf16 %v3768_v53, %v9432_v14  ;;  %v9470_v4 = vmul.bf16 %v4800_v24, %v9432_v14  ;;  %v9478_v38 = vmul.bf16 %v4913_v34, %v9432_v14  ;;  %v9481_v63 = vmul.bf16 %v5029_v60, %v9432_v14  ;;  %v3932_v2 = vld [vmem:[#allocation3 + $0x8] sm:$0x3] }
 0x329   : > { %v9484_v18 = vmul.bf16 %v5142_v56, %v9432_v14  ;;  %v3772_v44 = vmul.bf16 %v3767_v17, %v3703_v35  ;;  %v3887_v1 = vmul.bf16 %v3884_v48, %v9432_v14  ;;  %v4000_v3 = vmul.bf16 %v3997_v58, %v9432_v14  ;;  %v3815_v34 = vld [vmem:[#allocation3 + $0x8] sm:$0x3] }
 0x32a   : > { %v3782_v55 = vrot.slane %v9453_v61, %v8196_v10  ;;  %v4001_v7 = vmul.bf16 %v3996_v8, %v3932_v2  ;;  %v6395_v17 = vrot.slane %v9444_v12, %v8196_v10  ;;  %v4116_v19 = vmul.bf16 %v4113_v54, %v9432_v14 }
 0x32b   : > { %v3796_v36 = vrot.slane %v3772_v44, %v8196_v10  ;;  %v3905_v46 = vrot.slane %v3887_v1, %v8196_v10  ;;  %v4011_v5 = vrot.slane %v4000_v3, %v8196_v10  ;;  %v3775_v24 = vcombine.high %v9453_v61, %v9453_v61 }
 0x32c   : > { %5600 = vrot.lane.b32.xlu1 %v5585_v0, %s10070_s7  ;;  %3797 = vrot.lane.b32.xlu0 %v3782_v55, %s10082_s11  ;;  %v4025_v53 = vrot.slane %v4001_v7, %v8196_v10  ;;  %v4226_v0 = vsel %vm856_vm3, %v4225_v31, %v9310_v16  ;;  %v6501_v62 = vrot.slane %v9506_v59, %v8196_v10  ;;  %v4161_v55 = vld [vmem:[#allocation3 + $0x8] sm:$0x3]  ;;  %v4454_v48 = vrot.slane %v9314_v41, 6 }
 0x32d   : > { %v4229_v60 = vmul.bf16 %v4226_v0, %v9432_v14  ;;  %v4134_v56 = vrot.slane %v4116_v19, %v8196_v10  ;;  %v3891_v16 = vcombine.low %v3887_v1, %v3887_v1  ;;  %v3789_v35 = vrot.slane %v3775_v24, %v8196_v10 }
 0x32e   : > { %v4230_v61 = vmul.bf16 %v4225_v31, %v4161_v55  ;;  %v4004_v58 = vcombine.high %v4000_v3, %v4000_v3  ;;  %v4570_v7 = vrot.slane %v9312_v30, 6  ;;  %v4120_v54 = vcombine.low %v4116_v19, %v4116_v19 }
 0x330   : > { %5719 = vrot.lane.b32.xlu1 %v5708_v45, %s10074_s18  ;;  %3801 = vrot.lane.b32.xlu0 %v3796_v36, %s10082_s11  ;;  %v4341_v45 = vrot.slane %v9308_v27, 6  ;;  %v4254_v1 = vrot.slane %v4230_v61, %v8196_v10  ;;  %v4455_v36 = vsel %vm663_vm5, %v4454_v48, %v9314_v41  ;;  %v4018_v31 = vrot.slane %v4004_v58, %v8196_v10 }
 0x331   : > { %v4127_v24 = vrot.slane %v4120_v54, %v8196_v10 }
 0x332   : > { %v4342_v44 = vsel %vm782_vm11, %v4341_v45, %v9308_v27  ;;  %v4044_v27 = vld [vmem:[#allocation3 + $0x8] sm:$0x3] }
 0x334   : > { %5829 = vrot.lane.b32.xlu1 %v5814_v13, %s10082_s11  ;;  %3916 = vrot.lane.b32.xlu0 %v3905_v46, %s10081_s8  ;;  %v3888_v13 = vmul.bf16 %v3883_v52, %v3815_v34  ;;  %v4345_v52 = vmul.bf16 %v4342_v44, %v9432_v14  ;;  %v4458_v46 = vmul.bf16 %v4455_v36, %v9432_v14  ;;  %v4848_v36 = vld [vmem:[#allocation3 + $0x8] sm:$0x3] }
 0x335   : > { %v4233_v34 = vcombine.high %v4229_v60, %v4229_v60 }
 0x336   : > { %v3906_v8 = vcombine.low %v3888_v13, %v3888_v13  ;;  %v4363_v2 = vrot.slane %v4345_v52, %v8196_v10  ;;  %v4469_v3 = vrot.slane %v4458_v46, %v8196_v10  ;;  %v4349_v61 = vcombine.low %v4345_v52, %v4345_v52  ;;  %v4502_v52 = vld [vmem:[#allocation3 + $0x8] sm:$0x3] }
 0x338   : > { %5948 = vrot.lane.b32.xlu1 %v5937_v47, %s10081_s8  ;;  %4026 = vrot.lane.b32.xlu0 %v4011_v5, %s10078_s20  ;;  %v4240_v47 = vrot.slane %v4229_v60, %v8196_v10  ;;  %v4117_v5 = vmul.bf16 %v4112_v49, %v4044_v27 }
 0x33a   : > { %v4135_v0 = vcombine.low %v4117_v5, %v4117_v5 }
 0x33c   : > { %6058 = vrot.lane.b32.xlu1 %v6043_v29, %s10078_s20  ;;  %4030 = vrot.lane.b32.xlu0 %v4025_v53, %s10078_s20  ;;  %v3898_v29 = vrot.slane %v3891_v16, %v8196_v10  ;;  %v4683_v53 = vrot.slane %v9318_v23, 6  ;;  %v4619_v16 = vld [vmem:[#allocation3 + $0x8] sm:$0x3] }
 0x33e   : > { %v4688_v44 = vmul.bf16 %v4683_v53, %v4619_v16 }
 0x340   : > { %6177 = vrot.lane.b32.xlu1 %v6166_v20, %s10091_s5  ;;  %4145 = vrot.lane.b32.xlu0 %v4134_v56, %s10091_s5  ;;  %v3913_v20 = vrot.slane %v3906_v8, %v8196_v10  ;;  %v4142_v56 = vrot.slane %v4135_v0, %v8196_v10  ;;  %v9592_v8 = vpop.permute.xlu1 %6713 }
 0x344   : > { %6287 = vrot.lane.b32.xlu1 %v6272_v42, %s10090_s2  ;;  %4255 = vrot.lane.b32.xlu0 %v4240_v47, %s10090_s2  ;;  %v4390_v42 = vld [vmem:[#allocation3 + $0x8] sm:$0x3]  ;;  %v4247_v47 = vrot.slane %v4233_v34, %v8196_v10  ;;  %v9600_v58 = vpop.permute.xlu1 %5375  ;;  %v4807_v34 = vcombine.low %v9470_v4, %v9470_v4 }
 0x345   : > { %v4459_v41 = vmul.bf16 %v4454_v48, %v4390_v42  ;;  %v4712_v48 = vrot.slane %v4688_v44, %v8196_v10  ;;  %v4927_v42 = vrot.slane %v9478_v38, %v8196_v10 }
 0x346   : > { %v4814_v57 = vrot.slane %v4807_v34, %v8196_v10  ;;  %v6036_v34 = vcombine.high %v9423_v43, %v9423_v43 }
 0x347   : > { %v4483_v19 = vrot.slane %v4459_v41, %v8196_v10 }
 0x348   : > { %6406 = vrot.lane.b32.xlu1 %v6395_v17, %s10089_s1  ;;  %4259 = vrot.lane.b32.xlu0 %v4254_v1, %s10090_s2  ;;  %v4571_v17 = vsel %vm549_vm12, %v4570_v7, %v9312_v30  ;;  %v4273_v30 = vld [vmem:[#allocation3 + $0x8] sm:$0x3]  ;;  %v4821_v1 = vrot.slane %v9470_v4, %v8196_v10  ;;  %v9611_v41 = vpop.permute.xlu1 %5604 }
 0x349   : > { %v4574_v49 = vmul.bf16 %v4571_v17, %v9432_v14  ;;  %v4731_v17 = vld [vmem:[#allocation3 + $0x8] sm:$0x3] }
 0x34b   : > { %v4592_v13 = vrot.slane %v4574_v49, %v8196_v10  ;;  %v4578_v27 = vcombine.low %v4574_v49, %v4574_v49 }
 0x34c   : > { %6516 = vrot.lane.b32.xlu1 %v6501_v62, %s10088_s16  ;;  %4374 = vrot.lane.b32.xlu0 %v4363_v2, %s10089_s1  ;;  %v4684_v62 = vsel %vm430_vm6, %v4683_v53, %v9318_v23  ;;  %v5050_v53 = vrot.slane %v9481_v63, %v8196_v10 }
 0x34d   : > { %v4687_v55 = vmul.bf16 %v4684_v62, %v9432_v14  ;;  %v4356_v14 = vrot.slane %v4349_v61, %v8196_v10  ;;  %v4585_v54 = vrot.slane %v4578_v27, %v8196_v10  ;;  %v4804_v62 = vmul.bf16 %v4799_v50, %v4731_v17  ;;  %v4960_v61 = vld [vmem:[#allocation3 + $0x8] sm:$0x3]  ;;  %v6651_v17 = vld [vmem:[#allocation3 + $0xa] sm:$0x3] }
 0x34e   : > { %v6715_v27 = vrot.slane %v9592_v8, 6 }
 0x34f   : > { %v4698_v23 = vrot.slane %v4687_v55, %v8196_v10  ;;  %v4691_v39 = vcombine.high %v4687_v55, %v4687_v55  ;;  %v5156_v55 = vrot.slane %v9484_v18, %v8196_v10  ;;  %v4822_v16 = vcombine.low %v4804_v62, %v4804_v62 }
 0x350   : > { %3799 = vrot.lane.b32.xlu1 %v3789_v35, %s10082_s11  ;;  %4484 = vrot.lane.b32.xlu0 %v4469_v3, %s10088_s16  ;;  %v4346_v35 = vmul.bf16 %v4341_v45, %v4273_v30  ;;  %v4462_v45 = vcombine.high %v4458_v46, %v4458_v46  ;;  %v4917_v46 = vmul.bf16 %v4912_v37, %v4848_v36  ;;  %v6534_v3 = vld [vmem:[#allocation3 + $0xa] sm:$0x3] }
 0x351   : > { %v4829_v4 = vrot.slane %v4822_v16, %v8196_v10  ;;  %v5694_v36 = vcombine.low %v9411_v33, %v9411_v33  ;;  %v5807_v33 = vcombine.high %v9415_v26, %v9415_v26 }
 0x352   : > { %v4364_v60 = vcombine.low %v4346_v35, %v4346_v35  ;;  %v4476_v2 = vrot.slane %v4462_v45, %v8196_v10 }
 0x354   : > { %3914 = vrot.lane.b32.xlu1 %v3898_v29, %s10081_s8  ;;  %4488 = vrot.lane.b32.xlu0 %v4483_v19, %s10088_s16  ;;  %v4371_v29 = vrot.slane %v4364_v60, %v8196_v10  ;;  %v9620_v19 = vpop.permute.xlu1 %5833  ;;  %v5036_v60 = vcombine.low %v9481_v63, %v9481_v63 }
 0x358   : > { %3918 = vrot.lane.b32.xlu1 %v3913_v20, %s10081_s8  ;;  %4603 = vrot.lane.b32.xlu0 %v4592_v13, %s10087_s0  ;;  %v4575_v20 = vmul.bf16 %v4570_v7, %v4502_v52  ;;  %v6601_v7 = vpop.permute.xlu0 %6600  ;;  %v9635_v35 = vpop.permute.xlu1 %6062  ;;  %v5149_v52 = vcombine.high %v9484_v18, %v9484_v18 }
 0x359   : > { %v6602_v0 = vrot.slane %v6601_v7, 6 }
 0x35a   : > { %v4593_v5 = vcombine.low %v4575_v20, %v4575_v20  ;;  %v5592_v20 = vrot.slane %v5578_v11, %v8196_v10 }
 0x35b   : > { %v6607_v49 = vmul.bf16 %v6602_v0, %v6534_v3  ;;  %v6603_v32 = vsel %vm549_vm12, %v6602_v0, %v6601_v7  ;;  %v5923_v3 = vcombine.low %v9419_v40, %v9419_v40 }
 0x35c   : > { %4028 = vrot.lane.b32.xlu1 %v4018_v31, %s10078_s20  ;;  %4713 = vrot.lane.b32.xlu0 %v4698_v23, %s10075_s15  ;;  %v4941_v31 = vrot.slane %v4917_v46, %v8196_v10  ;;  %v4600_v37 = vrot.slane %v4593_v5, %v8196_v10  ;;  %v9647_v44 = vpop.permute.xlu1 %6291  ;;  %v5033_v23 = vmul.bf16 %v5028_v15, %v4960_v61 }
 0x35d   : > { %v6625_v13 = vcombine.low %v6607_v49, %v6607_v49  ;;  %v5163_v46 = vrot.slane %v5149_v52, %v8196_v10  ;;  %v9681_v18 = vmul.bf16 %v6603_v32, %v9393_v51  ;;  %v6716_v5 = vsel %vm430_vm6, %v6715_v27, %v9592_v8 }
 0x35e   : > { %v5051_v45 = vcombine.low %v5033_v23, %v5033_v23  ;;  %v5821_v8 = vrot.slane %v5807_v33, %v8196_v10  ;;  %v6720_v49 = vmul.bf16 %v6715_v27, %v6651_v17  ;;  %v5930_v62 = vrot.slane %v5923_v3, %v8196_v10 }
 0x35f   : > { %v6632_v9 = vrot.slane %v6625_v13, %v8196_v10  ;;  %v6624_v7 = vrot.slane %v9681_v18, %v8196_v10  ;;  %v6152_v13 = vcombine.low %v9436_v6, %v9436_v6  ;;  %v6265_v6 = vcombine.high %v9440_v25, %v9440_v25 }
 0x360   : > { %4143 = vrot.lane.b32.xlu1 %v4127_v24, %s10091_s5  ;;  %4717 = vrot.lane.b32.xlu0 %v4712_v48, %s10075_s15  ;;  %v5077_v24 = vld [vmem:[#allocation3 + $0x8] sm:$0x3]  ;;  %v9663_v63 = vpop.permute.xlu1 %6520 }
 0x361   : > { %v5146_v30 = vmul.bf16 %v5141_v28, %v5077_v24  ;;  %v4920_v28 = vcombine.high %v9478_v38, %v9478_v38  ;;  %v6279_v23 = vrot.slane %v6265_v6, %v8196_v10 }
 0x363   : > { %v5170_v50 = vrot.slane %v5146_v30, %v8196_v10  ;;  %v4934_v38 = vrot.slane %v4920_v28, %v8196_v10 }
 0x364   : > { %4147 = vrot.lane.b32.xlu1 %v4142_v56, %s10091_s5  ;;  %4832 = vrot.lane.b32.xlu0 %v4821_v1, %s10072_s12  ;;  %v4705_v56 = vrot.slane %v4691_v39, %v8196_v10  ;;  %v5058_v1 = vrot.slane %v5051_v45, %v8196_v10  ;;  %v9695_v39 = vmul.bf16 %v6716_v5, %v9393_v51 }
 0x366   : > { %v6730_v40 = vrot.slane %v9695_v39, %v8196_v10 }
 0x368   : > { %4257 = vrot.lane.b32.xlu1 %v4247_v47, %s10090_s2  ;;  %4942 = vrot.lane.b32.xlu0 %v4927_v42, %s10085_s27  ;;  %v5349_v47 = vcombine.high %v9399_v22, %v9399_v22  ;;  %v5493_v22 = vpop.permute.xlu0 %5492  ;;  %v5701_v42 = vrot.slane %v5694_v36, %v8196_v10 }
 0x36a   : > { %v5363_v48 = vrot.slane %v5349_v47, %v8196_v10 }
 0x36c   : > { %4372 = vrot.lane.b32.xlu1 %v4356_v14, %s10089_s1  ;;  %4946 = vrot.lane.b32.xlu0 %v4941_v31, %s10085_s27  ;;  %v5465_v14 = vcombine.low %v9403_v21, %v9403_v21  ;;  %v5722_v21 = vpop.permute.xlu0 %5721 }
 0x36d   : > { %v5725_v16 = vrot.slane %v5722_v21, 4  ;;  %v6610_v21 = vcombine.low %v9681_v18, %v9681_v18 }
 0x36e   : > { %v5472_v15 = vrot.slane %v5465_v14, %v8196_v10 }
 0x36f   : > { %v6617_v27 = vrot.slane %v6610_v21, %v8196_v10 }
 0x370   : > { %4376 = vrot.lane.b32.xlu1 %v4371_v29, %s10089_s1  ;;  %5061 = vrot.lane.b32.xlu0 %v5050_v53, %s10073_s29  ;;  %v5043_v29 = vrot.slane %v5036_v60, %v8196_v10  ;;  %v6381_v60 = vcombine.low %v9444_v12, %v9444_v12 }
 0x372   : > { %v6388_v45 = vrot.slane %v6381_v60, %v8196_v10 }
 0x374   : > { %4486 = vrot.lane.b32.xlu1 %v4476_v2, %s10088_s16  ;;  %5171 = vrot.lane.b32.xlu0 %v5156_v55, %s10084_s19  ;;  %v6050_v55 = vrot.slane %v6036_v34, %v8196_v10 }
 0x378   : > { %4601 = vrot.lane.b32.xlu1 %v4585_v54, %s10087_s0  ;;  %5175 = vrot.lane.b32.xlu0 %v5170_v50, %s10084_s19  ;;  %v5951_v54 = vpop.permute.xlu0 %5950 }
 0x37c   : > { %4605 = vrot.lane.b32.xlu1 %v4600_v37, %s10087_s0  ;;  %6637 = vrot.lane.b32.xlu0 %v6632_v9, %s10087_s0  ;;  %v5496_v37 = vrot.slane %v5493_v22, 4  ;;  %v6180_v0 = vpop.permute.xlu0 %6179 }
 0x37d   : > { %v6183_v52 = vrot.slane %v6180_v0, 4 }
 0x380   : > { %4715 = vrot.lane.b32.xlu1 %v4705_v56, %s10075_s15  ;;  %5373 = vrot.lane.b32.xlu0 %v5363_v48, %s10083_s10  ;;  %v6744_v56 = vrot.slane %v6720_v49, %v8196_v10 }
 0x384   : > { %4830 = vrot.lane.b32.xlu1 %v4814_v57, %s10072_s12  ;;  %5488 = vrot.lane.b32.xlu0 %v5472_v15, %s10071_s30  ;;  %v6409_v57 = vpop.permute.xlu0 %6408 }
 0x385   : > { %v6412_v5 = vrot.slane %v6409_v57, 4 }
 0x388   : > { %4834 = vrot.lane.b32.xlu1 %v4829_v4, %s10072_s12  ;;  %5602 = vrot.lane.b32.xlu0 %v5592_v20, %s10070_s7  ;;  %v6159_v4 = vrot.slane %v6152_v13, %v8196_v10  ;;  %s7993_s7 = smov [#allocation10]  }
 0x389   : > { %s7902_s30 = sshll.u32 %s7993_s7, 4  ;;  %s7903_s30 = int_to_ptr.vmem [resolvable:$false] %s7902_s30 }
 0x38c   : > { %4944 = vrot.lane.b32.xlu1 %v4934_v38, %s10085_s27  ;;  %5717 = vrot.lane.b32.xlu0 %v5701_v42, %s10074_s18  ;;  %v5954_v38 = vrot.slane %v5951_v54, 4  ;;  %s10111_s27 = sshll.u32 %s8165_s26, 4 }
 0x390   : > { %5059 = vrot.lane.b32.xlu1 %v5043_v29, %s10073_s29  ;;  %5831 = vrot.lane.b32.xlu0 %v5821_v8, %s10082_s11  ;;  %v6494_v29 = vcombine.high %v9506_v59, %v9506_v59 }
 0x392   : > { %v6508_v15 = vrot.slane %v6494_v29, %v8196_v10 }
 0x394   : > { %5063 = vrot.lane.b32.xlu1 %v5058_v1, %s10073_s29  ;;  %5946 = vrot.lane.b32.xlu0 %v5930_v62, %s10081_s8  ;;  %s282_s29 = scalar_lea.vmem [#allocation10], %s10111_s27 }
 0x396   : > { %v9677_v2 = vpop.permute.xlu1 %5371 }
 0x398   : > { %5173 = vrot.lane.b32.xlu1 %v5163_v46, %s10084_s19  ;;  %6060 = vrot.lane.b32.xlu0 %v6050_v55, %s10078_s20  ;;  %v6723_v46 = vcombine.high %v9695_v39, %v9695_v39  ;;  %v6791_v39 = vld [vmem:[%s10005_s4] sm:$0xf]  ;;  %s7071_s19 = sshll.u32 %s282_s29, 4  ;;  %s7904_s20 = scalar_lea.vmem %s7903_s30, 512  ;;  %s9959_s19 = int_to_ptr.vmem [resolvable:$true] %s7071_s19 }
 0x399   : > { %s7898_s18 = scalar_lea.vmem %s9959_s19, 256  ;;  %p7905_p10 = scmp.lt.s32.totalorder %s9959_s19, %s7903_s30 }
 0x39a   : > { %v9690_v31 = vpop.permute.xlu1 %5490  ;;  %v6737_v42 = vrot.slane %v6723_v46, %v8196_v10  ;;  %p7899_p4 = scmp.ne.s32.totalorder %s9959_s19, %s7898_s18  ;;  %p7906_p13 = scmp.lt.s32.totalorder %s7904_s20, %s7898_s18 }
 0x39b   : > { %v5495_v26 = vrot.slane %v9690_v31, 4 }
 0x39c   : > { %6635 = vrot.lane.b32.xlu1 %v6624_v7, %s10087_s0  ;;  %6175 = vrot.lane.b32.xlu0 %v6159_v4, %s10091_s5  ;;  %p7900_p6 = pnand %p7899_p4, %p8120_p12  ;;  %p7907_p3 = por %p7906_p13, %p7905_p10 }
 0x39d   : > { %v5499_v53 = vsel %vm428_vm13, %v5495_v26, %v5496_v37 }
 0x39e   : > { %v5500_v51 = vsel %vm10096_vm2, %v9690_v31, %v5499_v53  ;;  %v9708_v24 = vpop.permute.xlu1 %5600  ;;  %v3798_v61 = vpop.permute.xlu0 %3797  ;;  %p7901_p8 = pneg %p7900_p6 }
 0x39f   : > { %5504 = vst [vmem:[#allocation4 + $0x78] sm:$0xcc] %v5500_v51  ;;  %v3803_v53 = vrot.slane %v3798_v61, 4 }
 0x3a0   : > { %6745 = vrot.lane.b32.xlu1 %v6730_v40, %s10075_s15  ;;  %6289 = vrot.lane.b32.xlu0 %v6279_v23, %s10090_s2  ;;  %p7908_p7 = pnand %p7907_p3, %p7901_p8 }
 0x3a2   : > { %v9718_v30 = vpop.permute.xlu1 %5719  ;;  %v3802_v12 = vpop.permute.xlu0 %3801 }
 0x3a3   : > { %v5724_v50 = vrot.slane %v9718_v30, 4  ;;  %v3805_v0 = vrot.slane %v3802_v12, 4 }
 0x3a4   : > { %6749 = vrot.lane.b32.xlu1 %v6744_v56, %s10075_s15  ;;  %6404 = vrot.lane.b32.xlu0 %v6388_v45, %s10089_s1 }
 0x3a5   : > { %v5728_v43 = vsel %vm428_vm13, %v5724_v50, %v5725_v16 }
 0x3a6   : > { %v5729_v9 = vsel %vm10097_vm15, %v9718_v30, %v5728_v43  ;;  %v9731_v28 = vpop.permute.xlu1 %5829  ;;  %v3917_v1 = vpop.permute.xlu0 %3916 }
 0x3a7   : > { %5733 = vst [vmem:[#allocation4 + $0x88] sm:$0xcc] %v5729_v9  ;;  %v3921_v13 = vrot.slane %v3917_v1, 4 }
 0x3a8   : > { %6518 = vrot.lane.b32.xlu0 %v6508_v15, %s10088_s16 }
 0x3aa   : > { %v9737_v47 = vpop.permute.xlu1 %5948  ;;  %v4027_v18 = vpop.permute.xlu0 %4026 }
 0x3ab   : > { %v5953_v14 = vrot.slane %v9737_v47, 4 }
 0x3ac   : > { %6633 = vrot.lane.b32.xlu0 %v6617_v27, %s10087_s0 }
 0x3ad   : > { %v5957_v25 = vsel %vm428_vm13, %v5953_v14, %v5954_v38 }
 0x3ae   : > { %v5958_v48 = vsel %vm549_vm12, %v9737_v47, %v5957_v25  ;;  %v9749_v22 = vpop.permute.xlu1 %6058  ;;  %v4031_v54 = vpop.permute.xlu0 %4030  ;;  %v4032_v25 = vrot.slane %v4027_v18, 4 }
 0x3af   : > { %5962 = vst [vmem:[#allocation4 + $0x98] sm:$0xcc] %v5958_v48  ;;  %v4034_v48 = vrot.slane %v4031_v54, 4 }
 0x3b0   : > { %6747 = vrot.lane.b32.xlu0 %v6737_v42, %s10075_s15 }
 0x3b2   : > { %v9755_v11 = vpop.permute.xlu1 %6177  ;;  %v4146_v10 = vpop.permute.xlu0 %4145 }
 0x3b3   : > { %v6182_v36 = vrot.slane %v9755_v11, 4 }
 0x3b4   : > { %6794 = vperm.xlu0 %7535, %v6791_v39  }
 0x3b5   : > { %v6186_v59 = vsel %vm428_vm13, %v6182_v36, %v6183_v52 }
 0x3b6   : > { %v6187_v20 = vsel %vm782_vm11, %v9755_v11, %v6186_v59  ;;  %v9767_v32 = vpop.permute.xlu1 %6287  ;;  %v4256_v51 = vpop.permute.xlu0 %4255 }
 0x3b7   : > { %6191 = vst [vmem:[#allocation4 + $0xa8] sm:$0xcc] %v6187_v20  ;;  %v4150_v20 = vrot.slane %v4146_v10, 4 }
 0x3ba   : > { %v9773_v33 = vpop.permute.xlu1 %6406  ;;  %v4260_v16 = vpop.permute.xlu0 %4259 }
 0x3bb   : > { %v6411_v7 = vrot.slane %v9773_v33, 4 }
 0x3bd   : > { %v6415_v37 = vsel %vm428_vm13, %v6411_v7, %v6412_v5 }
 0x3be   : > { %v6416_v3 = vsel %vm741_vm10, %v9773_v33, %v6415_v37  ;;  %v9786_v8 = vpop.permute.xlu1 %6516  ;;  %v4375_v6 = vpop.permute.xlu0 %4374 }
 0x3bf   : > { %6420 = vst [vmem:[#allocation4 + $0xb8] sm:$0xcc] %v6416_v3 }
 0x3c2   : > { %v3800_v17 = vpop.permute.xlu1 %3799  ;;  %v4485_v45 = vpop.permute.xlu0 %4484 }
 0x3c3   : > { %v3804_v49 = vrot.slane %v3800_v17, 4 }
 0x3c5   : > { %v3806_v40 = vsel %vm428_vm13, %v3803_v53, %v3804_v49  ;;  %v3808_v62 = vsel %vm428_vm13, %v3804_v49, %v3805_v0  ;;  %v4263_v53 = vrot.slane %v4260_v16, 4 }
 0x3c6   : > { %v3807_v34 = vsel %vm430_vm6, %v3798_v61, %v3806_v40  ;;  %v3809_v56 = vsel %vm430_vm6, %v3800_v17, %v3808_v62  ;;  %v3915_v55 = vpop.permute.xlu1 %3914  ;;  %v4489_v27 = vpop.permute.xlu0 %4488  ;;  %v4261_v17 = vrot.slane %v4256_v51, 4 }
 0x3c7   : > { %3812 = vst [vmem:[#allocation4] sm:$0x33] %v3807_v34  ;;  %3813 = vst [vmem:[#allocation4 + $0x8] sm:$0x33] %v3809_v56  ;;  %v3920_v57 = vrot.slane %v3915_v55, 4 }
 0x3c9   : > { %v3923_v43 = vsel %vm428_vm13, %v3920_v57, %v3921_v13 }
 0x3ca   : > { %v3924_v9 = vsel %vm549_vm12, %v3915_v55, %v3923_v43  ;;  %v3919_v4 = vpop.permute.xlu1 %3918  ;;  %v4604_v54 = vpop.permute.xlu0 %4603  ;;  %v4379_v43 = vrot.slane %v4375_v6, 4 }
 0x3cb   : > { %3929 = vst [vmem:[#allocation4] sm:$0xcc] %v3924_v9  ;;  %v3922_v23 = vrot.slane %v3919_v4, 4 }
 0x3cd   : > { %v3925_v60 = vsel %vm428_vm13, %v3921_v13, %v3922_v23 }
 0x3ce   : > { %v3926_v61 = vsel %vm549_vm12, %v3917_v1, %v3925_v60  ;;  %v4029_v38 = vpop.permute.xlu1 %4028  ;;  %v4714_v0 = vpop.permute.xlu0 %4713 }
 0x3cf   : > { %3930 = vst [vmem:[#allocation4 + $0x8] sm:$0xcc] %v3926_v61  ;;  %v4033_v29 = vrot.slane %v4029_v38, 4 }
 0x3d1   : > { %v4035_v12 = vsel %vm428_vm13, %v4032_v25, %v4033_v29  ;;  %v4037_v15 = vsel %vm428_vm13, %v4033_v29, %v4034_v48 }
 0x3d2   : > { %v4036_v21 = vsel %vm663_vm5, %v4027_v18, %v4035_v12  ;;  %v4038_v52 = vsel %vm663_vm5, %v4029_v38, %v4037_v15  ;;  %v4144_v59 = vpop.permute.xlu1 %4143  ;;  %v4718_v9 = vpop.permute.xlu0 %4717  ;;  %v4490_v12 = vrot.slane %v4485_v45, 4  ;;  %v4492_v15 = vrot.slane %v4489_v27, 4 }
 0x3d3   : > { %4041 = vst [vmem:[#allocation4 + $0x10] sm:$0x33] %v4036_v21  ;;  %4042 = vst [vmem:[#allocation4 + $0x18] sm:$0x33] %v4038_v52  ;;  %v4149_v1 = vrot.slane %v4144_v59, 4 }
 0x3d5   : > { %v4152_v46 = vsel %vm428_vm13, %v4149_v1, %v4150_v20 }
 0x3d6   : > { %v4153_v42 = vsel %vm782_vm11, %v4144_v59, %v4152_v46  ;;  %v4148_v5 = vpop.permute.xlu1 %4147 }
 0x3d7   : > { %4158 = vst [vmem:[#allocation4 + $0x10] sm:$0xcc] %v4153_v42  ;;  %v4151_v37 = vrot.slane %v4148_v5, 4  ;;  %v4608_v5 = vrot.slane %v4604_v54, 4 }
 0x3d9   : > { %v4154_v39 = vsel %vm428_vm13, %v4150_v20, %v4151_v37 }
 0x3da   : > { %v4155_v18 = vsel %vm782_vm11, %v4146_v10, %v4154_v39  ;;  %v4258_v3 = vpop.permute.xlu1 %4257 }
 0x3db   : > { %4159 = vst [vmem:[#allocation4 + $0x18] sm:$0xcc] %v4155_v18  ;;  %v4262_v49 = vrot.slane %v4258_v3, 4 }
 0x3dd   : > { %v4264_v40 = vsel %vm428_vm13, %v4261_v17, %v4262_v49  ;;  %v4266_v62 = vsel %vm428_vm13, %v4262_v49, %v4263_v53 }
 0x3de   : > { %v4265_v34 = vsel %vm856_vm3, %v4256_v51, %v4264_v40  ;;  %v4267_v56 = vsel %vm856_vm3, %v4258_v3, %v4266_v62  ;;  %v4373_v55 = vpop.permute.xlu1 %4372  ;;  %v7796_v13 = vld [vmem:[#allocation4] ss:$16 sps:$4 sm:$0xff]   ;;  %v7798_v57 = vld [vmem:[#allocation4 + $0x4] ss:$16 sps:$4 sm:$0xff]   ;;  %v9810_v51 = vpop.permute.xlu0 %4832  ;;  %v4719_v40 = vrot.slane %v4714_v0, 4  ;;  %v4721_v62 = vrot.slane %v4718_v9, 4 }
 0x3df   : > { %4270 = vst [vmem:[#allocation4 + $0x20] sm:$0x33] %v4265_v34  ;;  %4271 = vst [vmem:[#allocation4 + $0x28] sm:$0x33] %v4267_v56  ;;  %v4378_v10 = vrot.slane %v4373_v55, 4  ;;  %6948 = vmatprep.subr.bf16.mxu0 %v7798_v57 }
 0x3e0   : > { %6949 = vmatpush1.bf16.msra.mxu0 %v7796_v13 }
 0x3e1   : > { %v4381_v16 = vsel %vm428_vm13, %v4378_v10, %v4379_v43 }
 0x3e2   : > { %v4382_v4 = vsel %vm741_vm10, %v4373_v55, %v4381_v16  ;;  %v4377_v23 = vpop.permute.xlu1 %4376  ;;  %v7799_v60 = vld [vmem:[#allocation4 + $0x8] ss:$16 sps:$4 sm:$0xff]   ;;  %v7801_v61 = vld [vmem:[#allocation4 + $0xc] ss:$16 sps:$4 sm:$0xff]   ;;  %v9814_v21 = vpop.permute.xlu0 %4942 }
 0x3e3   : > { %4387 = vst [vmem:[#allocation4 + $0x20] sm:$0xcc] %v4382_v4  ;;  %v4380_v38 = vrot.slane %v4377_v23, 4  ;;  %6989 = vmatprep.subr.bf16.mxu1 %v7801_v61 }
 0x3e4   : > { %6990 = vmatpush1.bf16.msra.mxu1 %v7799_v60 }
 0x3e5   : > { %v4383_v25 = vsel %vm428_vm13, %v4379_v43, %v4380_v38 }
 0x3e6   : > { %v4384_v48 = vsel %vm741_vm10, %v4375_v6, %v4383_v25  ;;  %v4487_v29 = vpop.permute.xlu1 %4486  ;;  %v4947_v37 = vpop.permute.xlu0 %4946 }
 0x3e7   : > { %4388 = vst [vmem:[#allocation4 + $0x28] sm:$0xcc] %v4384_v48  ;;  %v4491_v52 = vrot.slane %v4487_v29, 4 }
 0x3e9   : > { %v4493_v59 = vsel %vm428_vm13, %v4490_v12, %v4491_v52  ;;  %v4495_v20 = vsel %vm428_vm13, %v4491_v52, %v4492_v15 }
 0x3ea   : > { %v4494_v1 = vsel %vm623_vm1, %v4485_v45, %v4493_v59  ;;  %v4496_v46 = vsel %vm623_vm1, %v4487_v29, %v4495_v20  ;;  %v4602_v42 = vpop.permute.xlu1 %4601  ;;  %v9822_v3 = vpop.permute.xlu0 %5061  ;;  %v4948_v59 = vrot.slane %v9814_v21, 4  ;;  %v4950_v20 = vrot.slane %v4947_v37, 4 }
 0x3eb   : > { %4499 = vst [vmem:[#allocation4 + $0x30] sm:$0x33] %v4494_v1  ;;  %4500 = vst [vmem:[#allocation4 + $0x38] sm:$0x33] %v4496_v46  ;;  %v4607_v6 = vrot.slane %v4602_v42, 4 }
 0x3ed   : > { %v4610_v27 = vsel %vm428_vm13, %v4607_v6, %v4608_v5 }
 0x3ee   : > { %v4611_v39 = vsel %vm508_vm9, %v4602_v42, %v4610_v27  ;;  %v4606_v18 = vpop.permute.xlu1 %4605  ;;  %v9826_v34 = vpop.permute.xlu0 %5171  ;;  %v5379_v42 = vrot.slane %v9600_v58, 4 }
 0x3ef   : > { %4616 = vst [vmem:[#allocation4 + $0x30] sm:$0xcc] %v4611_v39  ;;  %v4609_v17 = vrot.slane %v4606_v18, 4  ;;  %v5177_v31 = vrot.slane %v9826_v34, 4 }
 0x3f1   : > { %v4612_v53 = vsel %vm428_vm13, %v4608_v5, %v4609_v17  ;;  %v5377_v5 = vrot.slane %v9677_v2, 4 }
 0x3f2   : > { %v4613_v45 = vsel %vm508_vm9, %v4604_v54, %v4612_v53  ;;  %v4716_v49 = vpop.permute.xlu1 %4715  ;;  %v4837_v54 = vrot.slane %v9810_v51, 4  ;;  %v9833_v23 = vpop.permute.xlu0 %5175 }
 0x3f3   : > { %4617 = vst [vmem:[#allocation4 + $0x38] sm:$0xcc] %v4613_v45  ;;  %v4720_v56 = vrot.slane %v4716_v49, 4  ;;  %v5066_v45 = vrot.slane %v9822_v3, 4 }
 0x3f5   : > { %v4722_v55 = vsel %vm428_vm13, %v4719_v40, %v4720_v56  ;;  %v4724_v13 = vsel %vm428_vm13, %v4720_v56, %v4721_v62 }
 0x3f6   : > { %v4723_v57 = vsel %vm389_vm0, %v4714_v0, %v4722_v55  ;;  %v4725_v43 = vsel %vm389_vm0, %v4716_v49, %v4724_v13  ;;  %v4831_v10 = vpop.permute.xlu1 %4830  ;;  %v7802_v16 = vld [vmem:[#allocation4 + $0x20] ss:$16 sps:$4 sm:$0xff]   ;;  %v7804_v4 = vld [vmem:[#allocation4 + $0x24] ss:$16 sps:$4 sm:$0xff]   ;;  %v9837_v48 = vpop.permute.xlu0 %6637 }
 0x3f7   : > { %4728 = vst [vmem:[#allocation4 + $0x40] sm:$0x33] %v4723_v57  ;;  %4729 = vst [vmem:[#allocation4 + $0x48] sm:$0x33] %v4725_v43  ;;  %v4836_v9 = vrot.slane %v4831_v10, 4  ;;  %6950 = vmatprep.subr.bf16.mxu0 %v7804_v4  ;;  %v5606_v4 = vrot.slane %v9708_v24, 4 }
 0x3f8   : > { %6951 = vmatpush1.bf16.msra.mxu0 %v7802_v16  ;;  %v5608_v16 = vrot.slane %v9611_v41, 4 }
 0x3f9   : > { %v4839_v60 = vsel %vm428_vm13, %v4836_v9, %v4837_v54 }
 0x3fa   : > { %v4840_v61 = vsel %vm1472_vm14, %v4831_v10, %v4839_v60  ;;  %v4835_v38 = vpop.permute.xlu1 %4834  ;;  %v7805_v0 = vld [vmem:[#allocation4 + $0x28] ss:$16 sps:$4 sm:$0xff]   ;;  %v7807_v25 = vld [vmem:[#allocation4 + $0x2c] ss:$16 sps:$4 sm:$0xff]   ;;  %v5374_v1 = vpop.permute.xlu0 %5373 }
 0x3fb   : > { %4845 = vst [vmem:[#allocation4 + $0x40] sm:$0xcc] %v4840_v61  ;;  %v4838_v29 = vrot.slane %v4835_v38, 4  ;;  %6991 = vmatprep.subr.bf16.mxu1 %v7807_v25  ;;  %v5378_v6 = vrot.slane %v5374_v1, 4 }
 0x3fc   : > { %6992 = vmatpush1.bf16.msra.mxu1 %v7805_v0  ;;  %v5179_v0 = vrot.slane %v9833_v23, 4 }
 0x3fd   : > { %v4841_v12 = vsel %vm428_vm13, %v4837_v54, %v4838_v29  ;;  %v5380_v18 = vsel %vm428_vm13, %v5377_v5, %v5378_v6 }
 0x3fe   : > { %v4842_v15 = vsel %vm1472_vm14, %v9810_v51, %v4841_v12  ;;  %v4945_v52 = vpop.permute.xlu1 %4944  ;;  %v5382_v51 = vsel %vm428_vm13, %v5378_v6, %v5379_v42  ;;  %vm10098_vm14 = vcmask 1039360   ;;  %v5489_v40 = vpop.permute.xlu0 %5488  ;;  %v6641_v42 = vrot.slane %v9837_v48, 4 }
 0x3ff   : > { %4846 = vst [vmem:[#allocation4 + $0x48] sm:$0xcc] %v4842_v15  ;;  %v4949_v46 = vrot.slane %v4945_v52, 4  ;;  %v5381_v58 = vsel %vm10098_vm14, %v9677_v2, %v5380_v18  ;;  %vm10099_vm8 = vmmov %vm10098_vm14  ;;  %v5494_v56 = vrot.slane %v5489_v40, 4  ;;  %vm10102_vm14 = vcmask 7168  }
 0x400   : > { %v5383_v49 = vsel %vm10099_vm8, %v5374_v1, %v5382_v51  ;;  %5386 = vst [vmem:[#allocation4 + $0x70] sm:$0x33] %v5381_v58  ;;  %vm10103_vm8 = vmmov %vm10102_vm14 }
 0x401   : > { %v4951_v27 = vsel %vm428_vm13, %v4948_v59, %v4949_v46  ;;  %v4953_v39 = vsel %vm428_vm13, %v4949_v46, %v4950_v20  ;;  %5387 = vst [vmem:[#allocation4 + $0x78] sm:$0x33] %v5383_v49 }
 0x402   : > { %v4952_v17 = vsel %vm1586_vm4, %v9814_v21, %v4951_v27  ;;  %v4954_v37 = vsel %vm1586_vm4, %v4945_v52, %v4953_v39  ;;  %v5060_v53 = vpop.permute.xlu1 %5059  ;;  %v5497_v21 = vsel %vm428_vm13, %v5494_v56, %v5495_v26  ;;  %vm10100_vm4 = vcmask 56320   ;;  %v5603_v43 = vpop.permute.xlu0 %5602 }
 0x403   : > { %4957 = vst [vmem:[#allocation4 + $0x50] sm:$0x33] %v4952_v17  ;;  %4958 = vst [vmem:[#allocation4 + $0x58] sm:$0x33] %v4954_v37  ;;  %v5065_v62 = vrot.slane %v5060_v53, 4  ;;  %v5498_v2 = vsel %vm10096_vm2, %v5489_v40, %v5497_v21  ;;  %v5607_v54 = vrot.slane %v5603_v43, 4 }
 0x404   : > { %5503 = vst [vmem:[#allocation4 + $0x70] sm:$0xcc] %v5498_v2  ;;  %vm10101_vm15 = vmmov %vm10100_vm4  ;;  %v5835_v27 = vrot.slane %v9731_v28, 4 }
 0x405   : > { %v5068_v55 = vsel %vm428_vm13, %v5065_v62, %v5066_v45  ;;  %v5609_v26 = vsel %vm428_vm13, %v5606_v4, %v5607_v54  ;;  %v5611_v60 = vsel %vm428_vm13, %v5607_v54, %v5608_v16 }
 0x406   : > { %v5069_v13 = vsel %vm10100_vm4, %v5060_v53, %v5068_v55  ;;  %v5064_v57 = vpop.permute.xlu1 %5063  ;;  %v5610_v41 = vsel %vm1546_vm7, %v9708_v24, %v5609_v26  ;;  %v5612_v25 = vsel %vm1546_vm7, %v5603_v43, %v5611_v60  ;;  %v5718_v29 = vpop.permute.xlu0 %5717  ;;  %vm10104_vm7 = vcmask 973824  }
 0x407   : > { %5074 = vst [vmem:[#allocation4 + $0x50] sm:$0xcc] %v5069_v13  ;;  %v5067_v10 = vrot.slane %v5064_v57, 4  ;;  %5615 = vst [vmem:[#allocation4 + $0x80] sm:$0x33] %v5610_v41  ;;  %v5723_v15 = vrot.slane %v5718_v29, 4 }
 0x408   : > { %5616 = vst [vmem:[#allocation4 + $0x88] sm:$0x33] %v5612_v25  ;;  %v6066_v13 = vrot.slane %v9635_v35, 4  ;;  %v6064_v57 = vrot.slane %v9749_v22, 4 }
 0x409   : > { %v5070_v9 = vsel %vm428_vm13, %v5066_v45, %v5067_v10 }
 0x40a   : > { %v5071_v61 = vsel %vm10101_vm15, %v9822_v3, %v5070_v9  ;;  %v5174_v38 = vpop.permute.xlu1 %5173  ;;  %v5726_v3 = vsel %vm428_vm13, %v5723_v15, %v5724_v50  ;;  %v5832_v6 = vpop.permute.xlu0 %5831  ;;  %v5837_v50 = vrot.slane %v9620_v19, 4 }
 0x40b   : > { %5075 = vst [vmem:[#allocation4 + $0x58] sm:$0xcc] %v5071_v61  ;;  %v5178_v12 = vrot.slane %v5174_v38, 4  ;;  %v5727_v5 = vsel %vm10104_vm7, %v5718_v29, %v5726_v3  ;;  %v6293_v61 = vrot.slane %v9767_v32, 4  ;;  %v6524_v3 = vrot.slane %v9663_v63, 4 }
 0x40c   : > { %5732 = vst [vmem:[#allocation4 + $0x80] sm:$0xcc] %v5727_v5 }
 0x40d   : > { %v5180_v52 = vsel %vm428_vm13, %v5177_v31, %v5178_v12  ;;  %v5182_v59 = vsel %vm428_vm13, %v5178_v12, %v5179_v0 }
 0x40e   : > { %v5181_v23 = vsel %vm10102_vm14, %v9826_v34, %v5180_v52  ;;  %v5183_v24 = vsel %vm10103_vm8, %v5174_v38, %v5182_v59  ;;  %v9882_v20 = vpop.permute.xlu1 %6635  ;;  %v7808_v1 = vld [vmem:[#allocation4 + $0x40] ss:$16 sps:$4 sm:$0xff]   ;;  %v7810_v46 = vld [vmem:[#allocation4 + $0x44] ss:$16 sps:$4 sm:$0xff]   ;;  %v5836_v34 = vrot.slane %v5832_v6, 4  ;;  %v5947_v45 = vpop.permute.xlu0 %5946 }
 0x40f   : > { %5186 = vst [vmem:[#allocation4 + $0x60] sm:$0x33] %v5181_v23  ;;  %5187 = vst [vmem:[#allocation4 + $0x68] sm:$0x33] %v5183_v24  ;;  %v6640_v30 = vrot.slane %v9882_v20, 4  ;;  %6952 = vmatprep.subr.bf16.mxu0 %v7810_v46  ;;  %v5952_v58 = vrot.slane %v5947_v45, 4 }
 0x410   : > { %6953 = vmatpush1.bf16.msra.mxu0 %v7808_v1  ;;  %v5838_v48 = vsel %vm428_vm13, %v5835_v27, %v5836_v34  ;;  %v5840_v18 = vsel %vm428_vm13, %v5836_v34, %v5837_v50  ;;  %v6522_v23 = vrot.slane %v9786_v8, 4 }
 0x411   : > { %v6644_v39 = vsel %vm428_vm13, %v6640_v30, %v6641_v42  ;;  %v5839_v19 = vsel %vm430_vm6, %v9731_v28, %v5838_v48  ;;  %v5841_v53 = vsel %vm430_vm6, %v5832_v6, %v5840_v18  ;;  %v5955_v49 = vsel %vm428_vm13, %v5952_v58, %v5953_v14 }
 0x412   : > { %v6645_v51 = vsel %vm508_vm9, %v9882_v20, %v6644_v39  ;;  %v7811_v17 = vld [vmem:[#allocation4 + $0x48] ss:$16 sps:$4 sm:$0xff]   ;;  %v7813_v37 = vld [vmem:[#allocation4 + $0x4c] ss:$16 sps:$4 sm:$0xff]   ;;  %5844 = vst [vmem:[#allocation4 + $0x90] sm:$0x33] %v5839_v19  ;;  %v5956_v56 = vsel %vm549_vm12, %v5947_v45, %v5955_v49  ;;  %v6061_v55 = vpop.permute.xlu0 %6060  ;;  %v6746_v59 = vpop.permute.xlu1 %6745 }
 0x413   : > { %6649 = vst [vmem:[#allocation4 + $0xc8] sm:$0xcc] %v6645_v51  ;;  %5845 = vst [vmem:[#allocation4 + $0x98] sm:$0x33] %v5841_v53  ;;  %6993 = vmatprep.subr.bf16.mxu1 %v7813_v37  ;;  %v6065_v2 = vrot.slane %v6061_v55, 4  ;;  %v6751_v48 = vrot.slane %v6746_v59, 4 }
 0x414   : > { %6994 = vmatpush1.bf16.msra.mxu1 %v7811_v17  ;;  %5961 = vst [vmem:[#allocation4 + $0x90] sm:$0xcc] %v5956_v56  ;;  %v7030_v56 = vld [vmem:[%s8171_s17] sm:$0xff] }
 0x415   : > { %v6067_v47 = vsel %vm428_vm13, %v6064_v57, %v6065_v2  ;;  %v6069_v14 = vsel %vm428_vm13, %v6065_v2, %v6066_v13  ;;  %v7034_v57 = vcombine.high %v7030_v56, %v7030_v56 }
 0x416   : > { %v7814_v40 = vld [vmem:[#allocation4 + $0x60] ss:$16 sps:$4 sm:$0xff]   ;;  %v7816_v62 = vld [vmem:[#allocation4 + $0x64] ss:$16 sps:$4 sm:$0xff]   ;;  %v7817_v21 = vld [vmem:[#allocation4 + $0x68] ss:$16 sps:$4 sm:$0xff]   ;;  %v6068_v43 = vsel %vm663_vm5, %v9749_v22, %v6067_v47  ;;  %v6070_v10 = vsel %vm663_vm5, %v6061_v55, %v6069_v14  ;;  %v6176_v16 = vpop.permute.xlu0 %6175  ;;  %v6750_v63 = vpop.permute.xlu1 %6749 }
 0x417   : > { %v7819_v28 = vld [vmem:[#allocation4 + $0x6c] ss:$16 sps:$4 sm:$0xff]   ;;  %6954 = vmatprep.subr.bf16.mxu0 %v7816_v62  ;;  %6073 = vst [vmem:[#allocation4 + $0xa0] sm:$0x33] %v6068_v43  ;;  %6074 = vst [vmem:[#allocation4 + $0xa8] sm:$0x33] %v6070_v10 }
 0x418   : > { %6995 = vmatprep.subr.bf16.mxu1 %v7819_v28  ;;  %6955 = vmatpush1.bf16.msra.mxu0 %v7814_v40  ;;  %v6181_v35 = vrot.slane %v6176_v16, 4  ;;  %v6295_v22 = vrot.slane %v9647_v44, 4  ;;  %v6753_v18 = vrot.slane %v6750_v63, 4  ;;  %v6762_v62 = vld [vmem:[%s10004_s3] sm:$0x3] }
 0x419   : > { %6996 = vmatpush1.bf16.msra.mxu1 %v7817_v21  ;;  %v7031_v55 = vld [vmem:[%s8171_s17 + $0x8] sm:$0xff]  ;;  %s7456_s17 = sshll.u32 %s8050_s25, 8  ;;  %s7057_s25 = scalar_lea.sflag [#allocation7], %s8165_s26 }
 0x41a   : > { %v7825_v4 = vld [vmem:[#allocation4 + $0x8c] ss:$16 sps:$4 sm:$0xff]   ;;  %v7823_v54 = vld [vmem:[#allocation4 + $0x88] ss:$16 sps:$4 sm:$0xff]   ;;  %v6184_v9 = vsel %vm428_vm13, %v6181_v35, %v6182_v36  ;;  %v6290_v26 = vpop.permute.xlu0 %6289  ;;  %v7035_v2 = vcombine.high %v7031_v55, %v7031_v55  ;;  %s9957_s15 = scalar_lea.hbm %s10007_s6, %s7456_s17 }
 0x41b   : > { %6997 = vmatprep.subr.bf16.mxu1 %v7825_v4  ;;  %v6185_v31 = vsel %vm782_vm11, %v6176_v16, %v6184_v9  ;;  %v7822_v60 = vld [vmem:[#allocation4 + $0x84] ss:$16 sps:$4 sm:$0xff]   ;;  %v6294_v38 = vrot.slane %v6290_v26, 4  ;;  %v7820_v0 = vld [vmem:[#allocation4 + $0x80] ss:$16 sps:$4 sm:$0xff]  }
 0x41c   : > { %6190 = vst [vmem:[#allocation4 + $0xa0] sm:$0xcc] %v6185_v31  ;;  %6956 = vmatprep.subr.bf16.mxu0 %v7822_v60 }
 0x41d   : > { %6998 = vmatpush1.bf16.msra.mxu1 %v7823_v54  ;;  %v6296_v41 = vsel %vm428_vm13, %v6293_v61, %v6294_v38  ;;  %v6298_v25 = vsel %vm428_vm13, %v6294_v38, %v6295_v22  ;;  %6957 = vmatpush1.bf16.msra.mxu0 %v7820_v0 }
 0x41e   : > { %v6297_v11 = vsel %vm856_vm3, %v9767_v32, %v6296_v41  ;;  %v6299_v36 = vsel %vm856_vm3, %v6290_v26, %v6298_v25  ;;  %v6405_v29 = vpop.permute.xlu0 %6404 }
 0x41f   : > { %6302 = vst [vmem:[#allocation4 + $0xb0] sm:$0x33] %v6297_v11  ;;  %6303 = vst [vmem:[#allocation4 + $0xb8] sm:$0x33] %v6299_v36  ;;  %v6410_v44 = vrot.slane %v6405_v29, 4 }
 0x421   : > { %v6413_v12 = vsel %vm428_vm13, %v6410_v44, %v6411_v7 }
 0x422   : > { %v6414_v15 = vsel %vm741_vm10, %v6405_v29, %v6413_v12  ;;  %v6519_v52 = vpop.permute.xlu0 %6518 }
 0x423   : > { %6419 = vst [vmem:[#allocation4 + $0xb0] sm:$0xcc] %v6414_v15  ;;  %v6523_v32 = vrot.slane %v6519_v52, 4 }
 0x425   : > { %v6525_v24 = vsel %vm428_vm13, %v6522_v23, %v6523_v32  ;;  %v6527_v1 = vsel %vm428_vm13, %v6523_v32, %v6524_v3 }
 0x426   : > { %v6526_v46 = vsel %vm623_vm1, %v9786_v8, %v6525_v24  ;;  %v6528_v33 = vsel %vm623_vm1, %v6519_v52, %v6527_v1  ;;  %v6634_v7 = vpop.permute.xlu0 %6633  ;;  %v7829_v42 = vld [vmem:[#allocation4 + $0xa8] ss:$16 sps:$4 sm:$0xff]   ;;  %v7831_v5 = vld [vmem:[#allocation4 + $0xac] ss:$16 sps:$4 sm:$0xff]   ;;  %vm10105_vm1 = vcmask 1045504  }
 0x427   : > { %6531 = vst [vmem:[#allocation4 + $0xc0] sm:$0x33] %v6526_v46  ;;  %6532 = vst [vmem:[#allocation4 + $0xc8] sm:$0x33] %v6528_v33  ;;  %v6639_v6 = vrot.slane %v6634_v7, 4  ;;  %6999 = vmatprep.subr.bf16.mxu1 %v7831_v5 }
 0x428   : > { %7000 = vmatpush1.bf16.msra.mxu1 %v7829_v42  ;;  %vm10106_vm3 = vmmov %vm10105_vm1 }
 0x429   : > { %v6642_v50 = vsel %vm428_vm13, %v6639_v6, %v6640_v30  ;;  %vm10107_vm5 = vmmov %vm10105_vm1 }
 0x42a   : > { %v6643_v27 = vsel %vm508_vm9, %v6634_v7, %v6642_v50  ;;  %v6748_v34 = vpop.permute.xlu0 %6747  ;;  %v7826_v39 = vld [vmem:[#allocation4 + $0xa0] ss:$16 sps:$4 sm:$0xff]   ;;  %v7828_v8 = vld [vmem:[#allocation4 + $0xa4] ss:$16 sps:$4 sm:$0xff]   ;;  %vm10108_vm6 = vmmov %vm10105_vm1 }
 0x42b   : > { %6648 = vst [vmem:[#allocation4 + $0xc0] sm:$0xcc] %v6643_v27  ;;  %v6752_v51 = vrot.slane %v6748_v34, 4  ;;  %6958 = vmatprep.subr.bf16.mxu0 %v7828_v8 }
 0x42c   : > { %6959 = vmatpush1.bf16.msra.mxu0 %v7826_v39 }
 0x42d   : > { %v6754_v17 = vsel %vm428_vm13, %v6751_v48, %v6752_v51  ;;  %v6756_v37 = vsel %vm428_vm13, %v6752_v51, %v6753_v18 }
 0x42e   : > { %v6755_v20 = vsel %vm389_vm0, %v6746_v59, %v6754_v17  ;;  %v6757_v30 = vsel %vm389_vm0, %v6748_v34, %v6756_v37  ;;  %vm10109_vm0 = vcmask 883712  }
 0x42f   : > { %6760 = vst [vmem:[#allocation4 + $0xd0] sm:$0x33] %v6755_v20  ;;  %6761 = vst [vmem:[#allocation4 + $0xd8] sm:$0x33] %v6757_v30 }
 0x430   : > { %vm10110_vm9 = vmmov %vm10109_vm0 }
 0x433   : > { %v6795_v21 = vpop.permute.xlu0 %6794 }
 0x436   : > { %v7832_v19 = vld [vmem:[#allocation4 + $0xc4] ss:$16 sps:$4 sm:$0x3f]   ;;  %v7834_v53 = vld [vmem:[#allocation4 + $0xcc] ss:$16 sps:$4 sm:$0x3f]  }
 0x437   : > { %7446 = vmatprep.subr.msk.bf16.mxu0 %vm10105_vm1, %v7832_v19  ;;  %v7836_v45 = vld [vmem:[#allocation4 + $0xc0] ss:$16 sps:$4 sm:$0x3f]   ;;  %v7837_v58 = vld [vmem:[#allocation4 + $0xc8] ss:$16 sps:$4 sm:$0x3f]   ;;  %7448 = vmatprep.subr.msk.bf16.mxu1 %vm10106_vm3, %v7834_v53 }
 0x438   : > { %v6937_v49 = vsel %vm10107_vm5, %v7836_v45, 0  ;;  %v6943_v40 = vsel %vm10108_vm6, %v7837_v58, 0 }
 0x439   : > { %6961 = vmatpush1.bf16.msra.mxu0 %v6937_v49  ;;  %7002 = vmatpush1.bf16.msra.mxu1 %v6943_v40 }
 0x43c   : > { %7447 = vmatmul.mubr.msk.bf16.vlgmr.msra.gmra.mrb[4].mxu0 %vm10109_vm0, %v6762_v62  ;;  %7449 = vmatmul.mubr.msk.bf16.vlgmr.msra.gmra.mrb[4].mxu1 %vm10110_vm9, %v6762_v62 }
 0x50f   : > { %v6982_v28 = vpop.f32.mrb[4].mxu0  ;;  %v7023_v13 = vpop.f32.mrb[4].mxu1 }
 0x510   : > { %v6983_v47 = vadd.f32 %v6982_v28, %v6795_v21  ;;  %v7024_v14 = vadd.f32 %v7023_v13, %v6795_v21  ;;  %v6984_v43 = vpop.f32.mrb[5].mxu0  ;;  %v7025_v10 = vpop.f32.mrb[5].mxu1 }
 0x511   : > { %v6985_v16 = vadd.f32 %v6984_v43, %v6795_v21  ;;  %v7026_v4 = vadd.f32 %v7025_v10, %v6795_v21  ;;  %v6986_v35 = vpop.f32.mrb[6].mxu0  ;;  %v7027_v54 = vpop.f32.mrb[6].mxu1 }
 0x512   : > { %v7038_v9 = vadd.f32 %v7030_v56, %v6983_v47  ;;  %v7040_v31 = vadd.f32 %v7031_v55, %v7024_v14  ;;  %v6987_v26 = vpop.f32.mrb[7].mxu0  ;;  %v7028_v60 = vpop.f32.mrb[7].mxu1 }
 0x513   : > { %v7039_v22 = vadd.f32 %v7034_v57, %v6985_v16  ;;  %v7041_v61 = vadd.f32 %v7035_v2, %v7026_v4 }
 0x514   : > { %v7042_v38 = vmax.f32 %v7038_v9, 0.0  ;;  %v7044_v0 = vmax.f32 %v7040_v31, 0.0 }
 0x515   : > { %v7043_v41 = vmax.f32 %v7039_v22, 0.0  ;;  %v7045_v25 = vmax.f32 %v7041_v61, 0.0 }
 0x517   : > { %v7050_v11 = vcombine.low %v7042_v38, %v7043_v41  ;;  %v7051_v36 = vcombine.low %v7044_v0, %v7045_v25 }
 0x519   : > { %7054 = vst [vmem:[%s282_s29] sm:$0xff] %v7050_v11  ;;  %7055 = vst [vmem:[%s282_s29 + $0x8] sm:$0xff] %v7051_v36 }
 0x51a   : > { %7911 = shalt.err (!%p7908_p7)
}
 0x51b   : > { %s7912_s26 = scalar_lea.hbm %s9957_s15, 256  ;;  %s7916_s16 = scalar_lea.hbm %s10007_s6, 512 }
 0x51c   : > { %p7913_p9 = scmp.ne.s32.totalorder %s9957_s15, %s7912_s26  ;;  %p7917_p0 = scmp.lt.u32.totalorder %s9957_s15, %s10007_s6 }
 0x51d   : > { %p7918_p11 = scmp.lt.u32.totalorder %s7916_s16, %s7912_s26  ;;  %p7920_p4 = scmp.lt.u32.totalorder %s7912_s26, %s9957_s15 }
 0x51e   : > { %p7914_p2 = pnand %p7913_p9, %p8120_p12 }
 0x51f   : > { %p7919_p1 = por %p7918_p11, %p7917_p0 }
 0x520   : > { %p7915_p5 = pneg %p7914_p2 }
 0x521   : > { %p7921_p6 = por %p7920_p4, %p7919_p1 }
 0x523   : > { %p7922_p8 = pnand %p7921_p6, %p7915_p5 }
 0x525   : > { %7925 = shalt.err (!%p7922_p8)
}
 0x526   : > { %7463 = dma.vmem_to_hbm [thread:$0]  (%p8120_p12), %s9959_s19, 256, %s9957_s15, %s7057_s25  }
 0x527 PF: > { %s7083_s5 = sand.u32 1, %s7956_s21   ;;  %p10112_p10 = scmp.ne.s32.totalorder %s10058_s28, 0 }
 0x528   : > { %p10113_p13 = scmp.ge.s32.totalorder %s7968_s24, 2  ;;  %s7084_s12 = scalar_lea.sflag [#allocation7], %s7083_s5 }
 0x52a   : > { %p7474_p3 = pnand %p10113_p13, %p10112_p10 }
 0x52c   : > { %7951 = dma.done.wait (!%p7474_p3), %s7084_s12, 256  }
 0x52d   : > { %7953 = vsyncadd (!%p7474_p3), %s7084_s12, 4294967040  ;;  %p20_p7 = scmp.ge.s32.totalorder %s8085_s9, 4   ;;  %s10114_s21 = smov %s7960_s22 }
 0x52e   : > { %s10115_s22 = smov %s7964_s23  ;;  %s10116_s23 = smov %s8116_s13 }
 0x52f   : > { %s10117_s24 = smov %s8085_s9  ;;  %22 = sbr.rel (!%p20_p7) target bundleno = 11 (0xb), region = 93 }
 0x536   :  { %7089 = vsyncpa [#allocation6], 1 }
 0x537   :  { %7091 = vsyncpa [#allocation6 + $0x1], 1 }
 0x538   :  { %7092 = vsyncpa [#allocation9], 1 }
 0x539   :  { %7093 = vsyncpa [#allocation7], 1 }
 0x53a   :  { %7095 = vsyncpa [#allocation7 + $0x1], 1 }

</bundles_post_ra>
